<compile_context>
chip_gen: v5e
topology: v5e:2x2
jax: 0.10.0
libtpu: 0.0.40
codegen_flags: <defaults>
</compile_context>

<pallas_src>
import jax
import jax.numpy as jnp
from jax.experimental import pallas as pl
from jax.experimental.pallas import tpu as pltpu

H_SIZE = 300
IM_SIZE = 3072
LABELS = 10

# Lane-padded sizes (multiples of 128) so matmuls / stores are dense.
H_PAD = 384
L_PAD = 128

NEG_INF = -1e30


def _round_up(x, m):
    return (x + m - 1) // m * m


def _fcn_kernel(x_ref, w1_ref, b1_ref, w2_ref, b2_ref, o_ref):
    # Hidden layer on the MXU: bf16 operands, f32 accumulation.
    h = jnp.dot(x_ref[...], w1_ref[...], preferred_element_type=jnp.float32)
    # f32 epilogue on the VPU (bias + ReLU).
    h = jnp.maximum(h + b1_ref[...], 0.0)

    # Output layer (bf16 MXU operands again).
    logits = jnp.dot(h.astype(jnp.bfloat16), w2_ref[...],
                     preferred_element_type=jnp.float32)
    logits = logits + b2_ref[...]  # padded classes carry a -1e30 bias -> exp == 0

    # Numerically-stable softmax over the (padded) class lane dim.
    m = jnp.max(logits, axis=-1, keepdims=True)
    e = jnp.exp(logits - m)
    o_ref[...] = (e / jnp.sum(e, axis=-1, keepdims=True)).astype(o_ref.dtype)


def prepare_params(w1, b1, w2, b2):
    """Pad to lane-friendly shapes and cast MXU operands to bf16.

    w1: (IM_SIZE, H_SIZE) -> (IM_SIZE, H_PAD) bf16 (zero-padded cols)
    b1: (1, H_SIZE)       -> (1, H_PAD)       f32  (zero-padded)
    w2: (H_SIZE, LABELS)  -> (H_PAD, L_PAD)   bf16 (zero-padded rows/cols)
    b2: (1, LABELS)       -> (1, L_PAD)       f32  (padded classes = -1e30)
    """
    w1p = jnp.pad(w1, ((0, 0), (0, H_PAD - H_SIZE))).astype(jnp.bfloat16)
    b1p = jnp.pad(b1, ((0, 0), (0, H_PAD - H_SIZE))).astype(jnp.float32)
    w2p = jnp.pad(w2, ((0, H_PAD - H_SIZE), (0, L_PAD - LABELS))).astype(jnp.bfloat16)
    b2p = jnp.pad(b2.astype(jnp.float32), ((0, 0), (0, L_PAD - LABELS)),
                  constant_values=NEG_INF)
    return w1p, b1p, w2p, b2p


def fcn_forward(x, w1p, b1p, w2p, b2p, *, tb=256):
    """x: (B, C, H, W) float32 NCHW.  Returns softmax probs (B, LABELS) f32."""
    B = x.shape[0]
    x_flat = x.reshape(B, -1).astype(jnp.bfloat16)  # flatten(start_dim=1), bf16 MXU feed
    assert x_flat.shape[1] == IM_SIZE

    # Batch tile: big enough to amortize per-step overhead, small enough that
    # 2x double-buffered x tiles + resident weights stay well under the scoped
    # VMEM default on every generation (v5e/v6e/v7x).
    tb = min(tb, _round_up(B, 8))
    Bp = _round_up(B, tb)
    if Bp != B:
        x_flat = jnp.pad(x_flat, ((0, Bp - B), (0, 0)))

    cost = pl.CostEstimate(
        flops=2 * Bp * (IM_SIZE * H_PAD + H_PAD * L_PAD),
        transcendentals=Bp * L_PAD,
        bytes_accessed=int(x_flat.size) * 2 + int(w1p.size) * 2 + int(w2p.size) * 2
        + int(b1p.size) * 4 + int(b2p.size) * 4 + Bp * L_PAD * 4,
    )

    out = pl.pallas_call(
        _fcn_kernel,
        out_shape=jax.ShapeDtypeStruct((Bp, L_PAD), jnp.float32),
        grid_spec=pltpu.PrefetchScalarGridSpec(
            num_scalar_prefetch=0,
            grid=(Bp // tb,),
            in_specs=[
                pl.BlockSpec((tb, IM_SIZE), lambda i: (i, 0)),     # x: tiled over batch
                pl.BlockSpec((IM_SIZE, H_PAD), lambda i: (0, 0)),  # w1: VMEM-resident
                pl.BlockSpec((1, H_PAD), lambda i: (0, 0)),
                pl.BlockSpec((H_PAD, L_PAD), lambda i: (0, 0)),
                pl.BlockSpec((1, L_PAD), lambda i: (0, 0)),
            ],
            out_specs=pl.BlockSpec((tb, L_PAD), lambda i: (i, 0)),
        ),
        compiler_params=pltpu.CompilerParams(
            dimension_semantics=("parallel",),  # batch tiles shard across TCs on v7x
        ),
        cost_estimate=cost,
    )(x_flat, w1p, b1p, w2p, b2p)

    return out[:B, :LABELS]


def init_params(key):
    k1, k2, k3, k4 = jax.random.split(key, 4)
    # Deterministic synthetic init (shapes match nn.Linear(IM_SIZE, H_SIZE)
    # and nn.Linear(H_SIZE, LABELS), stored transposed as (in, out)).
    s1 = 1.0 / (IM_SIZE ** 0.5)
    s2 = 1.0 / (H_SIZE ** 0.5)
    w1 = jax.random.uniform(k1, (IM_SIZE, H_SIZE), jnp.float32, -s1, s1)
    b1 = jax.random.uniform(k2, (1, H_SIZE), jnp.float32, -s1, s1)
    w2 = jax.random.uniform(k3, (H_SIZE, LABELS), jnp.float32, -s2, s2)
    b2 = jax.random.uniform(k4, (1, LABELS), jnp.float32, -s2, s2)
    return w1, b1, w2, b2


if __name__ == "__main__":
    key = jax.random.PRNGKey(0)
    kx, kp = jax.random.split(key)

    B = 8
    x = jax.random.normal(kx, (B, 3, 32, 32), jnp.float32)  # NCHW, 3*32*32 = 3072
    w1, b1, w2, b2 = init_params(kp)
    params = prepare_params(w1, b1, w2, b2)

    y = fcn_forward(x, *params)
    y = jax.block_until_ready(y)
    assert y.shape == (B, LABELS)
    assert bool(jnp.allclose(jnp.sum(y, axis=-1), 1.0, atol=1e-4))

    # Reference with the same bf16 quantization the kernel applies.
    x_q = x.reshape(B, -1).astype(jnp.bfloat16).astype(jnp.float32)
    w1q = w1.astype(jnp.bfloat16).astype(jnp.float32)
    w2q = w2.astype(jnp.bfloat16).astype(jnp.float32)
    h_q = jnp.maximum(x_q @ w1q + b1, 0.0).astype(jnp.bfloat16).astype(jnp.float32)
    y_ref = jax.nn.softmax(h_q @ w2q + b2, axis=-1)
    assert bool(jnp.allclose(y, y_ref, atol=2e-3, rtol=0.0))

    # Pure-f32 module semantics check (looser tolerance: bf16 weight storage).
    h32 = jnp.maximum(x.reshape(B, -1) @ w1 + b1, 0.0)
    y32 = jax.nn.softmax(h32 @ w2 + b2, axis=-1)
    assert bool(jnp.allclose(y, y32, atol=2e-2, rtol=0.0))

    print("KERNEL_OK")
</pallas_src>

<mosaic_0001>
module attributes {stable_mosaic.version = 11 : i64} {
  func.func @_fcn_kernel(%arg0: i32, %arg1: memref<8x3072xbf16, #tpu.memory_space<vmem>>, %arg2: memref<3072x384xbf16, #tpu.memory_space<vmem>>, %arg3: memref<1x384xf32, #tpu.memory_space<vmem>>, %arg4: memref<384x128xbf16, #tpu.memory_space<vmem>>, %arg5: memref<1x128xf32, #tpu.memory_space<vmem>>, %arg6: memref<8x128xf32, #tpu.memory_space<vmem>>) attributes {dimension_semantics = [#tpu.dimension_semantics<parallel>], iteration_bounds = array<i64: 1>, scalar_prefetch = 0 : i64, scratch_operands = 0 : i64, tpu.core_type = #tpu.core_type<tc>, window_params = [{transform_indices = @transform_0, window_bounds = array<i64: 8, 3072>}, {pipeline_mode = #tpu.pipeline_mode<synchronous>, transform_indices = @transform_1, window_bounds = array<i64: 3072, 384>}, {pipeline_mode = #tpu.pipeline_mode<synchronous>, transform_indices = @transform_2, window_bounds = array<i64: 1, 384>}, {pipeline_mode = #tpu.pipeline_mode<synchronous>, transform_indices = @transform_3, window_bounds = array<i64: 384, 128>}, {pipeline_mode = #tpu.pipeline_mode<synchronous>, transform_indices = @transform_4, window_bounds = array<i64: 1, 128>}, {transform_indices = @transform_5, window_bounds = array<i64: 8, 128>}]} {
    %c0 = arith.constant 0 : index
    %c0_0 = arith.constant 0 : index
    %0 = vector.load %arg1[%c0, %c0_0] : memref<8x3072xbf16, #tpu.memory_space<vmem>>, vector<8x3072xbf16>
    %c0_1 = arith.constant 0 : index
    %c0_2 = arith.constant 0 : index
    %1 = vector.load %arg2[%c0_1, %c0_2] : memref<3072x384xbf16, #tpu.memory_space<vmem>>, vector<3072x384xbf16>
    %cst = arith.constant dense<0.000000e+00> : vector<8x384xf32>
    %2 = tpu.matmul %0, %1, %cst {dimension_numbers = #tpu.dot_dimension_numbers<[1], [0], [0], [1], [0, 0, 1, 1], [], []>} : vector<8x3072xbf16>, vector<3072x384xbf16>, vector<8x384xf32> -> vector<8x384xf32>
    %c0_3 = arith.constant 0 : index
    %c0_4 = arith.constant 0 : index
    %3 = vector.load %arg3[%c0_3, %c0_4] : memref<1x384xf32, #tpu.memory_space<vmem>>, vector<1x384xf32>
    %4 = vector.broadcast %3 : vector<1x384xf32> to vector<8x384xf32>
    %5 = arith.addf %2, %4 : vector<8x384xf32>
    %cst_5 = arith.constant 0.000000e+00 : f32
    %6 = vector.broadcast %cst_5 : f32 to vector<8x384xf32>
    %7 = arith.maximumf %5, %6 : vector<8x384xf32>
    %8 = arith.truncf %7 : vector<8x384xf32> to vector<8x384xbf16>
    %c0_6 = arith.constant 0 : index
    %c0_7 = arith.constant 0 : index
    %9 = vector.load %arg4[%c0_6, %c0_7] : memref<384x128xbf16, #tpu.memory_space<vmem>>, vector<384x128xbf16>
    %cst_8 = arith.constant dense<0.000000e+00> : vector<8x128xf32>
    %10 = tpu.matmul %8, %9, %cst_8 {dimension_numbers = #tpu.dot_dimension_numbers<[1], [0], [0], [1], [0, 0, 1, 1], [], []>} : vector<8x384xbf16>, vector<384x128xbf16>, vector<8x128xf32> -> vector<8x128xf32>
    %c0_9 = arith.constant 0 : index
    %c0_10 = arith.constant 0 : index
    %11 = vector.load %arg5[%c0_9, %c0_10] : memref<1x128xf32, #tpu.memory_space<vmem>>, vector<1x128xf32>
    %12 = vector.broadcast %11 : vector<1x128xf32> to vector<8x128xf32>
    %13 = arith.addf %10, %12 : vector<8x128xf32>
    %cst_11 = arith.constant dense<0xFF800000> : vector<8xf32>
    %14 = vector.multi_reduction <maximumf>, %13, %cst_11 [1] : vector<8x128xf32> to vector<8xf32>
    %15 = vector.shape_cast %14 : vector<8xf32> to vector<8x1xf32>
    %16 = vector.broadcast %15 : vector<8x1xf32> to vector<8x128xf32>
    %17 = arith.subf %13, %16 : vector<8x128xf32>
    %18 = math.exp %17 : vector<8x128xf32>
    %cst_12 = arith.constant dense<0.000000e+00> : vector<8xf32>
    %19 = vector.multi_reduction <add>, %18, %cst_12 [1] : vector<8x128xf32> to vector<8xf32>
    %20 = vector.shape_cast %19 : vector<8xf32> to vector<8x1xf32>
    %21 = vector.broadcast %20 : vector<8x1xf32> to vector<8x128xf32>
    %22 = arith.divf %18, %21 : vector<8x128xf32>
    %c0_13 = arith.constant 0 : index
    %c0_14 = arith.constant 0 : index
    %23 = vector.load %arg6[%c0_13, %c0_14] : memref<8x128xf32, #tpu.memory_space<vmem>>, vector<8x128xf32>
    tpu.vector_store %arg6[%c0_13, %c0_14], %22 {strides = array<i32>} : memref<8x128xf32, #tpu.memory_space<vmem>>, vector<8x128xf32>,
    return
  }
  func.func @transform_0(%arg0: i32) -> (i32, i32) {
    %c0_i32 = arith.constant 0 : i32
    %c0_i32_0 = arith.constant 0 : i32
    return %arg0, %c0_i32 : i32, i32
  }
  func.func @transform_1(%arg0: i32) -> (i32, i32) {
    %c0_i32 = arith.constant 0 : i32
    %c0_i32_0 = arith.constant 0 : i32
    %c0_i32_1 = arith.constant 0 : i32
    return %c0_i32, %c0_i32_0 : i32, i32
  }
  func.func @transform_2(%arg0: i32) -> (i32, i32) {
    %c0_i32 = arith.constant 0 : i32
    %c0_i32_0 = arith.constant 0 : i32
    %c0_i32_1 = arith.constant 0 : i32
    return %c0_i32, %c0_i32_0 : i32, i32
  }
  func.func @transform_3(%arg0: i32) -> (i32, i32) {
    %c0_i32 = arith.constant 0 : i32
    %c0_i32_0 = arith.constant 0 : i32
    %c0_i32_1 = arith.constant 0 : i32
    return %c0_i32, %c0_i32_0 : i32, i32
  }
  func.func @transform_4(%arg0: i32) -> (i32, i32) {
    %c0_i32 = arith.constant 0 : i32
    %c0_i32_0 = arith.constant 0 : i32
    %c0_i32_1 = arith.constant 0 : i32
    return %c0_i32, %c0_i32_0 : i32, i32
  }
  func.func @transform_5(%arg0: i32) -> (i32, i32) {
    %c0_i32 = arith.constant 0 : i32
    %c0_i32_0 = arith.constant 0 : i32
    return %arg0, %c0_i32 : i32, i32
  }
}

</mosaic_0001>

<bundles_post_ra>
// kernel: tpu_custom_call.1
= control target key start
LH: loop header
LB: loop body
LE: loop exit
PB: predicated region body
PF: predicated region fallthrough
CT: control target
= control target key end

     0   :  { %10 = vsyncpa [#allocation3], 0  ;;  %s8642_s0 = inlined_call_operand.hbm [shape: bf16[8,3072], index: 0, kind: input, shape index: {}]   ;;  %s8643_s1 = inlined_call_operand.hbm [shape: bf16[3072,384], index: 1, kind: input, shape index: {}]   ;;  %s8644_s2 = inlined_call_operand.hbm [shape: f32[1,384], index: 2, kind: input, shape index: {}]   ;;  %s8645_s3 = inlined_call_operand.hbm [shape: bf16[384,128], index: 3, kind: input, shape index: {}]   ;;  %s8646_s4 = inlined_call_operand.hbm [shape: f32[1,128], index: 4, kind: input, shape index: {}]   ;;  %s8647_s5 = inlined_call_operand.hbm [shape: f32[8,128], index: 5, kind: output, shape index: {}]  }
   0x1   :  { %11 = vsyncpa [#allocation6], 0 }
   0x2   :  { %12 = vsyncpa [#allocation9], 0  ;;  %s29_s20 = sshll.u32 %s8643_s1, 4  ;;  %s30_s20 = int_to_ptr.hbm [resolvable:$true] %s29_s20 }
   0x3   :  { %13 = vsyncpa [#allocation4], 0  ;;  %s8425_s21 = smov [#allocation5]   ;;  %s53_s25 = sshll.u32 %s8645_s3, 4  ;;  %s54_s25 = int_to_ptr.hbm [resolvable:$true] %s53_s25 }
   0x4   :  { %s31_s22 = sshll.u32 %s8425_s21, 4  ;;  %s8426_s26 = smov 192   ;;  %s32_s22 = int_to_ptr.vmem [resolvable:$true] %s31_s22 }
   0x5   :  { %s8427_s27 = smov 12   ;;  %s8428_s28 = smov [#allocation8]  }
   0x6   :  { %37 = dma.hbm_to_vmem [thread:$0]  %s30_s20, 73728, %s32_s22, [#allocation6], %s8426_s26, %s8426_s26, %s8427_s27  }
   0x7   :  { %s55_s29 = sshll.u32 %s8428_s28, 4  ;;  %s8429_s30 = smov 64   ;;  %s56_s29 = int_to_ptr.vmem [resolvable:$true] %s55_s29 }
   0x8   :  { %s8430_s6 = smov 4   ;;  %s19_s8 = sshll.u32 %s8642_s0, 4  ;;  %s20_s8 = int_to_ptr.hbm [resolvable:$true] %s19_s8 }
   0x9   :  { %61 = dma.hbm_to_vmem [thread:$0]  %s54_s25, 3072, %s56_s29, [#allocation9], %s8429_s30, %s8429_s30, %s8430_s6  }
   0xa   :  { %s8431_s9 = smov [#allocation2]   ;;  %s43_s12 = sshll.u32 %s8644_s2, 4  ;;  %s44_s12 = int_to_ptr.hbm [resolvable:$true] %s43_s12 }
   0xb   :  { %s21_s10 = sshll.u32 %s8431_s9, 4  ;;  %s8432_s13 = smov [#allocation7]   ;;  %s22_s10 = int_to_ptr.vmem [resolvable:$true] %s21_s10 }
   0xc   :  { %24 = dma.hbm_to_vmem [thread:$0]  %s20_s8, 1536, %s22_s10, [#allocation3]  }
   0xd   :  { %s45_s14 = sshll.u32 %s8432_s13, 4  ;;  %s67_s17 = sshll.u32 %s8646_s4, 4  ;;  %s46_s14 = int_to_ptr.vmem [resolvable:$true] %s45_s14  ;;  %s68_s17 = int_to_ptr.hbm [resolvable:$true] %s67_s17 }
   0xe   :  { %48 = dma.hbm_to_vmem [thread:$0]  %s44_s12, 48, %s46_s14, [#allocation6]  }
   0xf   :  { %s8433_s0 = smov [#allocation10]  }
  0x10   :  { %s69_s18 = sshll.u32 %s8433_s0, 4  ;;  %s70_s18 = int_to_ptr.vmem [resolvable:$true] %s69_s18 }
  0x11   :  { %72 = dma.hbm_to_vmem [thread:$0]  %s68_s17, 16, %s70_s18, [#allocation9]  }
  0x12   :  { %8417 = dma.done.wait [#allocation3], 1536  }
  0x13   :  { %8418 = vsyncadd [#allocation3], 4294965760 }
  0x14   :  { %8419 = dma.done.wait [#allocation6], 73776  }
  0x15   :  { %8420 = vsyncadd [#allocation6], 4294893520 }
  0x16   :  { %8421 = dma.done.wait [#allocation9], 3088  }
  0x17   :  { %8422 = vsyncadd [#allocation9], 4294964208  ;;  %v5342_v0 = vld [vmem:[#allocation5 + $0xa8] sm:$0xf]  ;;  %v7678_v1 = vld [vmem:[#allocation5 + $0xb0] sm:$0xf0] }
  0x18   :  { %v5438_v2 = vld [vmem:[#allocation5 + $0x168] sm:$0xf]  ;;  %v5343_v3 = vor.u32 %v7678_v1, %v5342_v0  ;;  %v7702_v4 = vld [vmem:[#allocation5 + $0x170] sm:$0xf0]  ;;  %v5330_v11 = vld [vmem:[#allocation5 + $0x90] sm:$0xf] }
  0x19   :  { %v5534_v5 = vld [vmem:[#allocation5 + $0x228] sm:$0xf]  ;;  %v7726_v6 = vld [vmem:[#allocation5 + $0x230] sm:$0xf0]  ;;  %v5439_v7 = vor.u32 %v7702_v4, %v5438_v2  ;;  %v7675_v13 = vld [vmem:[#allocation5 + $0x98] sm:$0xf0] }
  0x1a   :  { %v5535_v8 = vor.u32 %v7726_v6, %v5534_v5  ;;  %v5630_v9 = vld [vmem:[#allocation5 + $0x2e8] sm:$0xf]  ;;  %v7750_v10 = vld [vmem:[#allocation5 + $0x2f0] sm:$0xf0]  ;;  %4037 = vmatpush.bf16.msra.mxu0 %v5343_v3  ;;  %v5426_v14 = vld [vmem:[#allocation5 + $0x150] sm:$0xf]  ;;  %v5331_v16 = vor.u32 %v7675_v13, %v5330_v11 }
  0x1b   :  { %v5631_v12 = vor.u32 %v7750_v10, %v5630_v9  ;;  %v7699_v15 = vld [vmem:[#allocation5 + $0x158] sm:$0xf0]  ;;  %4050 = vmatpush.bf16.msra.mxu1 %v5439_v7  ;;  %v5522_v18 = vld [vmem:[#allocation5 + $0x210] sm:$0xf]  ;;  %v5318_v23 = vld [vmem:[#allocation5 + $0x78] sm:$0xf] }
  0x1c   :  { %4063 = vmatpush.bf16.msra.mxu2 %v5535_v8  ;;  %v5427_v17 = vor.u32 %v7699_v15, %v5426_v14  ;;  %v7723_v19 = vld [vmem:[#allocation5 + $0x218] sm:$0xf0]  ;;  %v5618_v20 = vld [vmem:[#allocation5 + $0x2d0] sm:$0xf]  ;;  %v7672_v24 = vld [vmem:[#allocation5 + $0x80] sm:$0xf0] }
  0x1d   :  { %4076 = vmatpush.bf16.msra.mxu3 %v5631_v12  ;;  %v5523_v21 = vor.u32 %v7723_v19, %v5522_v18  ;;  %v7747_v22 = vld [vmem:[#allocation5 + $0x2d8] sm:$0xf0]  ;;  %v5414_v26 = vld [vmem:[#allocation5 + $0x138] sm:$0xf]  ;;  %v7696_v27 = vld [vmem:[#allocation5 + $0x140] sm:$0xf0]  ;;  %v5319_v29 = vor.u32 %v7672_v24, %v5318_v23 }
  0x1e   :  { %v5619_v25 = vor.u32 %v7747_v22, %v5618_v20  ;;  %v5510_v28 = vld [vmem:[#allocation5 + $0x1f8] sm:$0xf]  ;;  %4038 = vmatpush.bf16.msra.mxu0 %v5331_v16  ;;  %v7720_v30 = vld [vmem:[#allocation5 + $0x200] sm:$0xf0]  ;;  %v5415_v33 = vor.u32 %v7696_v27, %v5414_v26  ;;  %v5306_v35 = vld [vmem:[#allocation5 + $0x60] sm:$0xf] }
  0x1f   :  { %v5606_v31 = vld [vmem:[#allocation5 + $0x2b8] sm:$0xf]  ;;  %v7744_v32 = vld [vmem:[#allocation5 + $0x2c0] sm:$0xf0]  ;;  %4051 = vmatpush.bf16.msra.mxu1 %v5427_v17  ;;  %v5511_v34 = vor.u32 %v7720_v30, %v5510_v28  ;;  %v7669_v36 = vld [vmem:[#allocation5 + $0x68] sm:$0xf0] }
  0x20   :  { %4064 = vmatpush.bf16.msra.mxu2 %v5523_v21  ;;  %v5402_v37 = vld [vmem:[#allocation5 + $0x120] sm:$0xf]  ;;  %v5607_v38 = vor.u32 %v7744_v32, %v5606_v31  ;;  %v7693_v39 = vld [vmem:[#allocation5 + $0x128] sm:$0xf0]  ;;  %v5307_v44 = vor.u32 %v7669_v36, %v5306_v35  ;;  %v5294_v47 = vld [vmem:[#allocation5 + $0x48] sm:$0xf] }
  0x21   :  { %4077 = vmatpush.bf16.msra.mxu3 %v5619_v25  ;;  %v5498_v40 = vld [vmem:[#allocation5 + $0x1e0] sm:$0xf]  ;;  %v7717_v41 = vld [vmem:[#allocation5 + $0x1e8] sm:$0xf0]  ;;  %v5403_v45 = vor.u32 %v7693_v39, %v5402_v37  ;;  %v7666_v48 = vld [vmem:[#allocation5 + $0x50] sm:$0xf0] }
  0x22   :  { %v5594_v42 = vld [vmem:[#allocation5 + $0x2a0] sm:$0xf]  ;;  %v7741_v43 = vld [vmem:[#allocation5 + $0x2a8] sm:$0xf0]  ;;  %4039 = vmatpush.bf16.msra.mxu0 %v5319_v29  ;;  %v5499_v46 = vor.u32 %v7717_v41, %v5498_v40  ;;  %v5390_v49 = vld [vmem:[#allocation5 + $0x108] sm:$0xf]  ;;  %v5295_v56 = vor.u32 %v7666_v48, %v5294_v47 }
  0x23   :  { %4052 = vmatpush.bf16.msra.mxu1 %v5415_v33  ;;  %v5595_v50 = vor.u32 %v7741_v43, %v5594_v42  ;;  %v7690_v51 = vld [vmem:[#allocation5 + $0x110] sm:$0xf0]  ;;  %v5486_v52 = vld [vmem:[#allocation5 + $0x1c8] sm:$0xf]  ;;  %v5282_v59 = vld [vmem:[#allocation5 + $0x30] sm:$0xf] }
  0x24   :  { %4065 = vmatpush.bf16.msra.mxu2 %v5511_v34  ;;  %v7714_v53 = vld [vmem:[#allocation5 + $0x1d0] sm:$0xf0]  ;;  %v5582_v54 = vld [vmem:[#allocation5 + $0x288] sm:$0xf]  ;;  %v5391_v57 = vor.u32 %v7690_v51, %v5390_v49  ;;  %v7663_v60 = vld [vmem:[#allocation5 + $0x38] sm:$0xf0] }
  0x25   :  { %4078 = vmatpush.bf16.msra.mxu3 %v5607_v38  ;;  %v7738_v55 = vld [vmem:[#allocation5 + $0x290] sm:$0xf0]  ;;  %v5487_v58 = vor.u32 %v7714_v53, %v5486_v52  ;;  %v5378_v61 = vld [vmem:[#allocation5 + $0xf0] sm:$0xf]  ;;  %v7687_v63 = vld [vmem:[#allocation5 + $0xf8] sm:$0xf0]  ;;  %v5283_v4 = vor.u32 %v7663_v60, %v5282_v59 }
  0x26   :  { %4040 = vmatpush.bf16.msra.mxu0 %v5307_v44  ;;  %v5583_v62 = vor.u32 %v7738_v55, %v5582_v54  ;;  %v5474_v0 = vld [vmem:[#allocation5 + $0x1b0] sm:$0xf]  ;;  %v7711_v1 = vld [vmem:[#allocation5 + $0x1b8] sm:$0xf0]  ;;  %v5379_v5 = vor.u32 %v7687_v63, %v5378_v61  ;;  %v5270_v7 = vld [vmem:[#allocation5 + $0x18] sm:$0xf] }
  0x27   :  { %4053 = vmatpush.bf16.msra.mxu1 %v5403_v45  ;;  %v5570_v2 = vld [vmem:[#allocation5 + $0x270] sm:$0xf]  ;;  %v7735_v3 = vld [vmem:[#allocation5 + $0x278] sm:$0xf0]  ;;  %v5475_v6 = vor.u32 %v7711_v1, %v5474_v0  ;;  %v7660_v8 = vld [vmem:[#allocation5 + $0x20] sm:$0xf0] }
  0x28   :  { %4066 = vmatpush.bf16.msra.mxu2 %v5499_v46  ;;  %v5366_v9 = vld [vmem:[#allocation5 + $0xd8] sm:$0xf]  ;;  %v5571_v10 = vor.u32 %v7735_v3, %v5570_v2  ;;  %v7684_v11 = vld [vmem:[#allocation5 + $0xe0] sm:$0xf0]  ;;  %v5271_v16 = vor.u32 %v7660_v8, %v5270_v7  ;;  %v5258_v17 = vld [vmem:[#allocation5] sm:$0xf] }
  0x29   :  { %4079 = vmatpush.bf16.msra.mxu3 %v5595_v50  ;;  %v5462_v12 = vld [vmem:[#allocation5 + $0x198] sm:$0xf]  ;;  %v7708_v13 = vld [vmem:[#allocation5 + $0x1a0] sm:$0xf0]  ;;  %v7657_v18 = vld [vmem:[#allocation5 + $0x8] sm:$0xf0]  ;;  %v5367_v19 = vor.u32 %v7684_v11, %v5366_v9 }
  0x2a   :  { %4041 = vmatpush.bf16.msra.mxu0 %v5295_v56  ;;  %v5558_v14 = vld [vmem:[#allocation5 + $0x258] sm:$0xf]  ;;  %v7732_v15 = vld [vmem:[#allocation5 + $0x260] sm:$0xf0]  ;;  %v5463_v20 = vor.u32 %v7708_v13, %v5462_v12  ;;  %v5354_v21 = vld [vmem:[#allocation5 + $0xc0] sm:$0xf]  ;;  %v5259_v31 = vor.u32 %v7657_v18, %v5258_v17 }
  0x2b   :  { %4054 = vmatpush.bf16.msra.mxu1 %v5391_v57  ;;  %v7681_v22 = vld [vmem:[#allocation5 + $0xc8] sm:$0xf0]  ;;  %v5450_v23 = vld [vmem:[#allocation5 + $0x180] sm:$0xf]  ;;  %v5559_v24 = vor.u32 %v7732_v15, %v5558_v14  ;;  %v5726_v28 = vld [vmem:[#allocation5 + $0x3a8] sm:$0xf] }
  0x2c   :  { %4067 = vmatpush.bf16.msra.mxu2 %v5487_v58  ;;  %v7705_v25 = vld [vmem:[#allocation5 + $0x188] sm:$0xf0]  ;;  %v5546_v26 = vld [vmem:[#allocation5 + $0x240] sm:$0xf]  ;;  %v7774_v29 = vld [vmem:[#allocation5 + $0x3b0] sm:$0xf0]  ;;  %v5355_v35 = vor.u32 %v7681_v22, %v5354_v21 }
  0x2d   :  { %4080 = vmatpush.bf16.msra.mxu3 %v5583_v62  ;;  %v7729_v27 = vld [vmem:[#allocation5 + $0x248] sm:$0xf0]  ;;  %v5822_v30 = vld [vmem:[#allocation5 + $0x468] sm:$0xf]  ;;  %v7798_v32 = vld [vmem:[#allocation5 + $0x470] sm:$0xf0]  ;;  %v5451_v36 = vor.u32 %v7705_v25, %v5450_v23  ;;  %v5727_v40 = vor.u32 %v7774_v29, %v5726_v28 }
  0x2e   :  { %4042 = vmatpush.bf16.msra.mxu0 %v5283_v4  ;;  %v5918_v33 = vld [vmem:[#allocation5 + $0x528] sm:$0xf]  ;;  %v7822_v34 = vld [vmem:[#allocation5 + $0x530] sm:$0xf0]  ;;  %v5547_v39 = vor.u32 %v7729_v27, %v5546_v26  ;;  %v5823_v41 = vor.u32 %v7798_v32, %v5822_v30  ;;  %v5714_v43 = vld [vmem:[#allocation5 + $0x390] sm:$0xf] }
  0x2f   :  { %4055 = vmatpush.bf16.msra.mxu1 %v5379_v5  ;;  %v6014_v37 = vld [vmem:[#allocation5 + $0x5e8] sm:$0xf]  ;;  %v7846_v38 = vld [vmem:[#allocation5 + $0x5f0] sm:$0xf0]  ;;  %v5919_v42 = vor.u32 %v7822_v34, %v5918_v33  ;;  %v7771_v44 = vld [vmem:[#allocation5 + $0x398] sm:$0xf0] }
  0x30   :  { %4068 = vmatpush.bf16.msra.mxu2 %v5475_v6  ;;  %v5810_v45 = vld [vmem:[#allocation5 + $0x450] sm:$0xf]  ;;  %v6015_v46 = vor.u32 %v7846_v38, %v6014_v37  ;;  %v7795_v47 = vld [vmem:[#allocation5 + $0x458] sm:$0xf0]  ;;  %v5715_v52 = vor.u32 %v7771_v44, %v5714_v43  ;;  %v5702_v53 = vld [vmem:[#allocation5 + $0x378] sm:$0xf] }
  0x31   :  { %4081 = vmatpush.bf16.msra.mxu3 %v5571_v10  ;;  %v5906_v48 = vld [vmem:[#allocation5 + $0x510] sm:$0xf]  ;;  %v7819_v49 = vld [vmem:[#allocation5 + $0x518] sm:$0xf0]  ;;  %v5811_v54 = vor.u32 %v7795_v47, %v5810_v45  ;;  %v7768_v56 = vld [vmem:[#allocation5 + $0x380] sm:$0xf0] }
  0x32   :  { %4043 = vmatpush.bf16.msra.mxu0 %v5271_v16  ;;  %v6002_v50 = vld [vmem:[#allocation5 + $0x5d0] sm:$0xf]  ;;  %v7843_v51 = vld [vmem:[#allocation5 + $0x5d8] sm:$0xf0]  ;;  %v5907_v55 = vor.u32 %v7819_v49, %v5906_v48  ;;  %v5798_v57 = vld [vmem:[#allocation5 + $0x438] sm:$0xf]  ;;  %v5703_v0 = vor.u32 %v7768_v56, %v5702_v53 }
  0x33   :  { %4056 = vmatpush.bf16.msra.mxu1 %v5367_v19  ;;  %v7792_v58 = vld [vmem:[#allocation5 + $0x440] sm:$0xf0]  ;;  %v6003_v59 = vor.u32 %v7843_v51, %v6002_v50  ;;  %v5894_v60 = vld [vmem:[#allocation5 + $0x4f8] sm:$0xf]  ;;  %v94_v2 = vld [vmem:[#allocation2 + $0x8] sm:$0xff]  ;;  %s8434_s2 = smov [#allocation11]  }
  0x34   :  { %4069 = vmatpush.bf16.msra.mxu2 %v5463_v20  ;;  %v7816_v61 = vld [vmem:[#allocation5 + $0x500] sm:$0xf0]  ;;  %v5990_v62 = vld [vmem:[#allocation5 + $0x5b8] sm:$0xf]  ;;  %v5799_v1 = vor.u32 %v7792_v58, %v5798_v57  ;;  %v5690_v5 = vld [vmem:[#allocation5 + $0x360] sm:$0xf]  ;;  %v895_v8 = vunpack.c.l.b16 %v94_v2  ;;  %v896_v10 = vunpack.c.h.b16 %v94_v2 }
  0x35   :  { %4082 = vmatpush.bf16.msra.mxu3 %v5559_v24  ;;  %v7840_v63 = vld [vmem:[#allocation5 + $0x5c0] sm:$0xf0]  ;;  %v5895_v4 = vor.u32 %v7816_v61, %v5894_v60  ;;  %v7765_v6 = vld [vmem:[#allocation5 + $0x368] sm:$0xf0]  ;;  %v5786_v7 = vld [vmem:[#allocation5 + $0x420] sm:$0xf] }
  0x36   :  { %4044 = vmatpush.bf16.msra.mxu0 %v5259_v31  ;;  %v93_v3 = vld [vmem:[#allocation2] sm:$0xff]  ;;  %v5991_v11 = vor.u32 %v7840_v63, %v5990_v62  ;;  %v7789_v12 = vld [vmem:[#allocation5 + $0x428] sm:$0xf0]  ;;  %v8480_v18 = vpack.c.b16 %v895_v8, %v895_v8  ;;  %v8484_v20 = vpack.c.b16 %v896_v10, %v896_v10  ;;  %v5691_v21 = vor.u32 %v7765_v6, %v5690_v5  ;;  %v5678_v25 = vld [vmem:[#allocation5 + $0x348] sm:$0xf]  ;;  %s5242_s4 = sshll.u32 %s8434_s2, 4  ;;  %s5243_s4 = int_to_ptr.vmem [resolvable:$true] %s5242_s4 }
  0x37   :  { %4057 = vmatpush.bf16.msra.mxu1 %v5355_v35  ;;  %v893_v9 = vunpack.c.l.b16 %v93_v3  ;;  %v5882_v13 = vld [vmem:[#allocation5 + $0x4e0] sm:$0xf]  ;;  %v7813_v14 = vld [vmem:[#allocation5 + $0x4e8] sm:$0xf0]  ;;  %v894_v15 = vunpack.c.h.b16 %v93_v3  ;;  %v5787_v23 = vor.u32 %v7789_v12, %v5786_v7  ;;  %v7762_v26 = vld [vmem:[#allocation5 + $0x350] sm:$0xf0] }
  0x38   :  { %4070 = vmatpush.bf16.msra.mxu2 %v5451_v36  ;;  %v5978_v16 = vld [vmem:[#allocation5 + $0x5a0] sm:$0xf]  ;;  %v7837_v17 = vld [vmem:[#allocation5 + $0x5a8] sm:$0xf0]  ;;  %v5883_v24 = vor.u32 %v7813_v14, %v5882_v13  ;;  %v5774_v27 = vld [vmem:[#allocation5 + $0x408] sm:$0xf]  ;;  %v5679_v34 = vor.u32 %v7762_v26, %v5678_v25 }
  0x39   :  { %4083 = vmatpush.bf16.msra.mxu3 %v5547_v39  ;;  %v8482_v19 = vpack.c.b16 %v893_v9, %v893_v9  ;;  %v8486_v22 = vpack.c.b16 %v894_v15, %v894_v15  ;;  %v5979_v28 = vor.u32 %v7837_v17, %v5978_v16  ;;  %v7786_v29 = vld [vmem:[#allocation5 + $0x410] sm:$0xf0]  ;;  %v5870_v30 = vld [vmem:[#allocation5 + $0x4c8] sm:$0xf]  ;;  %v5666_v37 = vld [vmem:[#allocation5 + $0x330] sm:$0xf] }
  0x3a   :  { %4089 = vmatpush.bf16.msrb.mxu0 %v5727_v40  ;;  %v7810_v31 = vld [vmem:[#allocation5 + $0x4d0] sm:$0xf0]  ;;  %v5966_v32 = vld [vmem:[#allocation5 + $0x588] sm:$0xf]  ;;  %v5775_v35 = vor.u32 %v7786_v29, %v5774_v27  ;;  %v7759_v38 = vld [vmem:[#allocation5 + $0x338] sm:$0xf0] }
  0x3b   :  { %4102 = vmatpush.bf16.msrb.mxu1 %v5823_v41  ;;  %4071 = vmatmul.bf16.vlgmr.msra.gmra.mxu2 %v8480_v18  ;;  %v7834_v33 = vld [vmem:[#allocation5 + $0x590] sm:$0xf0]  ;;  %v5871_v36 = vor.u32 %v7810_v31, %v5870_v30  ;;  %v5762_v39 = vld [vmem:[#allocation5 + $0x3f0] sm:$0xf]  ;;  %v7783_v41 = vld [vmem:[#allocation5 + $0x3f8] sm:$0xf0] }
  0x3c   :  { %4115 = vmatpush.bf16.msrb.mxu2 %v5919_v42  ;;  %4045 = vmatmul.bf16.vlgmr.msra.gmra.mxu0 %v8482_v19  ;;  %v5967_v40 = vor.u32 %v7834_v33, %v5966_v32  ;;  %v5858_v42 = vld [vmem:[#allocation5 + $0x4b0] sm:$0xf]  ;;  %v7807_v43 = vld [vmem:[#allocation5 + $0x4b8] sm:$0xf0]  ;;  %v5763_v47 = vor.u32 %v7783_v41, %v5762_v39  ;;  %v5654_v49 = vld [vmem:[#allocation5 + $0x318] sm:$0xf] }
  0x3d   :  { %4128 = vmatpush.bf16.msrb.mxu3 %v6015_v46  ;;  %4058 = vmatmul.bf16.vlgmr.msra.gmra.mxu1 %v8486_v22  ;;  %v5954_v44 = vld [vmem:[#allocation5 + $0x570] sm:$0xf]  ;;  %v7831_v45 = vld [vmem:[#allocation5 + $0x578] sm:$0xf0]  ;;  %v5667_v46 = vor.u32 %v7759_v38, %v5666_v37  ;;  %v5859_v48 = vor.u32 %v7807_v43, %v5858_v42  ;;  %v7756_v50 = vld [vmem:[#allocation5 + $0x320] sm:$0xf0] }
  0x3e   :  { %4090 = vmatpush.bf16.msrb.mxu0 %v5715_v52  ;;  %4084 = vmatmul.bf16.vlgmr.msra.gmra.mxu3 %v8484_v20  ;;  %v5750_v51 = vld [vmem:[#allocation5 + $0x3d8] sm:$0xf]  ;;  %v5955_v52 = vor.u32 %v7831_v45, %v5954_v44  ;;  %v7780_v53 = vld [vmem:[#allocation5 + $0x3e0] sm:$0xf0]  ;;  %v5642_v58 = vld [vmem:[#allocation5 + $0x300] sm:$0xf] }
  0x3f   :  { %4103 = vmatpush.bf16.msrb.mxu1 %v5811_v54  ;;  %v5846_v54 = vld [vmem:[#allocation5 + $0x498] sm:$0xf]  ;;  %v7828_v57 = vld [vmem:[#allocation5 + $0x560] sm:$0xf0]  ;;  %v7753_v60 = vld [vmem:[#allocation5 + $0x308] sm:$0xf0]  ;;  %v5751_v63 = vor.u32 %v7780_v53, %v5750_v51 }
  0x40   :  { %4116 = vmatpush.bf16.msrb.mxu2 %v5907_v55  ;;  %v7804_v55 = vld [vmem:[#allocation5 + $0x4a0] sm:$0xf0]  ;;  %v5942_v56 = vld [vmem:[#allocation5 + $0x558] sm:$0xf]  ;;  %v5738_v61 = vld [vmem:[#allocation5 + $0x3c0] sm:$0xf] }
  0x41   :  { %4129 = vmatpush.bf16.msrb.mxu3 %v6003_v59  ;;  %v5655_v59 = vor.u32 %v7756_v50, %v5654_v49  ;;  %v7777_v62 = vld [vmem:[#allocation5 + $0x3c8] sm:$0xf0]  ;;  %v96_v3 = vld [vmem:[#allocation2 + $0x18] sm:$0xff]  ;;  %v5930_v5 = vld [vmem:[#allocation5 + $0x540] sm:$0xf]  ;;  %s5244_s21 = sshll.u32 %s8647_s5, 4  ;;  %s5245_s21 = int_to_ptr.hbm [resolvable:$true] %s5244_s21 }
  0x42   :  { %4091 = vmatpush.bf16.msrb.mxu0 %v5703_v0  ;;  %v5847_v0 = vor.u32 %v7804_v55, %v5846_v54  ;;  %v7801_v2 = vld [vmem:[#allocation5 + $0x488] sm:$0xf0]  ;;  %v95_v7 = vld [vmem:[#allocation2 + $0x10] sm:$0xff]  ;;  %v6110_v8 = vld [vmem:[#allocation5 + $0x6a8] sm:$0xf]  ;;  %v899_v15 = vunpack.c.l.b16 %v96_v3  ;;  %v5739_v16 = vor.u32 %v7777_v62, %v5738_v61  ;;  %v900_v25 = vunpack.c.h.b16 %v96_v3 }
  0x43   :  { %4104 = vmatpush.bf16.msrb.mxu1 %v5799_v1  ;;  %v5834_v1 = vld [vmem:[#allocation5 + $0x480] sm:$0xf]  ;;  %v7825_v6 = vld [vmem:[#allocation5 + $0x548] sm:$0xf0]  ;;  %v7870_v9 = vld [vmem:[#allocation5 + $0x6b0] sm:$0xf0] }
  0x44   :  { %4117 = vmatpush.bf16.msrb.mxu2 %v5895_v4  ;;  %v5943_v4 = vor.u32 %v7828_v57, %v5942_v56  ;;  %v6206_v10 = vld [vmem:[#allocation5 + $0x768] sm:$0xf]  ;;  %v7894_v12 = vld [vmem:[#allocation5 + $0x770] sm:$0xf0]  ;;  %v5835_v17 = vor.u32 %v7801_v2, %v5834_v1  ;;  %v5931_v26 = vor.u32 %v7825_v6, %v5930_v5  ;;  %v6111_v27 = vor.u32 %v7870_v9, %v6110_v8  ;;  %v6098_v31 = vld [vmem:[#allocation5 + $0x690] sm:$0xf] }
  0x45   :  { %4130 = vmatpush.bf16.msrb.mxu3 %v5991_v11  ;;  %v5643_v11 = vor.u32 %v7753_v60, %v5642_v58  ;;  %v6302_v13 = vld [vmem:[#allocation5 + $0x828] sm:$0xf]  ;;  %v7918_v14 = vld [vmem:[#allocation5 + $0x830] sm:$0xf0]  ;;  %v6207_v29 = vor.u32 %v7894_v12, %v6206_v10  ;;  %v7867_v32 = vld [vmem:[#allocation5 + $0x698] sm:$0xf0]  ;;  %v8492_v38 = vpack.c.b16 %v899_v15, %v899_v15  ;;  %v8496_v42 = vpack.c.b16 %v900_v25, %v900_v25 }
  0x46   :  { %4092 = vmatpush.bf16.msrb.mxu0 %v5691_v21  ;;  %v6398_v21 = vld [vmem:[#allocation5 + $0x8e8] sm:$0xf]  ;;  %v6303_v30 = vor.u32 %v7918_v14, %v6302_v13  ;;  %v6194_v33 = vld [vmem:[#allocation5 + $0x750] sm:$0xf]  ;;  %v7915_v37 = vld [vmem:[#allocation5 + $0x818] sm:$0xf0]  ;;  %v6099_v43 = vor.u32 %v7867_v32, %v6098_v31 }
  0x47   :  { %4105 = vmatpush.bf16.msrb.mxu1 %v5787_v23  ;;  %v7942_v23 = vld [vmem:[#allocation5 + $0x8f0] sm:$0xf0]  ;;  %v6386_v39 = vld [vmem:[#allocation5 + $0x8d0] sm:$0xf]  ;;  %v6182_v49 = vld [vmem:[#allocation5 + $0x738] sm:$0xf] }
  0x48   :  { %4118 = vmatpush.bf16.msrb.mxu2 %v5883_v24  ;;  %v897_v24 = vunpack.c.l.b16 %v95_v7  ;;  %v7888_v51 = vld [vmem:[#allocation5 + $0x740] sm:$0xf0]  ;;  %v6374_v54 = vld [vmem:[#allocation5 + $0x8b8] sm:$0xf]  ;;  %v7861_v60 = vld [vmem:[#allocation5 + $0x668] sm:$0xf0] }
  0x49   :  { %4131 = vmatpush.bf16.msrb.mxu3 %v5979_v28  ;;  %v898_v28 = vunpack.c.h.b16 %v95_v7  ;;  %v7912_v53 = vld [vmem:[#allocation5 + $0x800] sm:$0xf0]  ;;  %v6183_v57 = vor.u32 %v7888_v51, %v6182_v49  ;;  %v6170_v61 = vld [vmem:[#allocation5 + $0x720] sm:$0xf]  ;;  %v7909_v1 = vld [vmem:[#allocation5 + $0x7e8] sm:$0xf0] }
  0x4a   :  { %4093 = vmatpush.bf16.msrb.mxu0 %v5679_v34  ;;  %v6399_v34 = vor.u32 %v7942_v23, %v6398_v21  ;;  %v8494_v41 = vpack.c.b16 %v897_v24, %v897_v24  ;;  %v7936_v55 = vld [vmem:[#allocation5 + $0x8c0] sm:$0xf0]  ;;  %v6362_v2 = vld [vmem:[#allocation5 + $0x8a0] sm:$0xf]  ;;  %v7933_v3 = vld [vmem:[#allocation5 + $0x8a8] sm:$0xf0] }
  0x4b   :  { %4106 = vmatpush.bf16.msrb.mxu1 %v5775_v35  ;;  %v7891_v35 = vld [vmem:[#allocation5 + $0x758] sm:$0xf0]  ;;  %v8498_v44 = vpack.c.b16 %v898_v28, %v898_v28  ;;  %v6375_v62 = vor.u32 %v7936_v55, %v6374_v54  ;;  %v6062_v7 = vld [vmem:[#allocation5 + $0x648] sm:$0xf]  ;;  %v7858_v8 = vld [vmem:[#allocation5 + $0x650] sm:$0xf0]  ;;  %v6363_v10 = vor.u32 %v7933_v3, %v6362_v2 }
  0x4c   :  { %4119 = vmatpush.bf16.msrb.mxu2 %v5871_v36  ;;  %v6290_v36 = vld [vmem:[#allocation5 + $0x810] sm:$0xf]  ;;  %v6195_v45 = vor.u32 %v7891_v35, %v6194_v33  ;;  %v6158_v9 = vld [vmem:[#allocation5 + $0x708] sm:$0xf]  ;;  %v7906_v13 = vld [vmem:[#allocation5 + $0x7d0] sm:$0xf0] }
  0x4d   :  { %4132 = vmatpush.bf16.msrb.mxu3 %v5967_v40  ;;  %v7939_v40 = vld [vmem:[#allocation5 + $0x8d8] sm:$0xf0]  ;;  %v6254_v12 = vld [vmem:[#allocation5 + $0x7c8] sm:$0xf]  ;;  %v7930_v15 = vld [vmem:[#allocation5 + $0x890] sm:$0xf0] }
  0x4e   :  { %4094 = vmatpush.bf16.msrb.mxu0 %v5667_v46  ;;  %v6291_v46 = vor.u32 %v7915_v37, %v6290_v36  ;;  %v6387_v50 = vor.u32 %v7939_v40, %v6386_v39  ;;  %v6350_v14 = vld [vmem:[#allocation5 + $0x888] sm:$0xf]  ;;  %v6255_v21 = vor.u32 %v7906_v13, %v6254_v12  ;;  %v6050_v23 = vld [vmem:[#allocation5 + $0x630] sm:$0xf]  ;;  %v7855_v24 = vld [vmem:[#allocation5 + $0x638] sm:$0xf0] }
  0x4f   :  { %4107 = vmatpush.bf16.msrb.mxu1 %v5763_v47  ;;  %v6086_v47 = vld [vmem:[#allocation5 + $0x678] sm:$0xf]  ;;  %v6146_v25 = vld [vmem:[#allocation5 + $0x6f0] sm:$0xf]  ;;  %v7927_v31 = vld [vmem:[#allocation5 + $0x878] sm:$0xf0]  ;;  %v6051_v32 = vor.u32 %v7855_v24, %v6050_v23 }
  0x50   :  { %4120 = vmatpush.bf16.msrb.mxu2 %v5859_v48  ;;  %v7864_v48 = vld [vmem:[#allocation5 + $0x680] sm:$0xf0]  ;;  %v6242_v28 = vld [vmem:[#allocation5 + $0x7b0] sm:$0xf]  ;;  %v6038_v33 = vld [vmem:[#allocation5 + $0x618] sm:$0xf] }
  0x51   :  { %4133 = vmatpush.bf16.msrb.mxu3 %v5955_v52  ;;  %v6278_v52 = vld [vmem:[#allocation5 + $0x7f8] sm:$0xf]  ;;  %v6087_v56 = vor.u32 %v7864_v48, %v6086_v47  ;;  %v7852_v36 = vld [vmem:[#allocation5 + $0x620] sm:$0xf0]  ;;  %v6026_v48 = vld [vmem:[#allocation5 + $0x600] sm:$0xf] }
  0x52   :  { %4095 = vmatpush.bf16.msrb.mxu0 %v5655_v59  ;;  %v6279_v58 = vor.u32 %v7912_v53, %v6278_v52  ;;  %v6074_v59 = vld [vmem:[#allocation5 + $0x660] sm:$0xf]  ;;  %v6134_v37 = vld [vmem:[#allocation5 + $0x6d8] sm:$0xf]  ;;  %v7876_v39 = vld [vmem:[#allocation5 + $0x6e0] sm:$0xf0]  ;;  %v6039_v49 = vor.u32 %v7852_v36, %v6038_v33 }
  0x53   :  { %4108 = vmatpush.bf16.msrb.mxu1 %v5751_v63  ;;  %v7885_v63 = vld [vmem:[#allocation5 + $0x728] sm:$0xf0]  ;;  %v7924_v47 = vld [vmem:[#allocation5 + $0x860] sm:$0xf0]  ;;  %v6122_v51 = vld [vmem:[#allocation5 + $0x6c0] sm:$0xf]  ;;  %v6135_v53 = vor.u32 %v7876_v39, %v6134_v37 }
  0x54   :  { %4121 = vmatpush.bf16.msrb.mxu2 %v5847_v0  ;;  %v6266_v0 = vld [vmem:[#allocation5 + $0x7e0] sm:$0xf]  ;;  %v6171_v5 = vor.u32 %v7885_v63, %v6170_v61  ;;  %v7873_v52 = vld [vmem:[#allocation5 + $0x6c8] sm:$0xf0]  ;;  %v7966_v63 = vld [vmem:[#allocation5 + $0x9b0] sm:$0xf0] }
  0x55   :  { %4134 = vmatpush.bf16.msrb.mxu3 %v5943_v4  ;;  %v6075_v4 = vor.u32 %v7861_v60, %v6074_v59  ;;  %v6267_v6 = vor.u32 %v7909_v1, %v6266_v0  ;;  %v6218_v55 = vld [vmem:[#allocation5 + $0x780] sm:$0xf]  ;;  %v7921_v60 = vld [vmem:[#allocation5 + $0x848] sm:$0xf0]  ;;  %v6590_v0 = vld [vmem:[#allocation5 + $0xa68] sm:$0xf] }
  0x56   :  { %4096 = vmatpush.bf16.msrb.mxu0 %v5643_v11  ;;  %v7882_v11 = vld [vmem:[#allocation5 + $0x710] sm:$0xf0]  ;;  %v6314_v59 = vld [vmem:[#allocation5 + $0x840] sm:$0xf]  ;;  %v98_v61 = vld [vmem:[#allocation2 + $0x28] sm:$0xff] }
  0x57   :  { %4109 = vmatpush.bf16.msrb.mxu1 %v5739_v16  ;;  %v6063_v16 = vor.u32 %v7858_v8, %v6062_v7  ;;  %v7990_v2 = vld [vmem:[#allocation5 + $0xa70] sm:$0xf0]  ;;  %v6686_v3 = vld [vmem:[#allocation5 + $0xb28] sm:$0xf]  ;;  %v6315_v12 = vor.u32 %v7921_v60, %v6314_v59  ;;  %v6578_v23 = vld [vmem:[#allocation5 + $0xa50] sm:$0xf] }
  0x58   :  { %4122 = vmatpush.bf16.msrb.mxu2 %v5835_v17  ;;  %v6159_v17 = vor.u32 %v7882_v11, %v6158_v9  ;;  %v6782_v8 = vld [vmem:[#allocation5 + $0xbe8] sm:$0xf]  ;;  %v8038_v9 = vld [vmem:[#allocation5 + $0xbf0] sm:$0xf0]  ;;  %v6470_v37 = vld [vmem:[#allocation5 + $0x978] sm:$0xf] }
  0x59   :  { %4135 = vmatpush.bf16.msrb.mxu3 %v5931_v26  ;;  %4097 = vmatmul.bf16.vlgmr.msrb.gmra.mxu0 %v8494_v41  ;;  %v6351_v26 = vor.u32 %v7930_v15, %v6350_v14  ;;  %v904_v14 = vunpack.c.h.b16 %v98_v61  ;;  %v6591_v15 = vor.u32 %v7990_v2, %v6590_v0  ;;  %v6783_v24 = vor.u32 %v8038_v9, %v6782_v8  ;;  %v7960_v39 = vld [vmem:[#allocation5 + $0x980] sm:$0xf0]  ;;  %v8005_v59 = vld [vmem:[#allocation5 + $0xae8] sm:$0xf0]  ;;  %v6746_v60 = vld [vmem:[#allocation5 + $0xba0] sm:$0xf] }
  0x5a   :  { %4141 = vmatpush.bf16.msra.mxu0 %v6111_v27  ;;  %4110 = vmatmul.bf16.vlgmr.msrb.gmra.mxu1 %v8498_v44  ;;  %v7879_v27 = vld [vmem:[#allocation5 + $0x6f8] sm:$0xf0]  ;;  %v7954_v2 = vld [vmem:[#allocation5 + $0x950] sm:$0xf0]  ;;  %v6734_v8 = vld [vmem:[#allocation5 + $0xb88] sm:$0xf] }
  0x5b   :  { %4154 = vmatpush.bf16.msra.mxu1 %v6207_v29  ;;  %4123 = vmatmul.bf16.vlgmr.msrb.gmra.mxu2 %v8492_v38  ;;  %v7903_v29 = vld [vmem:[#allocation5 + $0x7b8] sm:$0xf0]  ;;  %v8510_v33 = vpack.c.b16 %v904_v14, %v904_v14  ;;  %v8026_v9 = vld [vmem:[#allocation5 + $0xb90] sm:$0xf0] }
  0x5c   :  { %4167 = vmatpush.bf16.msra.mxu2 %v6303_v30  ;;  %4136 = vmatmul.bf16.vlgmr.msrb.gmra.mxu3 %v8496_v42  ;;  %v6338_v30 = vld [vmem:[#allocation5 + $0x870] sm:$0xf]  ;;  %v6243_v35 = vor.u32 %v7903_v29, %v6242_v28  ;;  %v8011_v28 = vld [vmem:[#allocation5 + $0xb18] sm:$0xf0] }
  0x5d   :  { %4180 = vmatpush.bf16.msra.mxu3 %v6399_v34  ;;  %v6147_v34 = vor.u32 %v7879_v27, %v6146_v25  ;;  %v6339_v40 = vor.u32 %v7927_v31, %v6338_v30  ;;  %v6674_v27 = vld [vmem:[#allocation5 + $0xb10] sm:$0xf]  ;;  %v7951_v14 = vld [vmem:[#allocation5 + $0x938] sm:$0xf0] }
  0x5e   :  { %4142 = vmatpush.bf16.msra.mxu0 %v6099_v43  ;;  %v6230_v43 = vld [vmem:[#allocation5 + $0x798] sm:$0xf]  ;;  %v6770_v31 = vld [vmem:[#allocation5 + $0xbd0] sm:$0xf]  ;;  %v6675_v36 = vor.u32 %v8011_v28, %v6674_v27 }
  0x5f   :  { %4155 = vmatpush.bf16.msra.mxu1 %v6195_v45  ;;  %v7900_v45 = vld [vmem:[#allocation5 + $0x7a0] sm:$0xf0] }
  0x60   :  { %4168 = vmatpush.bf16.msra.mxu2 %v6291_v46  ;;  %v6326_v46 = vld [vmem:[#allocation5 + $0x858] sm:$0xf]  ;;  %v6231_v54 = vor.u32 %v7900_v45, %v6230_v43  ;;  %v7984_v45 = vld [vmem:[#allocation5 + $0xa40] sm:$0xf0] }
  0x61   :  { %4181 = vmatpush.bf16.msra.mxu3 %v6387_v50  ;;  %v7849_v50 = vld [vmem:[#allocation5 + $0x608] sm:$0xf0] }
  0x62   :  { %4143 = vmatpush.bf16.msra.mxu0 %v6087_v56  ;;  %v7897_v56 = vld [vmem:[#allocation5 + $0x788] sm:$0xf0]  ;;  %v6027_v1 = vor.u32 %v7849_v50, %v6026_v48  ;;  %v6758_v48 = vld [vmem:[#allocation5 + $0xbb8] sm:$0xf]  ;;  %v6471_v50 = vor.u32 %v7960_v39, %v6470_v37  ;;  %v7972_v37 = vld [vmem:[#allocation5 + $0x9e0] sm:$0xf0] }
  0x63   :  { %4156 = vmatpush.bf16.msra.mxu1 %v6183_v57  ;;  %v97_v57 = vld [vmem:[#allocation2 + $0x20] sm:$0xff]  ;;  %v6219_v7 = vor.u32 %v7897_v56, %v6218_v55  ;;  %v6614_v39 = vld [vmem:[#allocation5 + $0xa98] sm:$0xf] }
  0x64   :  { %4169 = vmatpush.bf16.msra.mxu2 %v6279_v58  ;;  %v6327_v58 = vor.u32 %v7924_v47, %v6326_v46  ;;  %v902_v11 = vunpack.c.h.b16 %v97_v57  ;;  %v6662_v46 = vld [vmem:[#allocation5 + $0xaf8] sm:$0xf]  ;;  %v8008_v47 = vld [vmem:[#allocation5 + $0xb00] sm:$0xf0]  ;;  %v6554_v55 = vld [vmem:[#allocation5 + $0xa20] sm:$0xf] }
  0x65   :  { %4182 = vmatpush.bf16.msra.mxu3 %v6375_v62  ;;  %v6494_v62 = vld [vmem:[#allocation5 + $0x9a8] sm:$0xf] }
  0x66   :  { %4144 = vmatpush.bf16.msra.mxu0 %v6075_v4  ;;  %v8014_v4 = vld [vmem:[#allocation5 + $0xb30] sm:$0xf0]  ;;  %v6495_v13 = vor.u32 %v7966_v63, %v6494_v62  ;;  %v8508_v30 = vpack.c.b16 %v902_v11, %v902_v11 }
  0x67   :  { %4157 = vmatpush.bf16.msra.mxu1 %v6171_v5  ;;  %v901_v5 = vunpack.c.l.b16 %v97_v57  ;;  %v7981_v57 = vld [vmem:[#allocation5 + $0xa28] sm:$0xf0] }
  0x68   :  { %4170 = vmatpush.bf16.msra.mxu2 %v6267_v6  ;;  %v6123_v6 = vor.u32 %v7873_v52, %v6122_v51  ;;  %v6663_v52 = vor.u32 %v8008_v47, %v6662_v46  ;;  %v6555_v63 = vor.u32 %v7981_v57, %v6554_v55  ;;  %v6410_v46 = vld [vmem:[#allocation5 + $0x900] sm:$0xf]  ;;  %v99_v55 = vld [vmem:[#allocation2 + $0x30] sm:$0xff] }
  0x69   :  { %4183 = vmatpush.bf16.msra.mxu3 %v6363_v10  ;;  %v903_v10 = vunpack.c.l.b16 %v98_v61  ;;  %v8504_v25 = vpack.c.b16 %v901_v5, %v901_v5  ;;  %v8029_v61 = vld [vmem:[#allocation5 + $0xba8] sm:$0xf0]  ;;  %v7978_v5 = vld [vmem:[#allocation5 + $0xa10] sm:$0xf0]  ;;  %v6698_v57 = vld [vmem:[#allocation5 + $0xb40] sm:$0xf] }
  0x6a   :  { %4145 = vmatpush.bf16.msra.mxu0 %v6063_v16  ;;  %v6687_v16 = vor.u32 %v8014_v4, %v6686_v3  ;;  %v6542_v3 = vld [vmem:[#allocation5 + $0xa08] sm:$0xf]  ;;  %v6747_v4 = vor.u32 %v8029_v61, %v6746_v60  ;;  %v8062_v61 = vld [vmem:[#allocation5 + $0xcb0] sm:$0xf0] }
  0x6b   :  { %4158 = vmatpush.bf16.msra.mxu1 %v6159_v17  ;;  %v6482_v17 = vld [vmem:[#allocation5 + $0x990] sm:$0xf]  ;;  %v8506_v29 = vpack.c.b16 %v903_v10, %v903_v10  ;;  %v6543_v11 = vor.u32 %v7978_v5, %v6542_v3  ;;  %v6878_v60 = vld [vmem:[#allocation5 + $0xca8] sm:$0xf]  ;;  %v905_v3 = vunpack.c.l.b16 %v99_v55 }
  0x6c   :  { %4171 = vmatpush.bf16.msra.mxu2 %v6255_v21  ;;  %v7963_v21 = vld [vmem:[#allocation5 + $0x998] sm:$0xf0] }
  0x6d   :  { %4184 = vmatpush.bf16.msra.mxu3 %v6351_v26  ;;  %v7987_v26 = vld [vmem:[#allocation5 + $0xa58] sm:$0xf0] }
  0x6e   :  { %4146 = vmatpush.bf16.msra.mxu0 %v6051_v32  ;;  %v8035_v32 = vld [vmem:[#allocation5 + $0xbd8] sm:$0xf0] }
  0x6f   :  { %4159 = vmatpush.bf16.msra.mxu1 %v6147_v34  ;;  %v6483_v34 = vor.u32 %v7963_v21, %v6482_v17  ;;  %v6771_v43 = vor.u32 %v8035_v32, %v6770_v31  ;;  %v7975_v17 = vld [vmem:[#allocation5 + $0x9f8] sm:$0xf0]  ;;  %v6626_v21 = vld [vmem:[#allocation5 + $0xab0] sm:$0xf]  ;;  %v6422_v32 = vld [vmem:[#allocation5 + $0x918] sm:$0xf] }
  0x70   :  { %4172 = vmatpush.bf16.msra.mxu2 %v6243_v35  ;;  %v6579_v35 = vor.u32 %v7987_v26, %v6578_v23  ;;  %v7999_v23 = vld [vmem:[#allocation5 + $0xab8] sm:$0xf0] }
  0x71   :  { %4185 = vmatpush.bf16.msra.mxu3 %v6339_v40  ;;  %v6566_v40 = vld [vmem:[#allocation5 + $0xa38] sm:$0xf]  ;;  %v8023_v26 = vld [vmem:[#allocation5 + $0xb78] sm:$0xf0]  ;;  %v6627_v31 = vor.u32 %v7999_v23, %v6626_v21  ;;  %v8516_v23 = vpack.c.b16 %v905_v3, %v905_v3  ;;  %v6830_v3 = vld [vmem:[#allocation5 + $0xc48] sm:$0xf] }
  0x72   :  { %4147 = vmatpush.bf16.msra.mxu0 %v6039_v49  ;;  %v8032_v49 = vld [vmem:[#allocation5 + $0xbc0] sm:$0xf0]  ;;  %v6567_v51 = vor.u32 %v7984_v45, %v6566_v40 }
  0x73   :  { %4160 = vmatpush.bf16.msra.mxu1 %v6135_v53  ;;  %v6458_v53 = vld [vmem:[#allocation5 + $0x960] sm:$0xf]  ;;  %v6759_v56 = vor.u32 %v8032_v49, %v6758_v48  ;;  %v7996_v40 = vld [vmem:[#allocation5 + $0xaa0] sm:$0xf0]  ;;  %v7945_v48 = vld [vmem:[#allocation5 + $0x908] sm:$0xf0] }
  0x74   :  { %4173 = vmatpush.bf16.msra.mxu2 %v6231_v54  ;;  %v7957_v54 = vld [vmem:[#allocation5 + $0x968] sm:$0xf0]  ;;  %v8020_v45 = vld [vmem:[#allocation5 + $0xb60] sm:$0xf0]  ;;  %v6506_v49 = vld [vmem:[#allocation5 + $0x9c0] sm:$0xf] }
  0x75   :  { %4186 = vmatpush.bf16.msra.mxu3 %v6327_v58  ;;  %v6650_v58 = vld [vmem:[#allocation5 + $0xae0] sm:$0xf]  ;;  %v6459_v62 = vor.u32 %v7957_v54, %v6458_v53  ;;  %v7993_v54 = vld [vmem:[#allocation5 + $0xa88] sm:$0xf0] }
  0x76   :  { %4148 = vmatpush.bf16.msra.mxu0 %v6027_v1  ;;  %v6651_v0 = vor.u32 %v8005_v59, %v6650_v58  ;;  %v6446_v1 = vld [vmem:[#allocation5 + $0x948] sm:$0xf]  ;;  %v6602_v53 = vld [vmem:[#allocation5 + $0xa80] sm:$0xf]  ;;  %v8017_v58 = vld [vmem:[#allocation5 + $0xb48] sm:$0xf0] }
  0x77   :  { %4161 = vmatpush.bf16.msra.mxu1 %v6123_v6  ;;  %v6638_v6 = vld [vmem:[#allocation5 + $0xac8] sm:$0xf]  ;;  %v6447_v10 = vor.u32 %v7954_v2, %v6446_v1  ;;  %v100_v59 = vld [vmem:[#allocation2 + $0x38] sm:$0xff]  ;;  %v8110_v2 = vld [vmem:[#allocation5 + $0xe30] sm:$0xf0]  ;;  %v6603_v5 = vor.u32 %v7993_v54, %v6602_v53 }
  0x78   :  { %4174 = vmatpush.bf16.msra.mxu2 %v6219_v7  ;;  %v8002_v7 = vld [vmem:[#allocation5 + $0xad0] sm:$0xf0]  ;;  %v7070_v1 = vld [vmem:[#allocation5 + $0xe28] sm:$0xf] }
  0x79   :  { %4187 = vmatpush.bf16.msra.mxu3 %v6315_v12  ;;  %4149 = vmatmul.bf16.vlgmr.msra.gmra.mxu0 %v8504_v25  ;;  %v6639_v12 = vor.u32 %v8002_v7, %v6638_v6  ;;  %v7166_v6 = vld [vmem:[#allocation5 + $0xee8] sm:$0xf]  ;;  %v8134_v7 = vld [vmem:[#allocation5 + $0xef0] sm:$0xf0] }
  0x7a   :  { %4193 = vmatpush.bf16.msrb.mxu0 %v6495_v13  ;;  %4162 = vmatmul.bf16.vlgmr.msra.gmra.mxu1 %v8508_v30  ;;  %v6434_v13 = vld [vmem:[#allocation5 + $0x930] sm:$0xf]  ;;  %v7167_v21 = vor.u32 %v8134_v7, %v7166_v6  ;;  %v8074_v7 = vld [vmem:[#allocation5 + $0xd10] sm:$0xf0] }
  0x7b   :  { %4206 = vmatpush.bf16.msrb.mxu1 %v6591_v15  ;;  %4175 = vmatmul.bf16.vlgmr.msra.gmra.mxu2 %v8506_v29  ;;  %v6530_v15 = vld [vmem:[#allocation5 + $0x9f0] sm:$0xf]  ;;  %v6435_v27 = vor.u32 %v7951_v14, %v6434_v13  ;;  %v7071_v14 = vor.u32 %v8110_v2, %v7070_v1 }
  0x7c   :  { %4219 = vmatpush.bf16.msrb.mxu2 %v6687_v16  ;;  %4188 = vmatmul.bf16.vlgmr.msra.gmra.mxu3 %v8510_v33  ;;  %v6735_v16 = vor.u32 %v8026_v9, %v6734_v8  ;;  %v6531_v28 = vor.u32 %v7975_v17, %v6530_v15  ;;  %v907_v8 = vunpack.c.l.b16 %v100_v59  ;;  %v906_v9 = vunpack.c.h.b16 %v99_v55  ;;  %v6866_v15 = vld [vmem:[#allocation5 + $0xc90] sm:$0xf]  ;;  %v6842_v55 = vld [vmem:[#allocation5 + $0xc60] sm:$0xf] }
  0x7d   :  { %4232 = vmatpush.bf16.msrb.mxu3 %v6783_v24  ;;  %v6722_v24 = vld [vmem:[#allocation5 + $0xb70] sm:$0xf] }
  0x7e   :  { %4194 = vmatpush.bf16.msrb.mxu0 %v6483_v34  ;;  %v7948_v34 = vld [vmem:[#allocation5 + $0x920] sm:$0xf0]  ;;  %v6962_v17 = vld [vmem:[#allocation5 + $0xd50] sm:$0xf] }
  0x7f   :  { %4207 = vmatpush.bf16.msrb.mxu1 %v6579_v35  ;;  %v6518_v35 = vld [vmem:[#allocation5 + $0x9d8] sm:$0xf]  ;;  %v6423_v47 = vor.u32 %v7948_v34, %v6422_v32  ;;  %v7154_v32 = vld [vmem:[#allocation5 + $0xed0] sm:$0xf]  ;;  %v8131_v34 = vld [vmem:[#allocation5 + $0xed8] sm:$0xf0] }
  0x80   :  { %4220 = vmatpush.bf16.msrb.mxu2 %v6675_v36  ;;  %v6723_v36 = vor.u32 %v8023_v26, %v6722_v24  ;;  %v8083_v24 = vld [vmem:[#allocation5 + $0xd58] sm:$0xf0]  ;;  %v7058_v26 = vld [vmem:[#allocation5 + $0xe10] sm:$0xf] }
  0x81   :  { %4233 = vmatpush.bf16.msrb.mxu3 %v6771_v43  ;;  %v6710_v43 = vld [vmem:[#allocation5 + $0xb58] sm:$0xf] }
  0x82   :  { %4195 = vmatpush.bf16.msrb.mxu0 %v6471_v50  ;;  %v7969_v50 = vld [vmem:[#allocation5 + $0x9c8] sm:$0xf0] }
  0x83   :  { %4208 = vmatpush.bf16.msrb.mxu1 %v6567_v51  ;;  %v6519_v51 = vor.u32 %v7972_v37, %v6518_v35  ;;  %v6963_v37 = vor.u32 %v8083_v24, %v6962_v17  ;;  %v6914_v17 = vld [vmem:[#allocation5 + $0xcf0] sm:$0xf]  ;;  %v8071_v24 = vld [vmem:[#allocation5 + $0xcf8] sm:$0xf0] }
  0x84   :  { %4221 = vmatpush.bf16.msrb.mxu2 %v6663_v52  ;;  %v6615_v52 = vor.u32 %v7996_v40, %v6614_v39  ;;  %v6854_v40 = vld [vmem:[#allocation5 + $0xc78] sm:$0xf] }
  0x85   :  { %4234 = vmatpush.bf16.msrb.mxu3 %v6759_v56  ;;  %v6711_v56 = vor.u32 %v8020_v45, %v6710_v43  ;;  %v8056_v43 = vld [vmem:[#allocation5 + $0xc80] sm:$0xf0]  ;;  %v6950_v45 = vld [vmem:[#allocation5 + $0xd38] sm:$0xf] }
  0x86   :  { %4196 = vmatpush.bf16.msrb.mxu0 %v6459_v62  ;;  %v6974_v62 = vld [vmem:[#allocation5 + $0xd68] sm:$0xf] }
  0x87   :  { %4209 = vmatpush.bf16.msrb.mxu1 %v6555_v63  ;;  %v6411_v63 = vor.u32 %v7945_v48, %v6410_v46  ;;  %v7155_v46 = vor.u32 %v8131_v34, %v7154_v32  ;;  %v7046_v48 = vld [vmem:[#allocation5 + $0xdf8] sm:$0xf]  ;;  %v7106_v32 = vld [vmem:[#allocation5 + $0xe70] sm:$0xf]  ;;  %v8119_v34 = vld [vmem:[#allocation5 + $0xe78] sm:$0xf0] }
  0x88   :  { %4222 = vmatpush.bf16.msrb.mxu2 %v6651_v0  ;;  %v8086_v0 = vld [vmem:[#allocation5 + $0xd70] sm:$0xf0] }
  0x89   :  { %4235 = vmatpush.bf16.msrb.mxu3 %v6747_v4  ;;  %v6507_v4 = vor.u32 %v7969_v50, %v6506_v49  ;;  %v6975_v13 = vor.u32 %v8086_v0, %v6974_v62  ;;  %v8104_v49 = vld [vmem:[#allocation5 + $0xe00] sm:$0xf0]  ;;  %v7142_v50 = vld [vmem:[#allocation5 + $0xeb8] sm:$0xf]  ;;  %v7130_v62 = vld [vmem:[#allocation5 + $0xea0] sm:$0xf] }
  0x8a   :  { %4197 = vmatpush.bf16.msrb.mxu0 %v6447_v10  ;;  %v6699_v10 = vor.u32 %v8017_v58, %v6698_v57  ;;  %v7047_v54 = vor.u32 %v8104_v49, %v7046_v48  ;;  %v6938_v57 = vld [vmem:[#allocation5 + $0xd20] sm:$0xf]  ;;  %v6998_v48 = vld [vmem:[#allocation5 + $0xd98] sm:$0xf]  ;;  %v8092_v49 = vld [vmem:[#allocation5 + $0xda0] sm:$0xf0] }
  0x8b   :  { %4210 = vmatpush.bf16.msrb.mxu1 %v6543_v11  ;;  %v6879_v11 = vor.u32 %v8062_v61, %v6878_v60  ;;  %v7034_v60 = vld [vmem:[#allocation5 + $0xde0] sm:$0xf]  ;;  %v8101_v61 = vld [vmem:[#allocation5 + $0xde8] sm:$0xf0] }
  0x8c   :  { %4223 = vmatpush.bf16.msrb.mxu2 %v6639_v12  ;;  %v908_v12 = vunpack.c.h.b16 %v100_v59  ;;  %v8077_v59 = vld [vmem:[#allocation5 + $0xd28] sm:$0xf0]  ;;  %v7035_v2 = vor.u32 %v8101_v61, %v7034_v60  ;;  %v101_v61 = vld [vmem:[#allocation2 + $0x40] sm:$0xff] }
  0x8d   :  { %4236 = vmatpush.bf16.msrb.mxu3 %v6735_v16  ;;  %v8059_v16 = vld [vmem:[#allocation5 + $0xc98] sm:$0xf0]  ;;  %v6939_v1 = vor.u32 %v8077_v59, %v6938_v57  ;;  %v6986_v59 = vld [vmem:[#allocation5 + $0xd80] sm:$0xf]  ;;  %v8089_v60 = vld [vmem:[#allocation5 + $0xd88] sm:$0xf0] }
  0x8e   :  { %4198 = vmatpush.bf16.msrb.mxu0 %v6435_v27  ;;  %v8107_v27 = vld [vmem:[#allocation5 + $0xe18] sm:$0xf0]  ;;  %v8522_v35 = vpack.c.b16 %v908_v12, %v908_v12 }
  0x8f   :  { %4211 = vmatpush.bf16.msrb.mxu1 %v6531_v28  ;;  %v8518_v28 = vpack.c.b16 %v907_v8, %v907_v8  ;;  %v7059_v39 = vor.u32 %v8107_v27, %v7058_v26  ;;  %v7022_v8 = vld [vmem:[#allocation5 + $0xdc8] sm:$0xf]  ;;  %v7010_v26 = vld [vmem:[#allocation5 + $0xdb0] sm:$0xf]  ;;  %v8095_v27 = vld [vmem:[#allocation5 + $0xdb8] sm:$0xf0] }
  0x90   :  { %4224 = vmatpush.bf16.msrb.mxu2 %v6627_v31  ;;  %v8520_v31 = vpack.c.b16 %v906_v9, %v906_v9  ;;  %v8098_v9 = vld [vmem:[#allocation5 + $0xdd0] sm:$0xf0] }
  0x91   :  { %4237 = vmatpush.bf16.msrb.mxu3 %v6723_v36  ;;  %v6867_v36 = vor.u32 %v8059_v16, %v6866_v15  ;;  %v6818_v15 = vld [vmem:[#allocation5 + $0xc30] sm:$0xf]  ;;  %v8047_v16 = vld [vmem:[#allocation5 + $0xc38] sm:$0xf0] }
  0x92   :  { %4199 = vmatpush.bf16.msrb.mxu0 %v6423_v47  ;;  %v8080_v47 = vld [vmem:[#allocation5 + $0xd40] sm:$0xf0] }
  0x93   :  { %4212 = vmatpush.bf16.msrb.mxu1 %v6519_v51  ;;  %v8128_v51 = vld [vmem:[#allocation5 + $0xec0] sm:$0xf0]  ;;  %v6951_v53 = vor.u32 %v8080_v47, %v6950_v45  ;;  %v6902_v45 = vld [vmem:[#allocation5 + $0xcd8] sm:$0xf] }
  0x94   :  { %4225 = vmatpush.bf16.msrb.mxu2 %v6615_v52  ;;  %v6855_v52 = vor.u32 %v8056_v43, %v6854_v40  ;;  %v7143_v58 = vor.u32 %v8128_v51, %v7142_v50  ;;  %v6806_v40 = vld [vmem:[#allocation5 + $0xc18] sm:$0xf]  ;;  %v8044_v43 = vld [vmem:[#allocation5 + $0xc20] sm:$0xf0] }
  0x95   :  { %4238 = vmatpush.bf16.msrb.mxu3 %v6711_v56  ;;  %v8053_v56 = vld [vmem:[#allocation5 + $0xc68] sm:$0xf0]  ;;  %v8068_v47 = vld [vmem:[#allocation5 + $0xce0] sm:$0xf0]  ;;  %v7094_v50 = vld [vmem:[#allocation5 + $0xe58] sm:$0xf] }
  0x96   :  { %4200 = vmatpush.bf16.msrb.mxu0 %v6411_v63  ;;  %v8125_v63 = vld [vmem:[#allocation5 + $0xea8] sm:$0xf0]  ;;  %v6843_v0 = vor.u32 %v8053_v56, %v6842_v55  ;;  %v8116_v51 = vld [vmem:[#allocation5 + $0xe60] sm:$0xf0]  ;;  %v6890_v55 = vld [vmem:[#allocation5 + $0xcc0] sm:$0xf]  ;;  %v6903_v57 = vor.u32 %v8068_v47, %v6902_v45 }
  0x97   :  { %4213 = vmatpush.bf16.msrb.mxu1 %v6507_v4  ;;  %v8050_v4 = vld [vmem:[#allocation5 + $0xc50] sm:$0xf0]  ;;  %v7131_v6 = vor.u32 %v8125_v63, %v7130_v62  ;;  %v8065_v56 = vld [vmem:[#allocation5 + $0xcc8] sm:$0xf0]  ;;  %v7095_v62 = vor.u32 %v8116_v51, %v7094_v50  ;;  %v7082_v63 = vld [vmem:[#allocation5 + $0xe40] sm:$0xf] }
  0x98   :  { %4226 = vmatpush.bf16.msrb.mxu2 %v6603_v5  ;;  %v6926_v5 = vld [vmem:[#allocation5 + $0xd08] sm:$0xf]  ;;  %v6831_v12 = vor.u32 %v8050_v4, %v6830_v3  ;;  %v8158_v3 = vld [vmem:[#allocation5 + $0xfb0] sm:$0xf0]  ;;  %v7538_v47 = vld [vmem:[#allocation5 + $0x11d0] sm:$0xf] }
  0x99   :  { %4239 = vmatpush.bf16.msrb.mxu3 %v6699_v10  ;;  %4201 = vmatmul.bf16.vlgmr.msrb.gmra.mxu0 %v8516_v23  ;;  %v7118_v10 = vld [vmem:[#allocation5 + $0xe88] sm:$0xf] }
  0x9a   :  { %4245 = vmatpush.bf16.msra.mxu0 %v6879_v11  ;;  %4214 = vmatmul.bf16.vlgmr.msrb.gmra.mxu1 %v8520_v31  ;;  %v8122_v11 = vld [vmem:[#allocation5 + $0xe90] sm:$0xf0]  ;;  %v7358_v4 = vld [vmem:[#allocation5 + $0x1068] sm:$0xf] }
  0x9b   :  { %4258 = vmatpush.bf16.msra.mxu1 %v6975_v13  ;;  %4227 = vmatmul.bf16.vlgmr.msrb.gmra.mxu2 %v8518_v28  ;;  %v6927_v13 = vor.u32 %v8074_v7, %v6926_v5  ;;  %v7454_v7 = vld [vmem:[#allocation5 + $0x1128] sm:$0xf] }
  0x9c   :  { %4271 = vmatpush.bf16.msra.mxu2 %v7071_v14  ;;  %4240 = vmatmul.bf16.vlgmr.msrb.gmra.mxu3 %v8522_v35  ;;  %v7023_v14 = vor.u32 %v8098_v9, %v7022_v8  ;;  %v8206_v8 = vld [vmem:[#allocation5 + $0x1130] sm:$0xf0]  ;;  %v909_v9 = vunpack.c.l.b16 %v101_v61 }
  0x9d   :  { %4284 = vmatpush.bf16.msra.mxu3 %v7167_v21  ;;  %v7119_v21 = vor.u32 %v8122_v11, %v7118_v10  ;;  %v6891_v10 = vor.u32 %v8065_v56, %v6890_v55  ;;  %v6987_v11 = vor.u32 %v8089_v60, %v6986_v59  ;;  %v7334_v55 = vld [vmem:[#allocation5 + $0x1038] sm:$0xf]  ;;  %v8200_v59 = vld [vmem:[#allocation5 + $0x1100] sm:$0xf0] }
  0x9e   :  { %4246 = vmatpush.bf16.msra.mxu0 %v6867_v36  ;;  %v6819_v36 = vor.u32 %v8047_v16, %v6818_v15  ;;  %v910_v15 = vunpack.c.h.b16 %v101_v61  ;;  %v7526_v60 = vld [vmem:[#allocation5 + $0x11b8] sm:$0xf]  ;;  %v8224_v61 = vld [vmem:[#allocation5 + $0x11c0] sm:$0xf0] }
  0x9f   :  { %4259 = vmatpush.bf16.msra.mxu1 %v6963_v37  ;;  %v6915_v37 = vor.u32 %v8071_v24, %v6914_v17 }
  0xa0   :  { %4272 = vmatpush.bf16.msra.mxu2 %v7059_v39  ;;  %v7011_v39 = vor.u32 %v8095_v27, %v7010_v26  ;;  %v7455_v26 = vor.u32 %v8206_v8, %v7454_v7  ;;  %v7250_v27 = vld [vmem:[#allocation5 + $0xf90] sm:$0xf]  ;;  %v8197_v7 = vld [vmem:[#allocation5 + $0x10e8] sm:$0xf0]  ;;  %v7514_v8 = vld [vmem:[#allocation5 + $0x11a0] sm:$0xf] }
  0xa1   :  { %4285 = vmatpush.bf16.msra.mxu3 %v7155_v46  ;;  %v7107_v46 = vor.u32 %v8119_v34, %v7106_v32  ;;  %v8155_v32 = vld [vmem:[#allocation5 + $0xf98] sm:$0xf0]  ;;  %v7346_v34 = vld [vmem:[#allocation5 + $0x1050] sm:$0xf] }
  0xa2   :  { %4247 = vmatpush.bf16.msra.mxu0 %v6855_v52  ;;  %v6794_v52 = vld [vmem:[#allocation5 + $0xc00] sm:$0xf]  ;;  %v7251_v50 = vor.u32 %v8155_v32, %v7250_v27  ;;  %v7502_v27 = vld [vmem:[#allocation5 + $0x1188] sm:$0xf]  ;;  %v8218_v32 = vld [vmem:[#allocation5 + $0x1190] sm:$0xf0] }
  0xa3   :  { %4260 = vmatpush.bf16.msra.mxu1 %v6951_v53  ;;  %v6807_v53 = vor.u32 %v8044_v43, %v6806_v40  ;;  %v7442_v40 = vld [vmem:[#allocation5 + $0x1110] sm:$0xf]  ;;  %v8203_v43 = vld [vmem:[#allocation5 + $0x1118] sm:$0xf0] }
  0xa4   :  { %4273 = vmatpush.bf16.msra.mxu2 %v7047_v54  ;;  %v8041_v54 = vld [vmem:[#allocation5 + $0xc08] sm:$0xf0] }
  0xa5   :  { %4286 = vmatpush.bf16.msra.mxu3 %v7143_v58  ;;  %v6999_v58 = vor.u32 %v8092_v49, %v6998_v48  ;;  %v6795_v5 = vor.u32 %v8041_v54, %v6794_v52  ;;  %v8227_v48 = vld [vmem:[#allocation5 + $0x11d8] sm:$0xf0]  ;;  %v7443_v52 = vor.u32 %v8203_v43, %v7442_v40  ;;  %v8152_v54 = vld [vmem:[#allocation5 + $0xf80] sm:$0xf0] }
  0xa6   :  { %4248 = vmatpush.bf16.msra.mxu0 %v6843_v0  ;;  %v8113_v0 = vld [vmem:[#allocation5 + $0xe48] sm:$0xf0]  ;;  %v7539_v56 = vor.u32 %v8227_v48, %v7538_v47  ;;  %v8143_v43 = vld [vmem:[#allocation5 + $0xf38] sm:$0xf0]  ;;  %v7298_v47 = vld [vmem:[#allocation5 + $0xff0] sm:$0xf] }
  0xa7   :  { %4261 = vmatpush.bf16.msra.mxu1 %v6939_v1  ;;  %v102_v1 = vld [vmem:[#allocation2 + $0x48] sm:$0xff]  ;;  %v7083_v16 = vor.u32 %v8113_v0, %v7082_v63 }
  0xa8   :  { %4274 = vmatpush.bf16.msra.mxu2 %v7035_v2  ;;  %v7262_v2 = vld [vmem:[#allocation5 + $0xfa8] sm:$0xf] }
  0xa9   :  { %4287 = vmatpush.bf16.msra.mxu3 %v7131_v6  ;;  %v8182_v6 = vld [vmem:[#allocation5 + $0x1070] sm:$0xf0]  ;;  %v7263_v17 = vor.u32 %v8158_v3, %v7262_v2  ;;  %v8149_v2 = vld [vmem:[#allocation5 + $0xf68] sm:$0xf0]  ;;  %v7322_v3 = vld [vmem:[#allocation5 + $0x1020] sm:$0xf] }
  0xaa   :  { %4249 = vmatpush.bf16.msra.mxu0 %v6831_v12  ;;  %v7550_v12 = vld [vmem:[#allocation5 + $0x11e8] sm:$0xf]  ;;  %v7359_v24 = vor.u32 %v8182_v6, %v7358_v4  ;;  %v7527_v4 = vor.u32 %v8224_v61, %v7526_v60  ;;  %v7418_v6 = vld [vmem:[#allocation5 + $0x10e0] sm:$0xf]  ;;  %v7190_v60 = vld [vmem:[#allocation5 + $0xf18] sm:$0xf] }
  0xab   :  { %4262 = vmatpush.bf16.msra.mxu1 %v6927_v13  ;;  %v8230_v13 = vld [vmem:[#allocation5 + $0x11f0] sm:$0xf0]  ;;  %v8140_v61 = vld [vmem:[#allocation5 + $0xf20] sm:$0xf0] }
  0xac   :  { %4275 = vmatpush.bf16.msra.mxu2 %v7023_v14  ;;  %v911_v14 = vunpack.c.l.b16 %v102_v1 }
  0xad   :  { %4288 = vmatpush.bf16.msra.mxu3 %v7119_v21  ;;  %v912_v21 = vunpack.c.h.b16 %v102_v1  ;;  %v7226_v1 = vld [vmem:[#allocation5 + $0xf60] sm:$0xf] }
  0xae   :  { %4250 = vmatpush.bf16.msra.mxu0 %v6819_v36  ;;  %v7551_v36 = vor.u32 %v8230_v13, %v7550_v12  ;;  %v8530_v45 = vpack.c.b16 %v911_v14, %v911_v14  ;;  %v7419_v13 = vor.u32 %v8197_v7, %v7418_v6  ;;  %v8146_v14 = vld [vmem:[#allocation5 + $0xf50] sm:$0xf0]  ;;  %v8212_v6 = vld [vmem:[#allocation5 + $0x1160] sm:$0xf0]  ;;  %v7178_v7 = vld [vmem:[#allocation5 + $0xf00] sm:$0xf] }
  0xaf   :  { %4263 = vmatpush.bf16.msra.mxu1 %v6915_v37  ;;  %v8528_v37 = vpack.c.b16 %v909_v9, %v909_v9  ;;  %v8534_v49 = vpack.c.b16 %v912_v21, %v912_v21  ;;  %v8221_v9 = vld [vmem:[#allocation5 + $0x11a8] sm:$0xf0]  ;;  %v7406_v21 = vld [vmem:[#allocation5 + $0x10c8] sm:$0xf] }
  0xb0   :  { %4276 = vmatpush.bf16.msra.mxu2 %v7011_v39  ;;  %v8179_v39 = vld [vmem:[#allocation5 + $0x1058] sm:$0xf0] }
  0xb1   :  { %4289 = vmatpush.bf16.msra.mxu3 %v7107_v46  ;;  %v8532_v46 = vpack.c.b16 %v910_v15, %v910_v15  ;;  %v7347_v51 = vor.u32 %v8179_v39, %v7346_v34  ;;  %v7310_v15 = vld [vmem:[#allocation5 + $0x1008] sm:$0xf] }
  0xb2   :  { %4251 = vmatpush.bf16.msra.mxu0 %v6807_v53  ;;  %v7238_v53 = vld [vmem:[#allocation5 + $0xf78] sm:$0xf] }
  0xb3   :  { %4264 = vmatpush.bf16.msra.mxu1 %v6903_v57  ;;  %v8176_v57 = vld [vmem:[#allocation5 + $0x1040] sm:$0xf0] }
  0xb4   :  { %4277 = vmatpush.bf16.msra.mxu2 %v6999_v58  ;;  %v7430_v58 = vld [vmem:[#allocation5 + $0x10f8] sm:$0xf]  ;;  %v7335_v63 = vor.u32 %v8176_v57, %v7334_v55  ;;  %v8215_v55 = vld [vmem:[#allocation5 + $0x1178] sm:$0xf0] }
  0xb5   :  { %4290 = vmatpush.bf16.msra.mxu3 %v7095_v62  ;;  %v7239_v62 = vor.u32 %v8152_v54, %v7238_v53  ;;  %v7431_v0 = vor.u32 %v8200_v59, %v7430_v58  ;;  %v8191_v53 = vld [vmem:[#allocation5 + $0x10b8] sm:$0xf0]  ;;  %v7490_v54 = vld [vmem:[#allocation5 + $0x1170] sm:$0xf] }
  0xb6   :  { %4252 = vmatpush.bf16.msra.mxu0 %v6795_v5  ;;  %v8173_v5 = vld [vmem:[#allocation5 + $0x1028] sm:$0xf0] }
  0xb7   :  { %4265 = vmatpush.bf16.msra.mxu1 %v6891_v10  ;;  %v7227_v10 = vor.u32 %v8149_v2, %v7226_v1  ;;  %v7323_v12 = vor.u32 %v8173_v5, %v7322_v3  ;;  %v7491_v1 = vor.u32 %v8215_v55, %v7490_v54  ;;  %v8164_v2 = vld [vmem:[#allocation5 + $0xfe0] sm:$0xf0]  ;;  %v7382_v3 = vld [vmem:[#allocation5 + $0x1098] sm:$0xf] }
  0xb8   :  { %4278 = vmatpush.bf16.msra.mxu2 %v6987_v11  ;;  %v7214_v11 = vld [vmem:[#allocation5 + $0xf48] sm:$0xf]  ;;  %v7478_v5 = vld [vmem:[#allocation5 + $0x1158] sm:$0xf] }
  0xb9   :  { %4291 = vmatpush.bf16.msra.mxu3 %v7083_v16  ;;  %4253 = vmatmul.bf16.vlgmr.msra.gmra.mxu0 %v8528_v37  ;;  %v8170_v16 = vld [vmem:[#allocation5 + $0x1010] sm:$0xf0]  ;;  %v7215_v34 = vor.u32 %v8146_v14, %v7214_v11  ;;  %v4046_v57 = vpop.f32.mrf.mxu0  ;;  %v7274_v11 = vld [vmem:[#allocation5 + $0xfc0] sm:$0xf] }
  0xba   :  { %4297 = vmatpush.bf16.msrb.mxu0 %v7263_v17  ;;  %4266 = vmatmul.bf16.vlgmr.msra.gmra.mxu1 %v8532_v46  ;;  %v7515_v17 = vor.u32 %v8221_v9, %v7514_v8  ;;  %v7311_v39 = vor.u32 %v8170_v16, %v7310_v15  ;;  %v7191_v9 = vor.u32 %v8140_v61, %v7190_v60  ;;  %v7370_v15 = vld [vmem:[#allocation5 + $0x1080] sm:$0xf]  ;;  %v8185_v16 = vld [vmem:[#allocation5 + $0x1088] sm:$0xf0] }
  0xbb   :  { %4310 = vmatpush.bf16.msrb.mxu1 %v7359_v24  ;;  %4279 = vmatmul.bf16.vlgmr.msra.gmra.mxu2 %v8530_v45  ;;  %v8194_v24 = vld [vmem:[#allocation5 + $0x10d0] sm:$0xf0] }
  0xbc   :  { %4323 = vmatpush.bf16.msrb.mxu2 %v7455_v26  ;;  %4292 = vmatmul.bf16.vlgmr.msra.gmra.mxu3 %v8534_v49  ;;  %v873_v26 = vld [vmem:[#allocation7] sm:$0x7]  ;;  %v7407_v40 = vor.u32 %v8194_v24, %v7406_v21  ;;  %v7479_v24 = vor.u32 %v8212_v6, %v7478_v5  ;;  %v7698_v5 = vld [vmem:[#allocation5 + $0x154] sm:$0xf] }
  0xbd   :  { %4336 = vmatpush.bf16.msrb.mxu3 %v7551_v36  ;;  %v7202_v36 = vld [vmem:[#allocation5 + $0xf30] sm:$0xf]  ;;  %v875_v48 = vperm.slane %v873_v26, 0  ;;  %v7466_v26 = vld [vmem:[#allocation5 + $0x1140] sm:$0xf] }
  0xbe   :  { %4298 = vmatpush.bf16.msrb.mxu0 %v7251_v50  ;;  %v7503_v50 = vor.u32 %v8218_v32, %v7502_v27  ;;  %v4072_v21 = vpop.f32.mrf.mxu2  ;;  %v8209_v27 = vld [vmem:[#allocation5 + $0x1148] sm:$0xf0]  ;;  %v104_v32 = vld [vmem:[#allocation2 + $0x58] sm:$0xff] }
  0xbf   :  { %4311 = vmatpush.bf16.msrb.mxu1 %v7347_v51  ;;  %v8167_v51 = vld [vmem:[#allocation5 + $0xff8] sm:$0xf0] }
  0xc0   :  { %4324 = vmatpush.bf16.msrb.mxu2 %v7443_v52  ;;  %v7394_v52 = vld [vmem:[#allocation5 + $0x10b0] sm:$0xf]  ;;  %v7299_v58 = vor.u32 %v8167_v51, %v7298_v47  ;;  %v5536_v51 = vld [vmem:[#allocation5 + $0x234] sm:$0xf0] }
  0xc1   :  { %4337 = vmatpush.bf16.msrb.mxu3 %v7539_v56  ;;  %v7203_v56 = vor.u32 %v8143_v43, %v7202_v36  ;;  %v7395_v59 = vor.u32 %v8191_v53, %v7394_v52  ;;  %v4085_v36 = vpop.f32.mrf.mxu3  ;;  %v7701_v43 = vld [vmem:[#allocation5 + $0x16c] sm:$0xf]  ;;  %v4048_v54 = vpop.f32.mrf.mxu0 }
  0xc2   :  { %4299 = vmatpush.bf16.msrb.mxu0 %v7239_v62  ;;  %v7286_v62 = vld [vmem:[#allocation5 + $0xfd8] sm:$0xf]  ;;  %v7668_v54 = vld [vmem:[#allocation5 + $0x64] sm:$0xf] }
  0xc3   :  { %4312 = vmatpush.bf16.msrb.mxu1 %v7335_v63  ;;  %v4047_v63 = vadd.f32 %v4046_v57, %v875_v48  ;;  %v5440_v48 = vld [vmem:[#allocation5 + $0x174] sm:$0xf0]  ;;  %v7749_v57 = vld [vmem:[#allocation5 + $0x2ec] sm:$0xf] }
  0xc4   :  { %4325 = vmatpush.bf16.msrb.mxu2 %v7431_v0  ;;  %v4059_v0 = vpop.f32.mrf.mxu1 }
  0xc5   :  { %4338 = vmatpush.bf16.msrb.mxu3 %v7527_v4  ;;  %v8188_v4 = vld [vmem:[#allocation5 + $0x10a0] sm:$0xf0]  ;;  %v4060_v8 = vadd.f32 %v4059_v0, %v4047_v63  ;;  %v916_v0 = vunpack.c.h.b16 %v104_v32 }
  0xc6   :  { %4300 = vmatpush.bf16.msrb.mxu0 %v7227_v10  ;;  %v8137_v10 = vld [vmem:[#allocation5 + $0xf08] sm:$0xf0]  ;;  %v7383_v14 = vor.u32 %v8188_v4, %v7382_v3  ;;  %v7674_v3 = vld [vmem:[#allocation5 + $0x94] sm:$0xf]  ;;  %v5332_v4 = vld [vmem:[#allocation5 + $0x9c] sm:$0xf0] }
  0xc7   :  { %4313 = vmatpush.bf16.msrb.mxu1 %v7323_v12  ;;  %v8161_v12 = vld [vmem:[#allocation5 + $0xfc8] sm:$0xf0]  ;;  %v7179_v47 = vor.u32 %v8137_v10, %v7178_v7  ;;  %v5524_v10 = vld [vmem:[#allocation5 + $0x21c] sm:$0xf0] }
  0xc8   :  { %4326 = vmatpush.bf16.msrb.mxu2 %v7419_v13  ;;  %v7287_v13 = vor.u32 %v8164_v2, %v7286_v62  ;;  %v7275_v55 = vor.u32 %v8161_v12, %v7274_v11  ;;  %v7467_v62 = vor.u32 %v8209_v27, %v7466_v26  ;;  %v7671_v27 = vld [vmem:[#allocation5 + $0x7c] sm:$0xf] }
  0xc9   :  { %4339 = vmatpush.bf16.msrb.mxu3 %v7515_v17  ;;  %v103_v17 = vld [vmem:[#allocation2 + $0x50] sm:$0xff] }
  0xca   :  { %4301 = vmatpush.bf16.msrb.mxu0 %v7215_v34  ;;  %v4073_v34 = vadd.f32 %v4072_v21, %v4060_v8  ;;  %v913_v52 = vunpack.c.l.b16 %v103_v17  ;;  %v914_v60 = vunpack.c.h.b16 %v103_v17  ;;  %v5428_v8 = vld [vmem:[#allocation5 + $0x15c] sm:$0xf0]  ;;  %v5335_v17 = vor.u32 %v7674_v3, %v5332_v4  ;;  %v4087_v21 = vpop.f32.mrf.mxu3  ;;  %v7665_v3 = vld [vmem:[#allocation5 + $0x4c] sm:$0xf]  ;;  %v5296_v4 = vld [vmem:[#allocation5 + $0x54] sm:$0xf0] }
  0xcb   :  { %4314 = vmatpush.bf16.msrb.mxu1 %v7311_v39  ;;  %v7677_v39 = vld [vmem:[#allocation5 + $0xac] sm:$0xf] }
  0xcc   :  { %4327 = vmatpush.bf16.msrb.mxu2 %v7407_v40  ;;  %v5344_v40 = vld [vmem:[#allocation5 + $0xb4] sm:$0xf0]  ;;  %v8540_v53 = vadd.f32 %v4085_v36, %v4073_v34  ;;  %v4061_v61 = vpop.f32.mrf.mxu1  ;;  %v8542_v7 = vpack.c.b16 %v913_v52, %v913_v52  ;;  %v8546_v12 = vpack.c.b16 %v914_v60, %v914_v60  ;;  %v7695_v34 = vld [vmem:[#allocation5 + $0x13c] sm:$0xf]  ;;  %v5500_v60 = vld [vmem:[#allocation5 + $0x1ec] sm:$0xf0] }
  0xcd   :  { %4340 = vmatpush.bf16.msrb.mxu3 %v7503_v50  ;;  %v7725_v50 = vld [vmem:[#allocation5 + $0x22c] sm:$0xf]  ;;  %v5347_v63 = vor.u32 %v7677_v39, %v5344_v40  ;;  %v5416_v39 = vld [vmem:[#allocation5 + $0x144] sm:$0xf0]  ;;  %v7719_v40 = vld [vmem:[#allocation5 + $0x1fc] sm:$0xf] }
  0xce   :  { %4302 = vmatpush.bf16.msrb.mxu0 %v7203_v56  ;;  %v7371_v56 = vor.u32 %v8185_v16, %v7370_v15  ;;  %v5539_v2 = vor.u32 %v7725_v50, %v5536_v51  ;;  %v4074_v15 = vpop.f32.mrf.mxu2  ;;  %v8548_v16 = vpack.c.b16 %v916_v0, %v916_v0  ;;  %v5419_v51 = vor.u32 %v7695_v34, %v5416_v39  ;;  %v7740_v61 = vld [vmem:[#allocation5 + $0x2a4] sm:$0xf]  ;;  %v5284_v34 = vld [vmem:[#allocation5 + $0x3c] sm:$0xf0] }
  0xcf   :  { %4315 = vmatpush.bf16.msrb.mxu1 %v7299_v58  ;;  %v5632_v58 = vld [vmem:[#allocation5 + $0x2f4] sm:$0xf0]  ;;  %v7737_v15 = vld [vmem:[#allocation5 + $0x28c] sm:$0xf] }
  0xd0   :  { %4328 = vmatpush.bf16.msrb.mxu2 %v7395_v59  ;;  %v915_v59 = vunpack.c.l.b16 %v104_v32  ;;  %v5635_v6 = vor.u32 %v7749_v57, %v5632_v58  ;;  %v5320_v32 = vld [vmem:[#allocation5 + $0x84] sm:$0xf0]  ;;  %v5404_v58 = vld [vmem:[#allocation5 + $0x12c] sm:$0xf0] }
  0xd1   :  { %4341 = vmatpush.bf16.msrb.mxu3 %v7491_v1  ;;  %v5443_v1 = vor.u32 %v7701_v43, %v5440_v48  ;;  %v5512_v43 = vld [vmem:[#allocation5 + $0x204] sm:$0xf0]  ;;  %v5323_v50 = vor.u32 %v7671_v27, %v5320_v32  ;;  %v7662_v32 = vld [vmem:[#allocation5 + $0x34] sm:$0xf] }
  0xd2   :  { %4303 = vmatpush.bf16.msrb.mxu0 %v7191_v9  ;;  %v7722_v9 = vld [vmem:[#allocation5 + $0x214] sm:$0xf]  ;;  %v8544_v11 = vpack.c.b16 %v915_v59, %v915_v59  ;;  %v5608_v48 = vld [vmem:[#allocation5 + $0x2c4] sm:$0xf0]  ;;  %v5515_v52 = vor.u32 %v7719_v40, %v5512_v43  ;;  %v7716_v59 = vld [vmem:[#allocation5 + $0x1e4] sm:$0xf] }
  0xd3   :  { %4316 = vmatpush.bf16.msrb.mxu1 %v7287_v13  ;;  %v7746_v13 = vld [vmem:[#allocation5 + $0x2d4] sm:$0xf]  ;;  %v5527_v26 = vor.u32 %v7722_v9, %v5524_v10  ;;  %v5392_v10 = vld [vmem:[#allocation5 + $0x114] sm:$0xf0]  ;;  %v5380_v40 = vld [vmem:[#allocation5 + $0xfc] sm:$0xf0] }
  0xd4   :  { %4329 = vmatpush.bf16.msrb.mxu2 %v7383_v14  ;;  %v5620_v14 = vld [vmem:[#allocation5 + $0x2dc] sm:$0xf0]  ;;  %v7710_v43 = vld [vmem:[#allocation5 + $0x1b4] sm:$0xf] }
  0xd5   :  { %4342 = vmatpush.bf16.msrb.mxu3 %v7479_v24  ;;  %v5431_v24 = vor.u32 %v7698_v5, %v5428_v8  ;;  %v5623_v36 = vor.u32 %v7746_v13, %v5620_v14  ;;  %v7689_v5 = vld [vmem:[#allocation5 + $0x10c] sm:$0xf]  ;;  %v5488_v14 = vld [vmem:[#allocation5 + $0x1d4] sm:$0xf0] }
  0xd6   :  { %4304 = vmatpush.bf16.msrb.mxu0 %v7179_v47  ;;  %v7743_v47 = vld [vmem:[#allocation5 + $0x2bc] sm:$0xf]  ;;  %v4098_v0 = vpop.f32.mrf.mxu0  ;;  %v7713_v13 = vld [vmem:[#allocation5 + $0x1cc] sm:$0xf] }
  0xd7   :  { %4317 = vmatpush.bf16.msrb.mxu1 %v7275_v55  ;;  %v5308_v55 = vld [vmem:[#allocation5 + $0x6c] sm:$0xf0]  ;;  %v5611_v57 = vor.u32 %v7743_v47, %v5608_v48  ;;  %v4111_v8 = vpop.f32.mrf.mxu1  ;;  %v5491_v27 = vor.u32 %v7713_v13, %v5488_v14  ;;  %v5476_v47 = vld [vmem:[#allocation5 + $0x1bc] sm:$0xf0]  ;;  %v7680_v13 = vld [vmem:[#allocation5 + $0xc4] sm:$0xf] }
  0xd8   :  { %4330 = vmatpush.bf16.msrb.mxu2 %v7371_v56  ;;  %v7692_v56 = vld [vmem:[#allocation5 + $0x124] sm:$0xf]  ;;  %v5356_v14 = vld [vmem:[#allocation5 + $0xcc] sm:$0xf0] }
  0xd9   :  { %4343 = vmatpush.bf16.msrb.mxu3 %v7467_v62  ;;  %4305 = vmatmul.bf16.vlgmr.msrb.gmra.mxu0 %v8542_v7  ;;  %v5596_v62 = vld [vmem:[#allocation5 + $0x2ac] sm:$0xf0] }
  0xda   :  { %4349 = vmatpush.bf16.msra.mxu0 %v5347_v63  ;;  %4318 = vmatmul.bf16.vlgmr.msrb.gmra.mxu1 %v8546_v12  ;;  %v5311_v63 = vor.u32 %v7668_v54, %v5308_v55  ;;  %v5599_v9 = vor.u32 %v7740_v61, %v5596_v62  ;;  %v5287_v54 = vor.u32 %v7662_v32, %v5284_v34  ;;  %v7683_v61 = vld [vmem:[#allocation5 + $0xdc] sm:$0xf]  ;;  %v7773_v34 = vld [vmem:[#allocation5 + $0x3ac] sm:$0xf] }
  0xdb   :  { %4362 = vmatpush.bf16.msra.mxu1 %v5443_v1  ;;  %4331 = vmatmul.bf16.vlgmr.msrb.gmra.mxu2 %v8544_v11  ;;  %v5407_v1 = vor.u32 %v7692_v56, %v5404_v58  ;;  %v5479_v58 = vor.u32 %v7710_v43, %v5476_v47  ;;  %v7821_v43 = vld [vmem:[#allocation5 + $0x52c] sm:$0xf]  ;;  %v5920_v47 = vld [vmem:[#allocation5 + $0x534] sm:$0xf0] }
  0xdc   :  { %4375 = vmatpush.bf16.msra.mxu2 %v5539_v2  ;;  %4344 = vmatmul.bf16.vlgmr.msrb.gmra.mxu3 %v8548_v16  ;;  %v5503_v2 = vor.u32 %v7716_v59, %v5500_v60  ;;  %v7659_v59 = vld [vmem:[#allocation5 + $0x1c] sm:$0xf]  ;;  %v5272_v60 = vld [vmem:[#allocation5 + $0x24] sm:$0xf0] }
  0xdd   :  { %4388 = vmatpush.bf16.msra.mxu3 %v5635_v6  ;;  %v4099_v6 = vadd.f32 %v4098_v0, %v8540_v53  ;;  %v5368_v0 = vld [vmem:[#allocation5 + $0xe4] sm:$0xf0] }
  0xde   :  { %4350 = vmatpush.bf16.msra.mxu0 %v5335_v17  ;;  %v5584_v17 = vld [vmem:[#allocation5 + $0x294] sm:$0xf0]  ;;  %v4124_v39 = vpop.f32.mrf.mxu2  ;;  %v4100_v56 = vpop.f32.mrf.mxu0 }
  0xdf   :  { %4363 = vmatpush.bf16.msra.mxu1 %v5431_v24  ;;  %v4112_v21 = vadd.f32 %v4111_v8, %v4099_v6  ;;  %v5299_v24 = vor.u32 %v7665_v3, %v5296_v4  ;;  %v5587_v53 = vor.u32 %v7737_v15, %v5584_v17  ;;  %v4113_v62 = vpop.f32.mrf.mxu1  ;;  %v7731_v3 = vld [vmem:[#allocation5 + $0x25c] sm:$0xf]  ;;  %v5560_v4 = vld [vmem:[#allocation5 + $0x264] sm:$0xf0]  ;;  %v7656_v6 = vld [vmem:[#allocation5 + $0x4] sm:$0xf] }
  0xe0   :  { %4376 = vmatpush.bf16.msra.mxu2 %v5527_v26  ;;  %v5395_v26 = vor.u32 %v7689_v5, %v5392_v10  ;;  %v5275_v5 = vor.u32 %v7659_v59, %v5272_v60  ;;  %v5260_v8 = vld [vmem:[#allocation5 + $0xc] sm:$0xf0]  ;;  %v7704_v15 = vld [vmem:[#allocation5 + $0x184] sm:$0xf]  ;;  %v7770_v59 = vld [vmem:[#allocation5 + $0x394] sm:$0xf] }
  0xe1   :  { %4389 = vmatpush.bf16.msra.mxu3 %v5623_v36  ;;  %v7686_v36 = vld [vmem:[#allocation5 + $0xf4] sm:$0xf]  ;;  %v4125_v48 = vadd.f32 %v4124_v39, %v4112_v21  ;;  %v5563_v21 = vor.u32 %v7731_v3, %v5560_v4  ;;  %v7797_v39 = vld [vmem:[#allocation5 + $0x46c] sm:$0xf]  ;;  %v5716_v60 = vld [vmem:[#allocation5 + $0x39c] sm:$0xf0] }
  0xe2   :  { %4351 = vmatpush.bf16.msra.mxu0 %v5323_v50  ;;  %v4137_v50 = vpop.f32.mrf.mxu3  ;;  %v6004_v3 = vld [vmem:[#allocation5 + $0x5dc] sm:$0xf0]  ;;  %v5719_v4 = vor.u32 %v7770_v59, %v5716_v60  ;;  %v7761_v59 = vld [vmem:[#allocation5 + $0x34c] sm:$0xf]  ;;  %v5680_v60 = vld [vmem:[#allocation5 + $0x354] sm:$0xf0] }
  0xe3   :  { %4364 = vmatpush.bf16.msra.mxu1 %v5419_v51  ;;  %v7734_v51 = vld [vmem:[#allocation5 + $0x274] sm:$0xf]  ;;  %v8555_v55 = vadd.f32 %v4137_v50, %v4125_v48  ;;  %v5359_v48 = vor.u32 %v7680_v13, %v5356_v14  ;;  %v5800_v14 = vld [vmem:[#allocation5 + $0x444] sm:$0xf0] }
  0xe4   :  { %4377 = vmatpush.bf16.msra.mxu2 %v5515_v52  ;;  %v5572_v52 = vld [vmem:[#allocation5 + $0x27c] sm:$0xf0] }
  0xe5   :  { %4390 = vmatpush.bf16.msra.mxu3 %v5611_v57  ;;  %v5383_v57 = vor.u32 %v7686_v36, %v5380_v40  ;;  %v5728_v36 = vld [vmem:[#allocation5 + $0x3b4] sm:$0xf0] }
  0xe6   :  { %4352 = vmatpush.bf16.msra.mxu0 %v5311_v63  ;;  %v5575_v63 = vor.u32 %v7734_v51, %v5572_v52  ;;  %v4126_v17 = vpop.f32.mrf.mxu2  ;;  %v5824_v40 = vld [vmem:[#allocation5 + $0x474] sm:$0xf0]  ;;  %v7845_v51 = vld [vmem:[#allocation5 + $0x5ec] sm:$0xf]  ;;  %v5731_v56 = vor.u32 %v7773_v34, %v5728_v36  ;;  %v7764_v34 = vld [vmem:[#allocation5 + $0x364] sm:$0xf] }
  0xe7   :  { %4365 = vmatpush.bf16.msra.mxu1 %v5407_v1  ;;  %v7707_v1 = vld [vmem:[#allocation5 + $0x19c] sm:$0xf]  ;;  %v6016_v52 = vld [vmem:[#allocation5 + $0x5f4] sm:$0xf0]  ;;  %v5896_v17 = vld [vmem:[#allocation5 + $0x504] sm:$0xf0] }
  0xe8   :  { %4378 = vmatpush.bf16.msra.mxu2 %v5503_v2  ;;  %v5464_v2 = vld [vmem:[#allocation5 + $0x1a4] sm:$0xf0]  ;;  %v6019_v62 = vor.u32 %v7845_v51, %v6016_v52  ;;  %v5692_v36 = vld [vmem:[#allocation5 + $0x36c] sm:$0xf0] }
  0xe9   :  { %4391 = vmatpush.bf16.msra.mxu3 %v5599_v9  ;;  %v5371_v9 = vor.u32 %v7683_v61, %v5368_v0  ;;  %v5467_v10 = vor.u32 %v7707_v1, %v5464_v2  ;;  %v7794_v61 = vld [vmem:[#allocation5 + $0x454] sm:$0xf]  ;;  %v5908_v1 = vld [vmem:[#allocation5 + $0x51c] sm:$0xf0]  ;;  %v5980_v51 = vld [vmem:[#allocation5 + $0x5ac] sm:$0xf0] }
  0xea   :  { %4353 = vmatpush.bf16.msra.mxu0 %v5299_v24  ;;  %v5452_v24 = vld [vmem:[#allocation5 + $0x18c] sm:$0xf0]  ;;  %v4139_v32 = vpop.f32.mrf.mxu3  ;;  %v7818_v0 = vld [vmem:[#allocation5 + $0x514] sm:$0xf] }
  0xeb   :  { %4366 = vmatpush.bf16.msra.mxu1 %v5395_v26  ;;  %v7728_v26 = vld [vmem:[#allocation5 + $0x244] sm:$0xf]  ;;  %v5455_v50 = vor.u32 %v7704_v15, %v5452_v24  ;;  %v7842_v2 = vld [vmem:[#allocation5 + $0x5d4] sm:$0xf]  ;;  %v7815_v15 = vld [vmem:[#allocation5 + $0x4fc] sm:$0xf] }
  0xec   :  { %4379 = vmatpush.bf16.msra.mxu2 %v5491_v27  ;;  %v5548_v27 = vld [vmem:[#allocation5 + $0x24c] sm:$0xf0]  ;;  %v6007_v13 = vor.u32 %v7842_v2, %v6004_v3  ;;  %v5992_v24 = vld [vmem:[#allocation5 + $0x5c4] sm:$0xf0]  ;;  %v5899_v32 = vor.u32 %v7815_v15, %v5896_v17  ;;  %v5872_v2 = vld [vmem:[#allocation5 + $0x4d4] sm:$0xf0] }
  0xed   :  { %4392 = vmatpush.bf16.msra.mxu3 %v5587_v53  ;;  %v5263_v53 = vor.u32 %v7656_v6, %v5260_v8  ;;  %v5911_v6 = vor.u32 %v7818_v0, %v5908_v1  ;;  %v7767_v8 = vld [vmem:[#allocation5 + $0x37c] sm:$0xf]  ;;  %v5776_v0 = vld [vmem:[#allocation5 + $0x414] sm:$0xf0]  ;;  %v7809_v1 = vld [vmem:[#allocation5 + $0x4cc] sm:$0xf] }
  0xee   :  { %4354 = vmatpush.bf16.msra.mxu0 %v5287_v54  ;;  %v5551_v54 = vor.u32 %v7728_v26, %v5548_v27  ;;  %v7833_v3 = vld [vmem:[#allocation5 + $0x58c] sm:$0xf]  ;;  %v5764_v15 = vld [vmem:[#allocation5 + $0x3fc] sm:$0xf0]  ;;  %v7806_v17 = vld [vmem:[#allocation5 + $0x4b4] sm:$0xf] }
  0xef   :  { %4367 = vmatpush.bf16.msra.mxu1 %v5383_v57  ;;  %v5827_v57 = vor.u32 %v7797_v39, %v5824_v40  ;;  %v7788_v39 = vld [vmem:[#allocation5 + $0x424] sm:$0xf]  ;;  %v5788_v40 = vld [vmem:[#allocation5 + $0x42c] sm:$0xf0] }
  0xf0   :  { %4380 = vmatpush.bf16.msra.mxu2 %v5479_v58  ;;  %v5923_v58 = vor.u32 %v7821_v43, %v5920_v47  ;;  %v7812_v43 = vld [vmem:[#allocation5 + $0x4e4] sm:$0xf]  ;;  %v5884_v47 = vld [vmem:[#allocation5 + $0x4ec] sm:$0xf0] }
  0xf1   :  { %4393 = vmatpush.bf16.msra.mxu3 %v5575_v63  ;;  %v5812_v63 = vld [vmem:[#allocation5 + $0x45c] sm:$0xf0] }
  0xf2   :  { %4355 = vmatpush.bf16.msra.mxu0 %v5275_v5  ;;  %v5815_v5 = vor.u32 %v7794_v61, %v5812_v63  ;;  %v7785_v61 = vld [vmem:[#allocation5 + $0x40c] sm:$0xf] }
  0xf3   :  { %4368 = vmatpush.bf16.msra.mxu1 %v5371_v9  ;;  %v5704_v9 = vld [vmem:[#allocation5 + $0x384] sm:$0xf0] }
  0xf4   :  { %4381 = vmatpush.bf16.msra.mxu2 %v5467_v10  ;;  %v7791_v10 = vld [vmem:[#allocation5 + $0x43c] sm:$0xf]  ;;  %v5707_v26 = vor.u32 %v7767_v8, %v5704_v9  ;;  %v7758_v8 = vld [vmem:[#allocation5 + $0x334] sm:$0xf]  ;;  %v5668_v9 = vld [vmem:[#allocation5 + $0x33c] sm:$0xf0] }
  0xf5   :  { %4394 = vmatpush.bf16.msra.mxu3 %v5563_v21  ;;  %v7839_v21 = vld [vmem:[#allocation5 + $0x5bc] sm:$0xf]  ;;  %v5803_v27 = vor.u32 %v7791_v10, %v5800_v14  ;;  %v7782_v10 = vld [vmem:[#allocation5 + $0x3f4] sm:$0xf] }
  0xf6   :  { %4356 = vmatpush.bf16.msra.mxu0 %v5263_v53  ;;  %v5995_v53 = vor.u32 %v7839_v21, %v5992_v24  ;;  %v5860_v21 = vld [vmem:[#allocation5 + $0x4bc] sm:$0xf0] }
  0xf7   :  { %4369 = vmatpush.bf16.msra.mxu1 %v5359_v48  ;;  %v4150_v48 = vpop.f32.mrf.mxu0 }
  0xf8   :  { %4382 = vmatpush.bf16.msra.mxu2 %v5455_v50  ;;  %v7836_v50 = vld [vmem:[#allocation5 + $0x5a4] sm:$0xf]  ;;  %v4151_v52 = vadd.f32 %v4150_v48, %v8555_v55  ;;  %v5779_v55 = vor.u32 %v7785_v61, %v5776_v0  ;;  %v5656_v48 = vld [vmem:[#allocation5 + $0x324] sm:$0xf0]  ;;  %v5644_v61 = vld [vmem:[#allocation5 + $0x30c] sm:$0xf0] }
  0xf9   :  { %4395 = vmatpush.bf16.msra.mxu3 %v5551_v54  ;;  %4357 = vmatmul.bf16.vlgmr.msra.gmra.mxu0 %v8482_v19  ;;  %v5695_v54 = vor.u32 %v7764_v34, %v5692_v36  ;;  %v5671_v36 = vor.u32 %v7758_v8, %v5668_v9  ;;  %v7776_v0 = vld [vmem:[#allocation5 + $0x3c4] sm:$0xf]  ;;  %v7869_v8 = vld [vmem:[#allocation5 + $0x6ac] sm:$0xf]  ;;  %v6112_v9 = vld [vmem:[#allocation5 + $0x6b4] sm:$0xf0] }
  0xfa   :  { %4401 = vmatpush.bf16.msrb.mxu0 %v5731_v56  ;;  %4370 = vmatmul.bf16.vlgmr.msra.gmra.mxu1 %v8486_v22  ;;  %v4163_v56 = vpop.f32.mrf.mxu1 }
  0xfb   :  { %4414 = vmatpush.bf16.msrb.mxu1 %v5827_v57  ;;  %4383 = vmatmul.bf16.vlgmr.msra.gmra.mxu2 %v8480_v18  ;;  %v5791_v57 = vor.u32 %v7788_v39, %v5788_v40  ;;  %v4164_v63 = vadd.f32 %v4163_v56, %v4151_v52  ;;  %v5767_v40 = vor.u32 %v7782_v10, %v5764_v15  ;;  %v5752_v52 = vld [vmem:[#allocation5 + $0x3e4] sm:$0xf0]  ;;  %v7893_v10 = vld [vmem:[#allocation5 + $0x76c] sm:$0xf]  ;;  %v6208_v15 = vld [vmem:[#allocation5 + $0x774] sm:$0xf0] }
  0xfc   :  { %4427 = vmatpush.bf16.msrb.mxu2 %v5923_v58  ;;  %4396 = vmatmul.bf16.vlgmr.msra.gmra.mxu3 %v8484_v20  ;;  %v5887_v58 = vor.u32 %v7812_v43, %v5884_v47  ;;  %v5863_v43 = vor.u32 %v7806_v17, %v5860_v21  ;;  %v7755_v47 = vld [vmem:[#allocation5 + $0x31c] sm:$0xf]  ;;  %v5848_v56 = vld [vmem:[#allocation5 + $0x4a4] sm:$0xf0]  ;;  %v7917_v17 = vld [vmem:[#allocation5 + $0x82c] sm:$0xf] }
  0xfd   :  { %4440 = vmatpush.bf16.msrb.mxu3 %v6019_v62  ;;  %v5983_v62 = vor.u32 %v7836_v50, %v5980_v51  ;;  %v7779_v50 = vld [vmem:[#allocation5 + $0x3dc] sm:$0xf]  ;;  %v6304_v21 = vld [vmem:[#allocation5 + $0x834] sm:$0xf0] }
  0xfe   :  { %4402 = vmatpush.bf16.msrb.mxu0 %v5719_v4  ;;  %v5968_v4 = vld [vmem:[#allocation5 + $0x594] sm:$0xf0]  ;;  %v4176_v14 = vpop.f32.mrf.mxu2 }
  0xff   :  { %4415 = vmatpush.bf16.msrb.mxu1 %v5815_v5  ;;  %v5683_v5 = vor.u32 %v7761_v59, %v5680_v60  ;;  %v4177_v24 = vadd.f32 %v4176_v14, %v4164_v63  ;;  %v4152_v34 = vpop.f32.mrf.mxu0  ;;  %v5659_v59 = vor.u32 %v7755_v47, %v5656_v48  ;;  %v7752_v60 = vld [vmem:[#allocation5 + $0x304] sm:$0xf]  ;;  %v6100_v47 = vld [vmem:[#allocation5 + $0x69c] sm:$0xf0]  ;;  %v7890_v48 = vld [vmem:[#allocation5 + $0x754] sm:$0xf] }
 0x100   :  { %4428 = vmatpush.bf16.msrb.mxu2 %v5911_v6  ;;  %v5875_v6 = vor.u32 %v7809_v1, %v5872_v2  ;;  %v5740_v1 = vld [vmem:[#allocation5 + $0x3cc] sm:$0xf0]  ;;  %v7800_v2 = vld [vmem:[#allocation5 + $0x484] sm:$0xf]  ;;  %v5647_v14 = vor.u32 %v7752_v60, %v5644_v61  ;;  %v7863_v61 = vld [vmem:[#allocation5 + $0x67c] sm:$0xf] }
 0x101   :  { %4441 = vmatpush.bf16.msrb.mxu3 %v6007_v13  ;;  %v5971_v13 = vor.u32 %v7833_v3, %v5968_v4  ;;  %v5836_v4 = vld [vmem:[#allocation5 + $0x48c] sm:$0xf0] }
 0x102   :  { %4403 = vmatpush.bf16.msrb.mxu0 %v5707_v26  ;;  %v4189_v26 = vpop.f32.mrf.mxu3  ;;  %v4165_v39 = vpop.f32.mrf.mxu1 }
 0x103   :  { %4416 = vmatpush.bf16.msrb.mxu1 %v5803_v27  ;;  %v7830_v27 = vld [vmem:[#allocation5 + $0x574] sm:$0xf]  ;;  %v6211_v39 = vor.u32 %v7893_v10, %v6208_v15  ;;  %v6076_v10 = vld [vmem:[#allocation5 + $0x66c] sm:$0xf0] }
 0x104   :  { %4429 = vmatpush.bf16.msrb.mxu2 %v5899_v32  ;;  %v5956_v32 = vld [vmem:[#allocation5 + $0x57c] sm:$0xf0]  ;;  %v6172_v15 = vld [vmem:[#allocation5 + $0x72c] sm:$0xf0] }
 0x105   :  { %4442 = vmatpush.bf16.msrb.mxu3 %v5995_v53  ;;  %v8562_v53 = vadd.f32 %v4189_v26, %v4177_v24  ;;  %v5959_v51 = vor.u32 %v7830_v27, %v5956_v32  ;;  %v5743_v24 = vor.u32 %v7776_v0, %v5740_v1  ;;  %v5839_v26 = vor.u32 %v7800_v2, %v5836_v4  ;;  %v7941_v27 = vld [vmem:[#allocation5 + $0x8ec] sm:$0xf]  ;;  %v6400_v32 = vld [vmem:[#allocation5 + $0x8f4] sm:$0xf0]  ;;  %v6184_v1 = vld [vmem:[#allocation5 + $0x744] sm:$0xf0] }
 0x106   :  { %4404 = vmatpush.bf16.msrb.mxu0 %v5695_v54  ;;  %v7803_v54 = vld [vmem:[#allocation5 + $0x49c] sm:$0xf] }
 0x107   :  { %4417 = vmatpush.bf16.msrb.mxu1 %v5791_v57  ;;  %v7827_v57 = vld [vmem:[#allocation5 + $0x55c] sm:$0xf]  ;;  %v5851_v63 = vor.u32 %v7803_v54, %v5848_v56  ;;  %v6292_v54 = vld [vmem:[#allocation5 + $0x81c] sm:$0xf0]  ;;  %v7938_v56 = vld [vmem:[#allocation5 + $0x8d4] sm:$0xf] }
 0x108   :  { %4430 = vmatpush.bf16.msrb.mxu2 %v5887_v58  ;;  %v5944_v58 = vld [vmem:[#allocation5 + $0x564] sm:$0xf0]  ;;  %v7911_v2 = vld [vmem:[#allocation5 + $0x7fc] sm:$0xf] }
 0x109   :  { %4443 = vmatpush.bf16.msrb.mxu3 %v5983_v62  ;;  %v5755_v62 = vor.u32 %v7779_v50, %v5752_v52  ;;  %v5947_v3 = vor.u32 %v7827_v57, %v5944_v58  ;;  %v6403_v50 = vor.u32 %v7941_v27, %v6400_v32  ;;  %v7914_v52 = vld [vmem:[#allocation5 + $0x814] sm:$0xf]  ;;  %v6388_v57 = vld [vmem:[#allocation5 + $0x8dc] sm:$0xf0]  ;;  %v7935_v4 = vld [vmem:[#allocation5 + $0x8bc] sm:$0xf] }
 0x10a   :  { %4405 = vmatpush.bf16.msrb.mxu0 %v5683_v5  ;;  %v7824_v5 = vld [vmem:[#allocation5 + $0x544] sm:$0xf]  ;;  %v6295_v60 = vor.u32 %v7914_v52, %v6292_v54  ;;  %v6391_v0 = vor.u32 %v7938_v56, %v6388_v57  ;;  %v6364_v27 = vld [vmem:[#allocation5 + $0x8ac] sm:$0xf0]  ;;  %v6160_v52 = vld [vmem:[#allocation5 + $0x714] sm:$0xf0] }
 0x10b   :  { %4418 = vmatpush.bf16.msrb.mxu1 %v5779_v55  ;;  %v5932_v55 = vld [vmem:[#allocation5 + $0x54c] sm:$0xf0]  ;;  %v7905_v54 = vld [vmem:[#allocation5 + $0x7cc] sm:$0xf]  ;;  %v6256_v56 = vld [vmem:[#allocation5 + $0x7d4] sm:$0xf0] }
 0x10c   :  { %4431 = vmatpush.bf16.msrb.mxu2 %v5875_v6  ;;  %v4178_v6 = vpop.f32.mrf.mxu2  ;;  %v5935_v34 = vor.u32 %v7824_v5, %v5932_v55  ;;  %v6376_v5 = vld [vmem:[#allocation5 + $0x8c4] sm:$0xf0]  ;;  %v7929_v57 = vld [vmem:[#allocation5 + $0x88c] sm:$0xf] }
 0x10d   :  { %4444 = vmatpush.bf16.msrb.mxu3 %v5971_v13  ;;  %v4191_v13 = vpop.f32.mrf.mxu3 }
 0x10e   :  { %4406 = vmatpush.bf16.msrb.mxu0 %v5671_v36  ;;  %v6115_v36 = vor.u32 %v7869_v8, %v6112_v9  ;;  %v7860_v9 = vld [vmem:[#allocation5 + $0x664] sm:$0xf] }
 0x10f   :  { %4419 = vmatpush.bf16.msrb.mxu1 %v5767_v40  ;;  %v6307_v40 = vor.u32 %v7917_v17, %v6304_v21  ;;  %v7884_v13 = vld [vmem:[#allocation5 + $0x724] sm:$0xf]  ;;  %v6268_v21 = vld [vmem:[#allocation5 + $0x7ec] sm:$0xf0] }
 0x110   :  { %4432 = vmatpush.bf16.msrb.mxu2 %v5863_v43  ;;  %v7866_v43 = vld [vmem:[#allocation5 + $0x694] sm:$0xf]  ;;  %v7908_v17 = vld [vmem:[#allocation5 + $0x7e4] sm:$0xf] }
 0x111   :  { %4445 = vmatpush.bf16.msrb.mxu3 %v5959_v51  ;;  %v6196_v51 = vld [vmem:[#allocation5 + $0x75c] sm:$0xf0]  ;;  %v6103_v58 = vor.u32 %v7866_v43, %v6100_v47  ;;  %v7857_v43 = vld [vmem:[#allocation5 + $0x64c] sm:$0xf]  ;;  %v6064_v47 = vld [vmem:[#allocation5 + $0x654] sm:$0xf0] }
 0x112   :  { %4407 = vmatpush.bf16.msrb.mxu0 %v5659_v59  ;;  %v6199_v59 = vor.u32 %v7890_v48, %v6196_v51  ;;  %v7881_v48 = vld [vmem:[#allocation5 + $0x70c] sm:$0xf] }
 0x113   :  { %4420 = vmatpush.bf16.msrb.mxu1 %v5755_v62  ;;  %v6088_v62 = vld [vmem:[#allocation5 + $0x684] sm:$0xf0] }
 0x114   :  { %4433 = vmatpush.bf16.msrb.mxu2 %v5851_v63  ;;  %v7887_v63 = vld [vmem:[#allocation5 + $0x73c] sm:$0xf]  ;;  %v6091_v55 = vor.u32 %v7863_v61, %v6088_v62  ;;  %v7854_v61 = vld [vmem:[#allocation5 + $0x634] sm:$0xf]  ;;  %v6052_v62 = vld [vmem:[#allocation5 + $0x63c] sm:$0xf0] }
 0x115   :  { %4446 = vmatpush.bf16.msrb.mxu3 %v5947_v3  ;;  %v6280_v3 = vld [vmem:[#allocation5 + $0x804] sm:$0xf0]  ;;  %v6187_v6 = vor.u32 %v7887_v63, %v6184_v1  ;;  %v7878_v63 = vld [vmem:[#allocation5 + $0x6f4] sm:$0xf] }
 0x116   :  { %4408 = vmatpush.bf16.msrb.mxu0 %v5647_v14  ;;  %v6283_v8 = vor.u32 %v7911_v2, %v6280_v3  ;;  %v6379_v14 = vor.u32 %v7935_v4, %v6376_v5  ;;  %v6148_v2 = vld [vmem:[#allocation5 + $0x6fc] sm:$0xf0]  ;;  %v7902_v3 = vld [vmem:[#allocation5 + $0x7b4] sm:$0xf] }
 0x117   :  { %4421 = vmatpush.bf16.msrb.mxu1 %v5743_v24  ;;  %v4202_v24 = vpop.f32.mrf.mxu0  ;;  %v6244_v4 = vld [vmem:[#allocation5 + $0x7bc] sm:$0xf0] }
 0x118   :  { %4434 = vmatpush.bf16.msrb.mxu2 %v5839_v26  ;;  %v7932_v26 = vld [vmem:[#allocation5 + $0x8a4] sm:$0xf]  ;;  %v4203_v32 = vadd.f32 %v4202_v24, %v8562_v53  ;;  %v6163_v53 = vor.u32 %v7881_v48, %v6160_v52  ;;  %v6040_v24 = vld [vmem:[#allocation5 + $0x624] sm:$0xf0]  ;;  %v6028_v48 = vld [vmem:[#allocation5 + $0x60c] sm:$0xf0] }
 0x119   :  { %4447 = vmatpush.bf16.msrb.mxu3 %v5935_v34  ;;  %4409 = vmatmul.bf16.vlgmr.msrb.gmra.mxu0 %v8494_v41  ;;  %v6079_v34 = vor.u32 %v7860_v9, %v6076_v10  ;;  %v6055_v10 = vor.u32 %v7854_v61, %v6052_v62  ;;  %v7872_v52 = vld [vmem:[#allocation5 + $0x6c4] sm:$0xf]  ;;  %v7965_v61 = vld [vmem:[#allocation5 + $0x9ac] sm:$0xf]  ;;  %v6496_v62 = vld [vmem:[#allocation5 + $0x9b4] sm:$0xf0] }
 0x11a   :  { %4453 = vmatpush.bf16.msra.mxu0 %v6115_v36  ;;  %4422 = vmatmul.bf16.vlgmr.msrb.gmra.mxu1 %v8498_v44  ;;  %v4215_v36 = vpop.f32.mrf.mxu1 }
 0x11b   :  { %4466 = vmatpush.bf16.msra.mxu1 %v6211_v39  ;;  %4435 = vmatmul.bf16.vlgmr.msrb.gmra.mxu2 %v8492_v38  ;;  %v6175_v39 = vor.u32 %v7884_v13, %v6172_v15  ;;  %v4216_v51 = vadd.f32 %v4215_v36, %v4203_v32  ;;  %v6151_v15 = vor.u32 %v7878_v63, %v6148_v2  ;;  %v6136_v32 = vld [vmem:[#allocation5 + $0x6e4] sm:$0xf0]  ;;  %v7989_v63 = vld [vmem:[#allocation5 + $0xa6c] sm:$0xf]  ;;  %v6592_v2 = vld [vmem:[#allocation5 + $0xa74] sm:$0xf0] }
 0x11c   :  { %4479 = vmatpush.bf16.msra.mxu2 %v6307_v40  ;;  %4448 = vmatmul.bf16.vlgmr.msrb.gmra.mxu3 %v8496_v42  ;;  %v6271_v40 = vor.u32 %v7908_v17, %v6268_v21  ;;  %v6247_v17 = vor.u32 %v7902_v3, %v6244_v4  ;;  %v7851_v21 = vld [vmem:[#allocation5 + $0x61c] sm:$0xf]  ;;  %v6232_v36 = vld [vmem:[#allocation5 + $0x7a4] sm:$0xf0]  ;;  %v8013_v3 = vld [vmem:[#allocation5 + $0xb2c] sm:$0xf] }
 0x11d   :  { %4492 = vmatpush.bf16.msra.mxu3 %v6403_v50  ;;  %v6367_v50 = vor.u32 %v7932_v26, %v6364_v27  ;;  %v7875_v26 = vld [vmem:[#allocation5 + $0x6dc] sm:$0xf]  ;;  %v6688_v4 = vld [vmem:[#allocation5 + $0xb34] sm:$0xf0] }
 0x11e   :  { %4454 = vmatpush.bf16.msra.mxu0 %v6103_v58  ;;  %v6352_v58 = vld [vmem:[#allocation5 + $0x894] sm:$0xf0]  ;;  %v4228_v1 = vpop.f32.mrf.mxu2 }
 0x11f   :  { %4467 = vmatpush.bf16.msra.mxu1 %v6199_v59  ;;  %v6067_v59 = vor.u32 %v7857_v43, %v6064_v47  ;;  %v4229_v5 = vadd.f32 %v4228_v1, %v4216_v51  ;;  %v4204_v9 = vpop.f32.mrf.mxu0  ;;  %v6043_v43 = vor.u32 %v7851_v21, %v6040_v24  ;;  %v7848_v47 = vld [vmem:[#allocation5 + $0x604] sm:$0xf]  ;;  %v6484_v21 = vld [vmem:[#allocation5 + $0x99c] sm:$0xf0]  ;;  %v7986_v24 = vld [vmem:[#allocation5 + $0xa54] sm:$0xf] }
 0x120   :  { %4480 = vmatpush.bf16.msra.mxu2 %v6295_v60  ;;  %v6259_v60 = vor.u32 %v7905_v54, %v6256_v56  ;;  %v6124_v54 = vld [vmem:[#allocation5 + $0x6cc] sm:$0xf0]  ;;  %v7896_v56 = vld [vmem:[#allocation5 + $0x784] sm:$0xf]  ;;  %v6031_v1 = vor.u32 %v7848_v47, %v6028_v48  ;;  %v7959_v48 = vld [vmem:[#allocation5 + $0x97c] sm:$0xf] }
 0x121   :  { %4493 = vmatpush.bf16.msra.mxu3 %v6391_v0  ;;  %v6355_v0 = vor.u32 %v7929_v57, %v6352_v58  ;;  %v6220_v58 = vld [vmem:[#allocation5 + $0x78c] sm:$0xf0] }
 0x122   :  { %4455 = vmatpush.bf16.msra.mxu0 %v6091_v55  ;;  %v4241_v55 = vpop.f32.mrf.mxu3  ;;  %v4217_v13 = vpop.f32.mrf.mxu1 }
 0x123   :  { %4468 = vmatpush.bf16.msra.mxu1 %v6187_v6  ;;  %v7926_v6 = vld [vmem:[#allocation5 + $0x874] sm:$0xf]  ;;  %v6595_v13 = vor.u32 %v7989_v63, %v6592_v2  ;;  %v6460_v63 = vld [vmem:[#allocation5 + $0x96c] sm:$0xf0] }
 0x124   :  { %4481 = vmatpush.bf16.msra.mxu2 %v6283_v8  ;;  %v6340_v8 = vld [vmem:[#allocation5 + $0x87c] sm:$0xf0]  ;;  %v6556_v2 = vld [vmem:[#allocation5 + $0xa2c] sm:$0xf0] }
 0x125   :  { %4494 = vmatpush.bf16.msra.mxu3 %v6379_v14  ;;  %v8569_v14 = vadd.f32 %v4241_v55, %v4229_v5  ;;  %v6343_v27 = vor.u32 %v7926_v6, %v6340_v8  ;;  %v6127_v5 = vor.u32 %v7872_v52, %v6124_v54  ;;  %v6223_v55 = vor.u32 %v7896_v56, %v6220_v58  ;;  %v8037_v6 = vld [vmem:[#allocation5 + $0xbec] sm:$0xf]  ;;  %v6784_v8 = vld [vmem:[#allocation5 + $0xbf4] sm:$0xf0]  ;;  %v6568_v54 = vld [vmem:[#allocation5 + $0xa44] sm:$0xf0] }
 0x126   :  { %4456 = vmatpush.bf16.msra.mxu0 %v6079_v34  ;;  %v7899_v34 = vld [vmem:[#allocation5 + $0x79c] sm:$0xf] }
 0x127   :  { %4469 = vmatpush.bf16.msra.mxu1 %v6175_v39  ;;  %v7923_v39 = vld [vmem:[#allocation5 + $0x85c] sm:$0xf]  ;;  %v6235_v51 = vor.u32 %v7899_v34, %v6232_v36  ;;  %v6676_v34 = vld [vmem:[#allocation5 + $0xb1c] sm:$0xf0]  ;;  %v8034_v36 = vld [vmem:[#allocation5 + $0xbd4] sm:$0xf] }
 0x128   :  { %4482 = vmatpush.bf16.msra.mxu2 %v6271_v40  ;;  %v6328_v40 = vld [vmem:[#allocation5 + $0x864] sm:$0xf0]  ;;  %v8007_v56 = vld [vmem:[#allocation5 + $0xafc] sm:$0xf] }
 0x129   :  { %4495 = vmatpush.bf16.msra.mxu3 %v6367_v50  ;;  %v6139_v50 = vor.u32 %v7875_v26, %v6136_v32  ;;  %v6331_v57 = vor.u32 %v7923_v39, %v6328_v40  ;;  %v6787_v26 = vor.u32 %v8037_v6, %v6784_v8  ;;  %v8010_v32 = vld [vmem:[#allocation5 + $0xb14] sm:$0xf]  ;;  %v6772_v39 = vld [vmem:[#allocation5 + $0xbdc] sm:$0xf0]  ;;  %v8031_v58 = vld [vmem:[#allocation5 + $0xbbc] sm:$0xf] }
 0x12a   :  { %4457 = vmatpush.bf16.msra.mxu0 %v6067_v59  ;;  %v7920_v59 = vld [vmem:[#allocation5 + $0x844] sm:$0xf]  ;;  %v6679_v47 = vor.u32 %v8010_v32, %v6676_v34  ;;  %v6775_v52 = vor.u32 %v8034_v36, %v6772_v39  ;;  %v6748_v6 = vld [vmem:[#allocation5 + $0xbac] sm:$0xf0]  ;;  %v6544_v32 = vld [vmem:[#allocation5 + $0xa14] sm:$0xf0] }
 0x12b   :  { %4470 = vmatpush.bf16.msra.mxu1 %v6163_v53  ;;  %v6316_v53 = vld [vmem:[#allocation5 + $0x84c] sm:$0xf0]  ;;  %v8001_v34 = vld [vmem:[#allocation5 + $0xacc] sm:$0xf]  ;;  %v6640_v36 = vld [vmem:[#allocation5 + $0xad4] sm:$0xf0] }
 0x12c   :  { %4483 = vmatpush.bf16.msra.mxu2 %v6259_v60  ;;  %v4230_v60 = vpop.f32.mrf.mxu2  ;;  %v6319_v9 = vor.u32 %v7920_v59, %v6316_v53  ;;  %v6760_v59 = vld [vmem:[#allocation5 + $0xbc4] sm:$0xf0]  ;;  %v8025_v39 = vld [vmem:[#allocation5 + $0xb8c] sm:$0xf] }
 0x12d   :  { %4496 = vmatpush.bf16.msra.mxu3 %v6355_v0  ;;  %v4243_v0 = vpop.f32.mrf.mxu3 }
 0x12e   :  { %4458 = vmatpush.bf16.msra.mxu0 %v6055_v10  ;;  %v6499_v10 = vor.u32 %v7965_v61, %v6496_v62  ;;  %v7956_v62 = vld [vmem:[#allocation5 + $0x964] sm:$0xf] }
 0x12f   :  { %4471 = vmatpush.bf16.msra.mxu1 %v6151_v15  ;;  %v6691_v15 = vor.u32 %v8013_v3, %v6688_v4  ;;  %v7980_v0 = vld [vmem:[#allocation5 + $0xa24] sm:$0xf]  ;;  %v6652_v4 = vld [vmem:[#allocation5 + $0xaec] sm:$0xf0] }
 0x130   :  { %4484 = vmatpush.bf16.msra.mxu2 %v6247_v17  ;;  %v7962_v17 = vld [vmem:[#allocation5 + $0x994] sm:$0xf]  ;;  %v8004_v3 = vld [vmem:[#allocation5 + $0xae4] sm:$0xf] }
 0x131   :  { %4497 = vmatpush.bf16.msra.mxu3 %v6343_v27  ;;  %v6580_v27 = vld [vmem:[#allocation5 + $0xa5c] sm:$0xf0]  ;;  %v6487_v40 = vor.u32 %v7962_v17, %v6484_v21  ;;  %v7953_v17 = vld [vmem:[#allocation5 + $0x94c] sm:$0xf]  ;;  %v6448_v21 = vld [vmem:[#allocation5 + $0x954] sm:$0xf0] }
 0x132   :  { %4459 = vmatpush.bf16.msra.mxu0 %v6043_v43  ;;  %v6583_v43 = vor.u32 %v7986_v24, %v6580_v27  ;;  %v7977_v24 = vld [vmem:[#allocation5 + $0xa0c] sm:$0xf] }
 0x133   :  { %4472 = vmatpush.bf16.msra.mxu1 %v6139_v50  ;;  %v6472_v50 = vld [vmem:[#allocation5 + $0x984] sm:$0xf0] }
 0x134   :  { %4485 = vmatpush.bf16.msra.mxu2 %v6235_v51  ;;  %v7983_v51 = vld [vmem:[#allocation5 + $0xa3c] sm:$0xf]  ;;  %v6475_v53 = vor.u32 %v7959_v48, %v6472_v50  ;;  %v7950_v48 = vld [vmem:[#allocation5 + $0x934] sm:$0xf]  ;;  %v6436_v50 = vld [vmem:[#allocation5 + $0x93c] sm:$0xf0] }
 0x135   :  { %4498 = vmatpush.bf16.msra.mxu3 %v6331_v57  ;;  %v6664_v57 = vld [vmem:[#allocation5 + $0xb04] sm:$0xf0]  ;;  %v6571_v60 = vor.u32 %v7983_v51, %v6568_v54  ;;  %v7974_v51 = vld [vmem:[#allocation5 + $0x9f4] sm:$0xf] }
 0x136   :  { %4460 = vmatpush.bf16.msra.mxu0 %v6031_v1  ;;  %v6667_v61 = vor.u32 %v8007_v56, %v6664_v57  ;;  %v6763_v1 = vor.u32 %v8031_v58, %v6760_v59  ;;  %v6532_v56 = vld [vmem:[#allocation5 + $0x9fc] sm:$0xf0]  ;;  %v7998_v57 = vld [vmem:[#allocation5 + $0xab4] sm:$0xf] }
 0x137   :  { %4473 = vmatpush.bf16.msra.mxu1 %v6127_v5  ;;  %v4254_v5 = vpop.f32.mrf.mxu0  ;;  %v6628_v58 = vld [vmem:[#allocation5 + $0xabc] sm:$0xf0] }
 0x138   :  { %4486 = vmatpush.bf16.msra.mxu2 %v6223_v55  ;;  %v8028_v55 = vld [vmem:[#allocation5 + $0xba4] sm:$0xf]  ;;  %v4255_v8 = vadd.f32 %v4254_v5, %v8569_v14  ;;  %v6547_v14 = vor.u32 %v7977_v24, %v6544_v32  ;;  %v6424_v5 = vld [vmem:[#allocation5 + $0x924] sm:$0xf0]  ;;  %v6412_v24 = vld [vmem:[#allocation5 + $0x90c] sm:$0xf0] }
 0x139   :  { %4499 = vmatpush.bf16.msra.mxu3 %v6319_v9  ;;  %4461 = vmatmul.bf16.vlgmr.msra.gmra.mxu0 %v8504_v25  ;;  %v6463_v9 = vor.u32 %v7956_v62, %v6460_v63  ;;  %v6439_v63 = vor.u32 %v7950_v48, %v6436_v50  ;;  %v7968_v32 = vld [vmem:[#allocation5 + $0x9c4] sm:$0xf]  ;;  %v8061_v48 = vld [vmem:[#allocation5 + $0xcac] sm:$0xf]  ;;  %v6880_v50 = vld [vmem:[#allocation5 + $0xcb4] sm:$0xf0] }
 0x13a   :  { %4505 = vmatpush.bf16.msrb.mxu0 %v6499_v10  ;;  %4474 = vmatmul.bf16.vlgmr.msra.gmra.mxu1 %v8508_v30  ;;  %v4267_v10 = vpop.f32.mrf.mxu1 }
 0x13b   :  { %4518 = vmatpush.bf16.msrb.mxu1 %v6595_v13  ;;  %4487 = vmatmul.bf16.vlgmr.msra.gmra.mxu2 %v8506_v29  ;;  %v6559_v13 = vor.u32 %v7980_v0, %v6556_v2  ;;  %v4268_v27 = vadd.f32 %v4267_v10, %v4255_v8  ;;  %v6535_v2 = vor.u32 %v7974_v51, %v6532_v56  ;;  %v6520_v8 = vld [vmem:[#allocation5 + $0x9e4] sm:$0xf0]  ;;  %v8085_v51 = vld [vmem:[#allocation5 + $0xd6c] sm:$0xf]  ;;  %v6976_v56 = vld [vmem:[#allocation5 + $0xd74] sm:$0xf0] }
 0x13c   :  { %4531 = vmatpush.bf16.msrb.mxu2 %v6691_v15  ;;  %4500 = vmatmul.bf16.vlgmr.msra.gmra.mxu3 %v8510_v33  ;;  %v6655_v15 = vor.u32 %v8004_v3, %v6652_v4  ;;  %v6631_v3 = vor.u32 %v7998_v57, %v6628_v58  ;;  %v7947_v4 = vld [vmem:[#allocation5 + $0x91c] sm:$0xf]  ;;  %v6616_v10 = vld [vmem:[#allocation5 + $0xaa4] sm:$0xf0]  ;;  %v8109_v57 = vld [vmem:[#allocation5 + $0xe2c] sm:$0xf] }
 0x13d   :  { %4544 = vmatpush.bf16.msrb.mxu3 %v6787_v26  ;;  %v6751_v26 = vor.u32 %v8028_v55, %v6748_v6  ;;  %v7971_v55 = vld [vmem:[#allocation5 + $0x9dc] sm:$0xf]  ;;  %v7072_v58 = vld [vmem:[#allocation5 + $0xe34] sm:$0xf0] }
 0x13e   :  { %4506 = vmatpush.bf16.msrb.mxu0 %v6487_v40  ;;  %v6736_v40 = vld [vmem:[#allocation5 + $0xb94] sm:$0xf0]  ;;  %v4280_v54 = vpop.f32.mrf.mxu2 }
 0x13f   :  { %4519 = vmatpush.bf16.msrb.mxu1 %v6583_v43  ;;  %v6451_v43 = vor.u32 %v7953_v17, %v6448_v21  ;;  %v4281_v59 = vadd.f32 %v4280_v54, %v4268_v27  ;;  %v4256_v62 = vpop.f32.mrf.mxu0  ;;  %v6427_v17 = vor.u32 %v7947_v4, %v6424_v5  ;;  %v7944_v21 = vld [vmem:[#allocation5 + $0x904] sm:$0xf]  ;;  %v6868_v4 = vld [vmem:[#allocation5 + $0xc9c] sm:$0xf0]  ;;  %v8082_v5 = vld [vmem:[#allocation5 + $0xd54] sm:$0xf] }
 0x140   :  { %4532 = vmatpush.bf16.msrb.mxu2 %v6679_v47  ;;  %v6643_v47 = vor.u32 %v8001_v34, %v6640_v36  ;;  %v6508_v34 = vld [vmem:[#allocation5 + $0x9cc] sm:$0xf0]  ;;  %v7992_v36 = vld [vmem:[#allocation5 + $0xa84] sm:$0xf]  ;;  %v6415_v54 = vor.u32 %v7944_v21, %v6412_v24  ;;  %v8055_v24 = vld [vmem:[#allocation5 + $0xc7c] sm:$0xf] }
 0x141   :  { %4545 = vmatpush.bf16.msrb.mxu3 %v6775_v52  ;;  %v6739_v52 = vor.u32 %v8025_v39, %v6736_v40  ;;  %v6604_v40 = vld [vmem:[#allocation5 + $0xa8c] sm:$0xf0] }
 0x142   :  { %4507 = vmatpush.bf16.msrb.mxu0 %v6475_v53  ;;  %v4293_v53 = vpop.f32.mrf.mxu3  ;;  %v4269_v0 = vpop.f32.mrf.mxu1 }
 0x143   :  { %4520 = vmatpush.bf16.msrb.mxu1 %v6571_v60  ;;  %v8022_v60 = vld [vmem:[#allocation5 + $0xb74] sm:$0xf]  ;;  %v6979_v0 = vor.u32 %v8085_v51, %v6976_v56  ;;  %v6844_v51 = vld [vmem:[#allocation5 + $0xc6c] sm:$0xf0] }
 0x144   :  { %4533 = vmatpush.bf16.msrb.mxu2 %v6667_v61  ;;  %v6724_v61 = vld [vmem:[#allocation5 + $0xb7c] sm:$0xf0]  ;;  %v6940_v56 = vld [vmem:[#allocation5 + $0xd2c] sm:$0xf0] }
 0x145   :  { %4546 = vmatpush.bf16.msrb.mxu3 %v6763_v1  ;;  %v8576_v1 = vadd.f32 %v4293_v53, %v4281_v59  ;;  %v6727_v6 = vor.u32 %v8022_v60, %v6724_v61  ;;  %v6511_v59 = vor.u32 %v7968_v32, %v6508_v34  ;;  %v6607_v53 = vor.u32 %v7992_v36, %v6604_v40  ;;  %v8133_v60 = vld [vmem:[#allocation5 + $0xeec] sm:$0xf]  ;;  %v7168_v61 = vld [vmem:[#allocation5 + $0xef4] sm:$0xf0]  ;;  %v6952_v34 = vld [vmem:[#allocation5 + $0xd44] sm:$0xf0] }
 0x146   :  { %4508 = vmatpush.bf16.msrb.mxu0 %v6463_v9  ;;  %v7995_v9 = vld [vmem:[#allocation5 + $0xa9c] sm:$0xf] }
 0x147   :  { %4521 = vmatpush.bf16.msrb.mxu1 %v6559_v13  ;;  %v8019_v13 = vld [vmem:[#allocation5 + $0xb5c] sm:$0xf]  ;;  %v6619_v27 = vor.u32 %v7995_v9, %v6616_v10  ;;  %v7060_v9 = vld [vmem:[#allocation5 + $0xe1c] sm:$0xf0]  ;;  %v8130_v10 = vld [vmem:[#allocation5 + $0xed4] sm:$0xf] }
 0x148   :  { %4534 = vmatpush.bf16.msrb.mxu2 %v6655_v15  ;;  %v6712_v15 = vld [vmem:[#allocation5 + $0xb64] sm:$0xf0]  ;;  %v8103_v36 = vld [vmem:[#allocation5 + $0xdfc] sm:$0xf] }
 0x149   :  { %4547 = vmatpush.bf16.msrb.mxu3 %v6751_v26  ;;  %v6523_v26 = vor.u32 %v7971_v55, %v6520_v8  ;;  %v6715_v39 = vor.u32 %v8019_v13, %v6712_v15  ;;  %v7171_v55 = vor.u32 %v8133_v60, %v7168_v61  ;;  %v8106_v8 = vld [vmem:[#allocation5 + $0xe14] sm:$0xf]  ;;  %v7156_v13 = vld [vmem:[#allocation5 + $0xedc] sm:$0xf0]  ;;  %v8127_v40 = vld [vmem:[#allocation5 + $0xebc] sm:$0xf] }
 0x14a   :  { %4509 = vmatpush.bf16.msrb.mxu0 %v6451_v43  ;;  %v8016_v43 = vld [vmem:[#allocation5 + $0xb44] sm:$0xf]  ;;  %v7063_v21 = vor.u32 %v8106_v8, %v7060_v9  ;;  %v7159_v32 = vor.u32 %v8130_v10, %v7156_v13  ;;  %v7132_v60 = vld [vmem:[#allocation5 + $0xeac] sm:$0xf0]  ;;  %v6928_v8 = vld [vmem:[#allocation5 + $0xd14] sm:$0xf0] }
 0x14b   :  { %4522 = vmatpush.bf16.msrb.mxu1 %v6547_v14  ;;  %v6700_v14 = vld [vmem:[#allocation5 + $0xb4c] sm:$0xf0]  ;;  %v8097_v9 = vld [vmem:[#allocation5 + $0xdcc] sm:$0xf]  ;;  %v7024_v10 = vld [vmem:[#allocation5 + $0xdd4] sm:$0xf0] }
 0x14c   :  { %4535 = vmatpush.bf16.msrb.mxu2 %v6643_v47  ;;  %v4282_v47 = vpop.f32.mrf.mxu2  ;;  %v6703_v62 = vor.u32 %v8016_v43, %v6700_v14  ;;  %v7144_v43 = vld [vmem:[#allocation5 + $0xec4] sm:$0xf0]  ;;  %v8121_v13 = vld [vmem:[#allocation5 + $0xe8c] sm:$0xf] }
 0x14d   :  { %4548 = vmatpush.bf16.msrb.mxu3 %v6739_v52  ;;  %v4295_v52 = vpop.f32.mrf.mxu3 }
 0x14e   :  { %4510 = vmatpush.bf16.msrb.mxu0 %v6439_v63  ;;  %v6883_v63 = vor.u32 %v8061_v48, %v6880_v50  ;;  %v8052_v50 = vld [vmem:[#allocation5 + $0xc64] sm:$0xf] }
 0x14f   :  { %4523 = vmatpush.bf16.msrb.mxu1 %v6535_v2  ;;  %v7075_v2 = vor.u32 %v8109_v57, %v7072_v58  ;;  %v8076_v52 = vld [vmem:[#allocation5 + $0xd24] sm:$0xf]  ;;  %v7036_v58 = vld [vmem:[#allocation5 + $0xdec] sm:$0xf0] }
 0x150   :  { %4536 = vmatpush.bf16.msrb.mxu2 %v6631_v3  ;;  %v8058_v3 = vld [vmem:[#allocation5 + $0xc94] sm:$0xf]  ;;  %v8100_v57 = vld [vmem:[#allocation5 + $0xde4] sm:$0xf] }
 0x151   :  { %4549 = vmatpush.bf16.msrb.mxu3 %v6727_v6  ;;  %v6964_v6 = vld [vmem:[#allocation5 + $0xd5c] sm:$0xf0]  ;;  %v6871_v15 = vor.u32 %v8058_v3, %v6868_v4  ;;  %v8049_v3 = vld [vmem:[#allocation5 + $0xc4c] sm:$0xf]  ;;  %v6832_v4 = vld [vmem:[#allocation5 + $0xc54] sm:$0xf0] }
 0x152   :  { %4511 = vmatpush.bf16.msrb.mxu0 %v6427_v17  ;;  %v6967_v17 = vor.u32 %v8082_v5, %v6964_v6  ;;  %v8073_v5 = vld [vmem:[#allocation5 + $0xd0c] sm:$0xf] }
 0x153   :  { %4524 = vmatpush.bf16.msrb.mxu1 %v6523_v26  ;;  %v6856_v26 = vld [vmem:[#allocation5 + $0xc84] sm:$0xf0] }
 0x154   :  { %4537 = vmatpush.bf16.msrb.mxu2 %v6619_v27  ;;  %v8079_v27 = vld [vmem:[#allocation5 + $0xd3c] sm:$0xf]  ;;  %v6859_v14 = vor.u32 %v8055_v24, %v6856_v26  ;;  %v8046_v24 = vld [vmem:[#allocation5 + $0xc34] sm:$0xf]  ;;  %v6820_v26 = vld [vmem:[#allocation5 + $0xc3c] sm:$0xf0] }
 0x155   :  { %4550 = vmatpush.bf16.msrb.mxu3 %v6715_v39  ;;  %v7048_v39 = vld [vmem:[#allocation5 + $0xe04] sm:$0xf0]  ;;  %v6955_v47 = vor.u32 %v8079_v27, %v6952_v34  ;;  %v8070_v27 = vld [vmem:[#allocation5 + $0xcf4] sm:$0xf] }
 0x156   :  { %4512 = vmatpush.bf16.msrb.mxu0 %v6415_v54  ;;  %v7051_v48 = vor.u32 %v8103_v36, %v7048_v39  ;;  %v7147_v54 = vor.u32 %v8127_v40, %v7144_v43  ;;  %v6916_v36 = vld [vmem:[#allocation5 + $0xcfc] sm:$0xf0]  ;;  %v8094_v39 = vld [vmem:[#allocation5 + $0xdb4] sm:$0xf] }
 0x157   :  { %4525 = vmatpush.bf16.msrb.mxu1 %v6511_v59  ;;  %v4306_v59 = vpop.f32.mrf.mxu0  ;;  %v7012_v40 = vld [vmem:[#allocation5 + $0xdbc] sm:$0xf0] }
 0x158   :  { %4538 = vmatpush.bf16.msrb.mxu2 %v6607_v53  ;;  %v8124_v53 = vld [vmem:[#allocation5 + $0xea4] sm:$0xf]  ;;  %v4307_v61 = vadd.f32 %v4306_v59, %v8576_v1  ;;  %v6931_v1 = vor.u32 %v8073_v5, %v6928_v8  ;;  %v6808_v59 = vld [vmem:[#allocation5 + $0xc24] sm:$0xf0]  ;;  %v6796_v5 = vld [vmem:[#allocation5 + $0xc0c] sm:$0xf0] }
 0x159   :  { %4551 = vmatpush.bf16.msrb.mxu3 %v6703_v62  ;;  %4513 = vmatmul.bf16.vlgmr.msrb.gmra.mxu0 %v8516_v23  ;;  %v6847_v62 = vor.u32 %v8052_v50, %v6844_v51  ;;  %v6823_v51 = vor.u32 %v8046_v24, %v6820_v26  ;;  %v8064_v8 = vld [vmem:[#allocation5 + $0xcc4] sm:$0xf]  ;;  %v8157_v24 = vld [vmem:[#allocation5 + $0xfac] sm:$0xf]  ;;  %v7264_v26 = vld [vmem:[#allocation5 + $0xfb4] sm:$0xf0] }
 0x15a   :  { %4557 = vmatpush.bf16.msra.mxu0 %v6883_v63  ;;  %4526 = vmatmul.bf16.vlgmr.msrb.gmra.mxu1 %v8520_v31  ;;  %v4319_v63 = vpop.f32.mrf.mxu1 }
 0x15b   :  { %4570 = vmatpush.bf16.msra.mxu1 %v6979_v0  ;;  %4539 = vmatmul.bf16.vlgmr.msrb.gmra.mxu2 %v8518_v28  ;;  %v6943_v0 = vor.u32 %v8076_v52, %v6940_v56  ;;  %v4320_v6 = vadd.f32 %v4319_v63, %v4307_v61  ;;  %v6919_v56 = vor.u32 %v8070_v27, %v6916_v36  ;;  %v6904_v61 = vld [vmem:[#allocation5 + $0xce4] sm:$0xf0]  ;;  %v8181_v27 = vld [vmem:[#allocation5 + $0x106c] sm:$0xf]  ;;  %v7360_v36 = vld [vmem:[#allocation5 + $0x1074] sm:$0xf0] }
 0x15c   :  { %4583 = vmatpush.bf16.msra.mxu2 %v7075_v2  ;;  %4552 = vmatmul.bf16.vlgmr.msrb.gmra.mxu3 %v8522_v35  ;;  %v7039_v2 = vor.u32 %v8100_v57, %v7036_v58  ;;  %v7015_v57 = vor.u32 %v8094_v39, %v7012_v40  ;;  %v8043_v58 = vld [vmem:[#allocation5 + $0xc1c] sm:$0xf]  ;;  %v7000_v63 = vld [vmem:[#allocation5 + $0xda4] sm:$0xf0]  ;;  %v8205_v39 = vld [vmem:[#allocation5 + $0x112c] sm:$0xf] }
 0x15d   :  { %4596 = vmatpush.bf16.msra.mxu3 %v7171_v55  ;;  %v7135_v55 = vor.u32 %v8124_v53, %v7132_v60  ;;  %v8067_v53 = vld [vmem:[#allocation5 + $0xcdc] sm:$0xf]  ;;  %v7456_v40 = vld [vmem:[#allocation5 + $0x1134] sm:$0xf0] }
 0x15e   :  { %4558 = vmatpush.bf16.msra.mxu0 %v6871_v15  ;;  %v7120_v15 = vld [vmem:[#allocation5 + $0xe94] sm:$0xf0]  ;;  %v4332_v34 = vpop.f32.mrf.mxu2 }
 0x15f   :  { %4571 = vmatpush.bf16.msra.mxu1 %v6967_v17  ;;  %v6835_v17 = vor.u32 %v8049_v3, %v6832_v4  ;;  %v4333_v43 = vadd.f32 %v4332_v34, %v4320_v6  ;;  %v4308_v50 = vpop.f32.mrf.mxu0  ;;  %v6811_v3 = vor.u32 %v8043_v58, %v6808_v59  ;;  %v8040_v4 = vld [vmem:[#allocation5 + $0xc04] sm:$0xf]  ;;  %v7252_v58 = vld [vmem:[#allocation5 + $0xf9c] sm:$0xf0]  ;;  %v8178_v59 = vld [vmem:[#allocation5 + $0x1054] sm:$0xf] }
 0x160   :  { %4584 = vmatpush.bf16.msra.mxu2 %v7063_v21  ;;  %v7027_v21 = vor.u32 %v8097_v9, %v7024_v10  ;;  %v6892_v9 = vld [vmem:[#allocation5 + $0xccc] sm:$0xf0]  ;;  %v8088_v10 = vld [vmem:[#allocation5 + $0xd84] sm:$0xf]  ;;  %v6799_v34 = vor.u32 %v8040_v4, %v6796_v5  ;;  %v8151_v5 = vld [vmem:[#allocation5 + $0xf7c] sm:$0xf] }
 0x161   :  { %4597 = vmatpush.bf16.msra.mxu3 %v7159_v32  ;;  %v7123_v32 = vor.u32 %v8121_v13, %v7120_v15  ;;  %v6988_v15 = vld [vmem:[#allocation5 + $0xd8c] sm:$0xf0] }
 0x162   :  { %4559 = vmatpush.bf16.msra.mxu0 %v6859_v14  ;;  %v4345_v14 = vpop.f32.mrf.mxu3  ;;  %v4321_v52 = vpop.f32.mrf.mxu1 }
 0x163   :  { %4572 = vmatpush.bf16.msra.mxu1 %v6955_v47  ;;  %v8118_v47 = vld [vmem:[#allocation5 + $0xe74] sm:$0xf]  ;;  %v7363_v52 = vor.u32 %v8181_v27, %v7360_v36  ;;  %v7228_v27 = vld [vmem:[#allocation5 + $0xf6c] sm:$0xf0] }
 0x164   :  { %4585 = vmatpush.bf16.msra.mxu2 %v7051_v48  ;;  %v7108_v48 = vld [vmem:[#allocation5 + $0xe7c] sm:$0xf0] }
 0x165   :  { %4598 = vmatpush.bf16.msra.mxu3 %v7147_v54  ;;  %v8583_v54 = vadd.f32 %v4345_v14, %v4333_v43  ;;  %v7111_v60 = vor.u32 %v8118_v47, %v7108_v48  ;;  %v6895_v43 = vor.u32 %v8064_v8, %v6892_v9  ;;  %v6991_v14 = vor.u32 %v8088_v10, %v6988_v15  ;;  %v8229_v47 = vld [vmem:[#allocation5 + $0x11ec] sm:$0xf]  ;;  %v7552_v48 = vld [vmem:[#allocation5 + $0x11f4] sm:$0xf0]  ;;  %v7336_v9 = vld [vmem:[#allocation5 + $0x1044] sm:$0xf0] }
 0x166   :  { %4560 = vmatpush.bf16.msra.mxu0 %v6847_v62  ;;  %v8091_v62 = vld [vmem:[#allocation5 + $0xd9c] sm:$0xf] }
 0x167   :  { %4573 = vmatpush.bf16.msra.mxu1 %v6943_v0  ;;  %v8115_v0 = vld [vmem:[#allocation5 + $0xe5c] sm:$0xf]  ;;  %v7003_v6 = vor.u32 %v8091_v62, %v7000_v63  ;;  %v7444_v62 = vld [vmem:[#allocation5 + $0x111c] sm:$0xf0]  ;;  %v8226_v63 = vld [vmem:[#allocation5 + $0x11d4] sm:$0xf] }
 0x168   :  { %4586 = vmatpush.bf16.msra.mxu2 %v7039_v2  ;;  %v7096_v2 = vld [vmem:[#allocation5 + $0xe64] sm:$0xf0]  ;;  %v8199_v10 = vld [vmem:[#allocation5 + $0x10fc] sm:$0xf] }
 0x169   :  { %4599 = vmatpush.bf16.msra.mxu3 %v7135_v55  ;;  %v6907_v55 = vor.u32 %v8067_v53, %v6904_v61  ;;  %v7099_v13 = vor.u32 %v8115_v0, %v7096_v2  ;;  %v7555_v53 = vor.u32 %v8229_v47, %v7552_v48  ;;  %v8202_v61 = vld [vmem:[#allocation5 + $0x1114] sm:$0xf]  ;;  %v7540_v0 = vld [vmem:[#allocation5 + $0x11dc] sm:$0xf0]  ;;  %v8223_v15 = vld [vmem:[#allocation5 + $0x11bc] sm:$0xf] }
 0x16a   :  { %4561 = vmatpush.bf16.msra.mxu0 %v6835_v17  ;;  %v8112_v17 = vld [vmem:[#allocation5 + $0xe44] sm:$0xf]  ;;  %v7447_v4 = vor.u32 %v8202_v61, %v7444_v62  ;;  %v7543_v8 = vor.u32 %v8226_v63, %v7540_v0  ;;  %v7516_v48 = vld [vmem:[#allocation5 + $0x11ac] sm:$0xf0]  ;;  %v7312_v62 = vld [vmem:[#allocation5 + $0x1014] sm:$0xf0] }
 0x16b   :  { %4574 = vmatpush.bf16.msra.mxu1 %v6931_v1  ;;  %v7084_v1 = vld [vmem:[#allocation5 + $0xe4c] sm:$0xf0]  ;;  %v8220_v47 = vld [vmem:[#allocation5 + $0x11a4] sm:$0xf]  ;;  %v8193_v63 = vld [vmem:[#allocation5 + $0x10cc] sm:$0xf] }
 0x16c   :  { %4587 = vmatpush.bf16.msra.mxu2 %v7027_v21  ;;  %v4334_v21 = vpop.f32.mrf.mxu2  ;;  %v7087_v50 = vor.u32 %v8112_v17, %v7084_v1  ;;  %v7528_v17 = vld [vmem:[#allocation5 + $0x11c4] sm:$0xf0]  ;;  %v7519_v61 = vor.u32 %v8220_v47, %v7516_v48  ;;  %v7408_v0 = vld [vmem:[#allocation5 + $0x10d4] sm:$0xf0]  ;;  %v8163_v48 = vld [vmem:[#allocation5 + $0xfdc] sm:$0xf] }
 0x16d   :  { %4600 = vmatpush.bf16.msra.mxu3 %v7123_v32  ;;  %v4347_v32 = vpop.f32.mrf.mxu3  ;;  %v8148_v21 = vld [vmem:[#allocation5 + $0xf64] sm:$0xf]  ;;  %v7192_v47 = vld [vmem:[#allocation5 + $0xf24] sm:$0xf0] }
 0x16e   :  { %4562 = vmatpush.bf16.msra.mxu0 %v6823_v51  ;;  %v7267_v51 = vor.u32 %v8157_v24, %v7264_v26  ;;  %v8172_v32 = vld [vmem:[#allocation5 + $0x1024] sm:$0xf] }
 0x16f   :  { %4575 = vmatpush.bf16.msra.mxu1 %v6919_v56  ;;  %v7459_v56 = vor.u32 %v8205_v39, %v7456_v40  ;;  %v7531_v39 = vor.u32 %v8223_v15, %v7528_v17  ;;  %v7324_v40 = vld [vmem:[#allocation5 + $0x102c] sm:$0xf0]  ;;  %v7300_v17 = vld [vmem:[#allocation5 + $0xffc] sm:$0xf0] }
 0x170   :  { %4588 = vmatpush.bf16.msra.mxu2 %v7015_v57  ;;  %v8154_v57 = vld [vmem:[#allocation5 + $0xf94] sm:$0xf] }
 0x171   :  { %4601 = vmatpush.bf16.msra.mxu3 %v7111_v60  ;;  %v7348_v60 = vld [vmem:[#allocation5 + $0x105c] sm:$0xf0]  ;;  %v7255_v2 = vor.u32 %v8154_v57, %v7252_v58  ;;  %v8145_v57 = vld [vmem:[#allocation5 + $0xf4c] sm:$0xf]  ;;  %v7216_v58 = vld [vmem:[#allocation5 + $0xf54] sm:$0xf0] }
 0x172   :  { %4563 = vmatpush.bf16.msra.mxu0 %v6811_v3  ;;  %v7351_v3 = vor.u32 %v8178_v59, %v7348_v60  ;;  %v8169_v59 = vld [vmem:[#allocation5 + $0x100c] sm:$0xf] }
 0x173   :  { %4576 = vmatpush.bf16.msra.mxu1 %v6907_v55  ;;  %v7240_v55 = vld [vmem:[#allocation5 + $0xf84] sm:$0xf0] }
 0x174   :  { %4589 = vmatpush.bf16.msra.mxu2 %v7003_v6  ;;  %v8175_v6 = vld [vmem:[#allocation5 + $0x103c] sm:$0xf]  ;;  %v7243_v1 = vor.u32 %v8151_v5, %v7240_v55  ;;  %v7219_v5 = vor.u32 %v8145_v57, %v7216_v58  ;;  %v7315_v55 = vor.u32 %v8169_v59, %v7312_v62  ;;  %v7384_v57 = vld [vmem:[#allocation5 + $0x10a4] sm:$0xf0] }
 0x175   :  { %4602 = vmatpush.bf16.msra.mxu3 %v7099_v13  ;;  %v7432_v13 = vld [vmem:[#allocation5 + $0x1104] sm:$0xf0]  ;;  %v7339_v24 = vor.u32 %v8175_v6, %v7336_v9  ;;  %v7411_v6 = vor.u32 %v8193_v63, %v7408_v0  ;;  %v7204_v9 = vld [vmem:[#allocation5 + $0xf3c] sm:$0xf0]  ;;  %v8211_v58 = vld [vmem:[#allocation5 + $0x115c] sm:$0xf] }
 0x176   :  { %4564 = vmatpush.bf16.msra.mxu0 %v6799_v34  ;;  %v7435_v26 = vor.u32 %v8199_v10, %v7432_v13  ;;  %v8271_v34 = vld [vmem:[#allocation7] sm:$0x7]  ;;  %v8166_v10 = vld [vmem:[#allocation5 + $0xff4] sm:$0xf]  ;;  %v7480_v59 = vld [vmem:[#allocation5 + $0x1164] sm:$0xf0] }
 0x177   :  { %4577 = vmatpush.bf16.msra.mxu1 %v6895_v43  ;;  %v876_v36 = vperm.slane %v8271_v34, 1  ;;  %v8196_v43 = vld [vmem:[#allocation5 + $0x10e4] sm:$0xf]  ;;  %v4371_v60 = vpop.f32.mrf.mxu1 }
 0x178   :  { %4590 = vmatpush.bf16.msra.mxu2 %v6991_v14  ;;  %v7420_v14 = vld [vmem:[#allocation5 + $0x10ec] sm:$0xf0]  ;;  %v8160_v0 = vld [vmem:[#allocation5 + $0xfc4] sm:$0xf] }
 0x179   :  { %4603 = vmatpush.bf16.msra.mxu3 %v7087_v50  ;;  %4565 = vmatmul.bf16.vlgmr.msra.gmra.mxu0 %v8528_v37  ;;  %v7231_v50 = vor.u32 %v8148_v21, %v7228_v27  ;;  %v7396_v21 = vld [vmem:[#allocation5 + $0x10bc] sm:$0xf0]  ;;  %v8214_v27 = vld [vmem:[#allocation5 + $0x1174] sm:$0xf] }
 0x17a   :  { %4609 = vmatpush.bf16.msrb.mxu0 %v7267_v51  ;;  %4578 = vmatmul.bf16.vlgmr.msra.gmra.mxu1 %v8532_v46  ;;  %v4358_v51 = vpop.f32.mrf.mxu0 }
 0x17b   :  { %4622 = vmatpush.bf16.msrb.mxu1 %v7363_v52  ;;  %4591 = vmatmul.bf16.vlgmr.msra.gmra.mxu2 %v8530_v45  ;;  %v7327_v52 = vor.u32 %v8172_v32, %v7324_v40  ;;  %v7492_v32 = vld [vmem:[#allocation5 + $0x117c] sm:$0xf0]  ;;  %v7303_v40 = vor.u32 %v8166_v10, %v7300_v17  ;;  %v5350_v10 = vld [vmem:[#allocation5 + $0xb0] sm:$0xf] }
 0x17c   :  { %4635 = vmatpush.bf16.msrb.mxu2 %v7459_v56  ;;  %4604 = vmatmul.bf16.vlgmr.msra.gmra.mxu3 %v8534_v49  ;;  %v7423_v56 = vor.u32 %v8196_v43, %v7420_v14  ;;  %v8139_v14 = vld [vmem:[#allocation5 + $0xf1c] sm:$0xf] }
 0x17d   :  { %4648 = vmatpush.bf16.msrb.mxu3 %v7555_v53  ;;  %v4359_v53 = vadd.f32 %v4358_v51, %v876_v36  ;;  %v7495_v51 = vor.u32 %v8214_v27, %v7492_v32  ;;  %v5638_v32 = vld [vmem:[#allocation5 + $0x2f0] sm:$0xf] }
 0x17e   :  { %4610 = vmatpush.bf16.msrb.mxu0 %v7255_v2  ;;  %v8217_v2 = vld [vmem:[#allocation5 + $0x118c] sm:$0xf]  ;;  %v4384_v13 = vpop.f32.mrf.mxu2 }
 0x17f   :  { %4623 = vmatpush.bf16.msrb.mxu1 %v7351_v3  ;;  %v7504_v3 = vld [vmem:[#allocation5 + $0x1194] sm:$0xf0] }
 0x180   :  { %4636 = vmatpush.bf16.msrb.mxu2 %v7447_v4  ;;  %v4372_v4 = vadd.f32 %v4371_v60, %v4359_v53  ;;  %v7507_v15 = vor.u32 %v8217_v2, %v7504_v3  ;;  %v7195_v53 = vor.u32 %v8139_v14, %v7192_v47  ;;  %v8136_v60 = vld [vmem:[#allocation5 + $0xf04] sm:$0xf]  ;;  %v7276_v2 = vld [vmem:[#allocation5 + $0xfcc] sm:$0xf0]  ;;  %v5338_v47 = vld [vmem:[#allocation5 + $0x98] sm:$0xf] }
 0x181   :  { %4649 = vmatpush.bf16.msrb.mxu3 %v7543_v8  ;;  %v8142_v8 = vld [vmem:[#allocation5 + $0xf34] sm:$0xf]  ;;  %v8184_v3 = vld [vmem:[#allocation5 + $0x1084] sm:$0xf] }
 0x182   :  { %4611 = vmatpush.bf16.msrb.mxu0 %v7243_v1  ;;  %v8190_v1 = vld [vmem:[#allocation5 + $0x10b4] sm:$0xf]  ;;  %v7207_v34 = vor.u32 %v8142_v8, %v7204_v9  ;;  %v7468_v8 = vld [vmem:[#allocation5 + $0x114c] sm:$0xf0] }
 0x183   :  { %4624 = vmatpush.bf16.msrb.mxu1 %v7339_v24  ;;  %v4385_v24 = vadd.f32 %v4384_v13, %v4372_v4  ;;  %v7399_v43 = vor.u32 %v8190_v1, %v7396_v21  ;;  %v7679_v13 = vld [vmem:[#allocation5 + $0xb8] sm:$0xf0]  ;;  %v5542_v21 = vld [vmem:[#allocation5 + $0x230] sm:$0xf] }
 0x184   :  { %4637 = vmatpush.bf16.msrb.mxu2 %v7435_v26  ;;  %v4397_v26 = vpop.f32.mrf.mxu3  ;;  %v7703_v1 = vld [vmem:[#allocation5 + $0x178] sm:$0xf0] }
 0x185   :  { %4650 = vmatpush.bf16.msrb.mxu3 %v7531_v39  ;;  %v8589_v36 = vadd.f32 %v4397_v26, %v4385_v24  ;;  %v4360_v39 = vpop.f32.mrf.mxu0  ;;  %v7727_v24 = vld [vmem:[#allocation5 + $0x238] sm:$0xf0]  ;;  %v7279_v26 = vor.u32 %v8160_v0, %v7276_v2  ;;  %v5422_v0 = vld [vmem:[#allocation5 + $0x140] sm:$0xf] }
 0x186   :  { %4612 = vmatpush.bf16.msrb.mxu0 %v7231_v50  ;;  %v4373_v50 = vpop.f32.mrf.mxu1  ;;  %v4386_v4 = vpop.f32.mrf.mxu2  ;;  %v5543_v14 = vor.u32 %v7727_v24, %v5542_v21  ;;  %v7694_v21 = vld [vmem:[#allocation5 + $0x130] sm:$0xf0]  ;;  %v5506_v24 = vld [vmem:[#allocation5 + $0x1e8] sm:$0xf] }
 0x187   :  { %4625 = vmatpush.bf16.msrb.mxu1 %v7327_v52  ;;  %v7288_v52 = vld [vmem:[#allocation5 + $0xfe4] sm:$0xf0]  ;;  %v5434_v50 = vld [vmem:[#allocation5 + $0x158] sm:$0xf]  ;;  %v5518_v4 = vld [vmem:[#allocation5 + $0x200] sm:$0xf] }
 0x188   :  { %4638 = vmatpush.bf16.msrb.mxu2 %v7423_v56  ;;  %v8187_v56 = vld [vmem:[#allocation5 + $0x109c] sm:$0xf]  ;;  %v7291_v62 = vor.u32 %v8163_v48, %v7288_v52  ;;  %v7676_v48 = vld [vmem:[#allocation5 + $0xa0] sm:$0xf0] }
 0x189   :  { %4651 = vmatpush.bf16.msrb.mxu3 %v7519_v61  ;;  %v7180_v61 = vld [vmem:[#allocation5 + $0xf0c] sm:$0xf0]  ;;  %v7387_v63 = vor.u32 %v8187_v56, %v7384_v57  ;;  %v7700_v52 = vld [vmem:[#allocation5 + $0x160] sm:$0xf0]  ;;  %v5530_v56 = vld [vmem:[#allocation5 + $0x218] sm:$0xf] }
 0x18a   :  { %4613 = vmatpush.bf16.msrb.mxu0 %v7219_v5  ;;  %v7483_v5 = vor.u32 %v8211_v58, %v7480_v59  ;;  %v7183_v17 = vor.u32 %v8136_v60, %v7180_v61  ;;  %v7724_v57 = vld [vmem:[#allocation5 + $0x220] sm:$0xf0]  ;;  %v5626_v58 = vld [vmem:[#allocation5 + $0x2d8] sm:$0xf]  ;;  %v5435_v60 = vor.u32 %v7700_v52, %v5434_v50 }
 0x18b   :  { %4626 = vmatpush.bf16.msrb.mxu1 %v7315_v55  ;;  %v7372_v55 = vld [vmem:[#allocation5 + $0x108c] sm:$0xf0]  ;;  %v7748_v59 = vld [vmem:[#allocation5 + $0x2e0] sm:$0xf0]  ;;  %v5531_v61 = vor.u32 %v7724_v57, %v5530_v56  ;;  %v7691_v56 = vld [vmem:[#allocation5 + $0x118] sm:$0xf0] }
 0x18c   :  { %4639 = vmatpush.bf16.msrb.mxu2 %v7411_v6  ;;  %v8208_v6 = vld [vmem:[#allocation5 + $0x1144] sm:$0xf]  ;;  %v4399_v9 = vpop.f32.mrf.mxu3  ;;  %v7375_v27 = vor.u32 %v8184_v3, %v7372_v55  ;;  %v5627_v2 = vor.u32 %v7748_v59, %v5626_v58  ;;  %v7697_v3 = vld [vmem:[#allocation5 + $0x148] sm:$0xf0]  ;;  %v5614_v55 = vld [vmem:[#allocation5 + $0x2c0] sm:$0xf] }
 0x18d   :  { %4652 = vmatpush.bf16.msrb.mxu3 %v7507_v15  ;;  %v5446_v15 = vld [vmem:[#allocation5 + $0x170] sm:$0xf]  ;;  %v7471_v39 = vor.u32 %v8208_v6, %v7468_v8  ;;  %v7745_v6 = vld [vmem:[#allocation5 + $0x2c8] sm:$0xf0]  ;;  %v5423_v9 = vor.u32 %v7697_v3, %v5422_v0  ;;  %v7715_v58 = vld [vmem:[#allocation5 + $0x1d8] sm:$0xf0] }
 0x18e   :  { %4614 = vmatpush.bf16.msrb.mxu0 %v7207_v34  ;;  %v7751_v34 = vld [vmem:[#allocation5 + $0x2f8] sm:$0xf0]  ;;  %v5494_v57 = vld [vmem:[#allocation5 + $0x1d0] sm:$0xf]  ;;  %v5290_v0 = vld [vmem:[#allocation5 + $0x38] sm:$0xf] }
 0x18f   :  { %4627 = vmatpush.bf16.msrb.mxu1 %v7303_v40  ;;  %v5351_v40 = vor.u32 %v7679_v13, %v5350_v10  ;;  %v5314_v13 = vld [vmem:[#allocation5 + $0x68] sm:$0xf]  ;;  %v5590_v59 = vld [vmem:[#allocation5 + $0x290] sm:$0xf]  ;;  %v5386_v3 = vld [vmem:[#allocation5 + $0xf8] sm:$0xf] }
 0x190   :  { %4640 = vmatpush.bf16.msrb.mxu2 %v7399_v43  ;;  %v5447_v43 = vor.u32 %v7703_v1, %v5446_v15  ;;  %v7670_v15 = vld [vmem:[#allocation5 + $0x70] sm:$0xf0]  ;;  %v5615_v1 = vor.u32 %v7745_v6, %v5614_v55  ;;  %v5482_v55 = vld [vmem:[#allocation5 + $0x1b8] sm:$0xf]  ;;  %v7712_v6 = vld [vmem:[#allocation5 + $0x1c0] sm:$0xf0] }
 0x191   :  { %4653 = vmatpush.bf16.msrb.mxu3 %v7495_v51  ;;  %v5639_v51 = vor.u32 %v7751_v34, %v5638_v32  ;;  %v7742_v32 = vld [vmem:[#allocation5 + $0x2b0] sm:$0xf0]  ;;  %v5315_v34 = vor.u32 %v7670_v15, %v5314_v13  ;;  %v7736_v13 = vld [vmem:[#allocation5 + $0x280] sm:$0xf0] }
 0x192   :  { %4615 = vmatpush.bf16.msrb.mxu0 %v7195_v53  ;;  %v5339_v53 = vor.u32 %v7676_v48, %v5338_v47  ;;  %v7667_v47 = vld [vmem:[#allocation5 + $0x58] sm:$0xf0]  ;;  %v5398_v48 = vld [vmem:[#allocation5 + $0x110] sm:$0xf] }
 0x193   :  { %4628 = vmatpush.bf16.msrb.mxu1 %v7291_v62  ;;  %v5326_v62 = vld [vmem:[#allocation5 + $0x80] sm:$0xf] }
 0x194   :  { %4641 = vmatpush.bf16.msrb.mxu2 %v7387_v63  ;;  %v7673_v63 = vld [vmem:[#allocation5 + $0x88] sm:$0xf0] }
 0x195   :  { %4654 = vmatpush.bf16.msrb.mxu3 %v7483_v5  ;;  %v7721_v5 = vld [vmem:[#allocation5 + $0x208] sm:$0xf0]  ;;  %v5327_v8 = vor.u32 %v7673_v63, %v5326_v62  ;;  %v5399_v62 = vor.u32 %v7691_v56, %v5398_v48  ;;  %v5495_v63 = vor.u32 %v7715_v58, %v5494_v57  ;;  %v5362_v58 = vld [vmem:[#allocation5 + $0xc8] sm:$0xf] }
 0x196   :  { %4616 = vmatpush.bf16.msrb.mxu0 %v7183_v17  ;;  %v5519_v10 = vor.u32 %v7721_v5, %v5518_v4  ;;  %v5410_v17 = vld [vmem:[#allocation5 + $0x128] sm:$0xf]  ;;  %v7688_v5 = vld [vmem:[#allocation5 + $0x100] sm:$0xf0]  ;;  %v7733_v48 = vld [vmem:[#allocation5 + $0x268] sm:$0xf0] }
 0x197   :  { %4629 = vmatpush.bf16.msrb.mxu1 %v7279_v26  ;;  %v7718_v26 = vld [vmem:[#allocation5 + $0x1f0] sm:$0xf0] }
 0x198   :  { %4642 = vmatpush.bf16.msrb.mxu2 %v7375_v27  ;;  %v5602_v27 = vld [vmem:[#allocation5 + $0x2a8] sm:$0xf] }
 0x199   :  { %4655 = vmatpush.bf16.msrb.mxu3 %v7471_v39  ;;  %4617 = vmatmul.bf16.vlgmr.msrb.gmra.mxu0 %v8542_v7  ;;  %v4410_v39 = vpop.f32.mrf.mxu0  ;;  %v5603_v52 = vor.u32 %v7742_v32, %v5602_v27  ;;  %v7661_v27 = vld [vmem:[#allocation5 + $0x28] sm:$0xf0]  ;;  %v5374_v32 = vld [vmem:[#allocation5 + $0xe0] sm:$0xf] }
 0x19a   :  { %4661 = vmatpush.bf16.msra.mxu0 %v5351_v40  ;;  %4630 = vmatmul.bf16.vlgmr.msrb.gmra.mxu1 %v8546_v12  ;;  %v5411_v40 = vor.u32 %v7694_v21, %v5410_v17  ;;  %v4411_v50 = vadd.f32 %v4410_v39, %v8589_v36  ;;  %v5387_v21 = vor.u32 %v7688_v5, %v5386_v3  ;;  %v5734_v3 = vld [vmem:[#allocation5 + $0x3b0] sm:$0xf] }
 0x19b   :  { %4674 = vmatpush.bf16.msra.mxu1 %v5447_v43  ;;  %4643 = vmatmul.bf16.vlgmr.msrb.gmra.mxu2 %v8544_v11  ;;  %v5507_v43 = vor.u32 %v7718_v26, %v5506_v24  ;;  %v5483_v24 = vor.u32 %v7712_v6, %v5482_v55  ;;  %v5278_v26 = vld [vmem:[#allocation5 + $0x20] sm:$0xf]  ;;  %v7799_v55 = vld [vmem:[#allocation5 + $0x478] sm:$0xf0]  ;;  %v5926_v6 = vld [vmem:[#allocation5 + $0x530] sm:$0xf] }
 0x19c   :  { %4687 = vmatpush.bf16.msra.mxu2 %v5543_v14  ;;  %4656 = vmatmul.bf16.vlgmr.msrb.gmra.mxu3 %v8548_v16  ;;  %v5302_v14 = vld [vmem:[#allocation5 + $0x50] sm:$0xf] }
 0x19d   :  { %4700 = vmatpush.bf16.msra.mxu3 %v5639_v51  ;;  %v4423_v51 = vpop.f32.mrf.mxu1 }
 0x19e   :  { %4662 = vmatpush.bf16.msra.mxu0 %v5339_v53  ;;  %v7739_v53 = vld [vmem:[#allocation5 + $0x298] sm:$0xf0]  ;;  %v4436_v4 = vpop.f32.mrf.mxu2 }
 0x19f   :  { %4675 = vmatpush.bf16.msra.mxu1 %v5435_v60  ;;  %v4424_v60 = vadd.f32 %v4423_v51, %v4411_v50  ;;  %v5591_v36 = vor.u32 %v7739_v53, %v5590_v59  ;;  %v5279_v50 = vor.u32 %v7661_v27, %v5278_v26  ;;  %v5266_v51 = vld [vmem:[#allocation5 + $0x8] sm:$0xf]  ;;  %v7682_v59 = vld [vmem:[#allocation5 + $0xd0] sm:$0xf0]  ;;  %v5722_v27 = vld [vmem:[#allocation5 + $0x398] sm:$0xf] }
 0x1a0   :  { %4688 = vmatpush.bf16.msra.mxu2 %v5531_v61  ;;  %v5303_v61 = vor.u32 %v7667_v47, %v5302_v14  ;;  %v7709_v14 = vld [vmem:[#allocation5 + $0x1a8] sm:$0xf0]  ;;  %v5566_v47 = vld [vmem:[#allocation5 + $0x260] sm:$0xf]  ;;  %v5458_v53 = vld [vmem:[#allocation5 + $0x188] sm:$0xf] }
 0x1a1   :  { %4701 = vmatpush.bf16.msra.mxu3 %v5627_v2  ;;  %v7664_v2 = vld [vmem:[#allocation5 + $0x40] sm:$0xf0] }
 0x1a2   :  { %4663 = vmatpush.bf16.msra.mxu0 %v5327_v8  ;;  %v4437_v8 = vadd.f32 %v4436_v4, %v4424_v60  ;;  %v5291_v15 = vor.u32 %v7664_v2, %v5290_v0  ;;  %v7730_v0 = vld [vmem:[#allocation5 + $0x250] sm:$0xf0]  ;;  %v7775_v4 = vld [vmem:[#allocation5 + $0x3b8] sm:$0xf0] }
 0x1a3   :  { %4676 = vmatpush.bf16.msra.mxu1 %v5423_v9  ;;  %v4449_v9 = vpop.f32.mrf.mxu3 }
 0x1a4   :  { %4689 = vmatpush.bf16.msra.mxu2 %v5519_v10  ;;  %v5578_v10 = vld [vmem:[#allocation5 + $0x278] sm:$0xf]  ;;  %v8596_v17 = vadd.f32 %v4449_v9, %v4437_v8  ;;  %v7823_v8 = vld [vmem:[#allocation5 + $0x538] sm:$0xf0]  ;;  %v5363_v9 = vor.u32 %v7682_v59, %v5362_v58  ;;  %v5806_v58 = vld [vmem:[#allocation5 + $0x440] sm:$0xf] }
 0x1a5   :  { %4702 = vmatpush.bf16.msra.mxu3 %v5615_v1  ;;  %v4412_v1 = vpop.f32.mrf.mxu0  ;;  %v5579_v39 = vor.u32 %v7736_v13, %v5578_v10  ;;  %v6022_v13 = vld [vmem:[#allocation5 + $0x5f0] sm:$0xf]  ;;  %v5927_v26 = vor.u32 %v7823_v8, %v5926_v6  ;;  %v5890_v6 = vld [vmem:[#allocation5 + $0x4e8] sm:$0xf]  ;;  %v7814_v8 = vld [vmem:[#allocation5 + $0x4f0] sm:$0xf0] }
 0x1a6   :  { %4664 = vmatpush.bf16.msra.mxu0 %v5315_v34  ;;  %v4425_v34 = vpop.f32.mrf.mxu1  ;;  %v4438_v60 = vpop.f32.mrf.mxu2 }
 0x1a7   :  { %4677 = vmatpush.bf16.msra.mxu1 %v5411_v40  ;;  %v7685_v40 = vld [vmem:[#allocation5 + $0xe8] sm:$0xf0]  ;;  %v5818_v34 = vld [vmem:[#allocation5 + $0x458] sm:$0xf]  ;;  %v5902_v60 = vld [vmem:[#allocation5 + $0x500] sm:$0xf] }
 0x1a8   :  { %4690 = vmatpush.bf16.msra.mxu2 %v5507_v43  ;;  %v5470_v43 = vld [vmem:[#allocation5 + $0x1a0] sm:$0xf]  ;;  %v5375_v56 = vor.u32 %v7685_v40, %v5374_v32  ;;  %v7772_v32 = vld [vmem:[#allocation5 + $0x3a0] sm:$0xf0] }
 0x1a9   :  { %4703 = vmatpush.bf16.msra.mxu3 %v5603_v52  ;;  %v7658_v52 = vld [vmem:[#allocation5 + $0x10] sm:$0xf0]  ;;  %v5471_v57 = vor.u32 %v7709_v14, %v5470_v43  ;;  %v7796_v40 = vld [vmem:[#allocation5 + $0x460] sm:$0xf0]  ;;  %v5914_v43 = vld [vmem:[#allocation5 + $0x518] sm:$0xf] }
 0x1aa   :  { %4665 = vmatpush.bf16.msra.mxu0 %v5303_v61  ;;  %v5567_v61 = vor.u32 %v7733_v48, %v5566_v47  ;;  %v5267_v5 = vor.u32 %v7658_v52, %v5266_v51  ;;  %v7820_v14 = vld [vmem:[#allocation5 + $0x520] sm:$0xf0]  ;;  %v6010_v47 = vld [vmem:[#allocation5 + $0x5d8] sm:$0xf]  ;;  %v5819_v51 = vor.u32 %v7796_v40, %v5818_v34  ;;  %v7787_v34 = vld [vmem:[#allocation5 + $0x418] sm:$0xf0] }
 0x1ab   :  { %4678 = vmatpush.bf16.msra.mxu1 %v5399_v62  ;;  %v7706_v62 = vld [vmem:[#allocation5 + $0x190] sm:$0xf0]  ;;  %v4451_v2 = vpop.f32.mrf.mxu3  ;;  %v7844_v48 = vld [vmem:[#allocation5 + $0x5e0] sm:$0xf0]  ;;  %v5915_v52 = vor.u32 %v7820_v14, %v5914_v43  ;;  %v7811_v40 = vld [vmem:[#allocation5 + $0x4d8] sm:$0xf0] }
 0x1ac   :  { %4691 = vmatpush.bf16.msra.mxu2 %v5495_v63  ;;  %v5554_v63 = vld [vmem:[#allocation5 + $0x248] sm:$0xf]  ;;  %v5459_v10 = vor.u32 %v7706_v62, %v5458_v53  ;;  %v6011_v59 = vor.u32 %v7844_v48, %v6010_v47  ;;  %v7793_v53 = vld [vmem:[#allocation5 + $0x448] sm:$0xf0]  ;;  %v5998_v62 = vld [vmem:[#allocation5 + $0x5c0] sm:$0xf] }
 0x1ad   :  { %4704 = vmatpush.bf16.msra.mxu3 %v5591_v36  ;;  %v5830_v36 = vld [vmem:[#allocation5 + $0x470] sm:$0xf]  ;;  %v5555_v1 = vor.u32 %v7730_v0, %v5554_v63  ;;  %v7841_v63 = vld [vmem:[#allocation5 + $0x5c8] sm:$0xf0]  ;;  %v5807_v2 = vor.u32 %v7793_v53, %v5806_v58  ;;  %v7835_v14 = vld [vmem:[#allocation5 + $0x598] sm:$0xf0] }
 0x1ae   :  { %4666 = vmatpush.bf16.msra.mxu0 %v5291_v15  ;;  %v7847_v15 = vld [vmem:[#allocation5 + $0x5f8] sm:$0xf0]  ;;  %v5974_v43 = vld [vmem:[#allocation5 + $0x590] sm:$0xf]  ;;  %v7784_v58 = vld [vmem:[#allocation5 + $0x400] sm:$0xf0] }
 0x1af   :  { %4679 = vmatpush.bf16.msra.mxu1 %v5387_v21  ;;  %v5735_v21 = vor.u32 %v7775_v4, %v5734_v3  ;;  %v5698_v4 = vld [vmem:[#allocation5 + $0x368] sm:$0xf]  ;;  %v7808_v53 = vld [vmem:[#allocation5 + $0x4c0] sm:$0xf0] }
 0x1b0   :  { %4692 = vmatpush.bf16.msra.mxu2 %v5483_v24  ;;  %v5831_v24 = vor.u32 %v7799_v55, %v5830_v36  ;;  %v7766_v36 = vld [vmem:[#allocation5 + $0x370] sm:$0xf0]  ;;  %v5999_v55 = vor.u32 %v7841_v63, %v5998_v62  ;;  %v5962_v62 = vld [vmem:[#allocation5 + $0x578] sm:$0xf]  ;;  %v7832_v63 = vld [vmem:[#allocation5 + $0x580] sm:$0xf0] }
 0x1b1   :  { %4705 = vmatpush.bf16.msra.mxu3 %v5579_v39  ;;  %v6023_v39 = vor.u32 %v7847_v15, %v6022_v13  ;;  %v5699_v13 = vor.u32 %v7766_v36, %v5698_v4 }
 0x1b2   :  { %4667 = vmatpush.bf16.msra.mxu0 %v5279_v50  ;;  %v5723_v50 = vor.u32 %v7772_v32, %v5722_v27 }
 0x1b3   :  { %4680 = vmatpush.bf16.msra.mxu1 %v5375_v56  ;;  %v5710_v56 = vld [vmem:[#allocation5 + $0x380] sm:$0xf] }
 0x1b4   :  { %4693 = vmatpush.bf16.msra.mxu2 %v5471_v57  ;;  %v7769_v57 = vld [vmem:[#allocation5 + $0x388] sm:$0xf0] }
 0x1b5   :  { %4706 = vmatpush.bf16.msra.mxu3 %v5567_v61  ;;  %v7817_v61 = vld [vmem:[#allocation5 + $0x508] sm:$0xf0]  ;;  %v5711_v0 = vor.u32 %v7769_v57, %v5710_v56  ;;  %v5975_v56 = vor.u32 %v7835_v14, %v5974_v43  ;;  %v7826_v43 = vld [vmem:[#allocation5 + $0x550] sm:$0xf0] }
 0x1b6   :  { %4668 = vmatpush.bf16.msra.mxu0 %v5267_v5  ;;  %v5903_v3 = vor.u32 %v7817_v61, %v5902_v60  ;;  %v5794_v5 = vld [vmem:[#allocation5 + $0x428] sm:$0xf] }
 0x1b7   :  { %4681 = vmatpush.bf16.msra.mxu1 %v5363_v9  ;;  %v4462_v9 = vpop.f32.mrf.mxu0 }
 0x1b8   :  { %4694 = vmatpush.bf16.msra.mxu2 %v5459_v10  ;;  %v7838_v10 = vld [vmem:[#allocation5 + $0x5b0] sm:$0xf0] }
 0x1b9   :  { %4707 = vmatpush.bf16.msra.mxu3 %v5555_v1  ;;  %4669 = vmatmul.bf16.vlgmr.msra.gmra.mxu0 %v8482_v19  ;;  %v5986_v19 = vld [vmem:[#allocation5 + $0x5a8] sm:$0xf]  ;;  %v5891_v1 = vor.u32 %v7814_v8, %v5890_v6  ;;  %v5758_v6 = vld [vmem:[#allocation5 + $0x3e0] sm:$0xf]  ;;  %v5963_v8 = vor.u32 %v7832_v63, %v5962_v62 }
 0x1ba   :  { %4713 = vmatpush.bf16.msrb.mxu0 %v5735_v21  ;;  %4682 = vmatmul.bf16.vlgmr.msra.gmra.mxu1 %v8486_v22  ;;  %v4475_v22 = vpop.f32.mrf.mxu1  ;;  %v5686_v21 = vld [vmem:[#allocation5 + $0x350] sm:$0xf]  ;;  %v5987_v27 = vor.u32 %v7838_v10, %v5986_v19  ;;  %v5854_v19 = vld [vmem:[#allocation5 + $0x4a0] sm:$0xf]  ;;  %v7805_v10 = vld [vmem:[#allocation5 + $0x4a8] sm:$0xf0] }
 0x1bb   :  { %4726 = vmatpush.bf16.msrb.mxu1 %v5831_v24  ;;  %4695 = vmatmul.bf16.vlgmr.msra.gmra.mxu2 %v8480_v18  ;;  %v7790_v18 = vld [vmem:[#allocation5 + $0x430] sm:$0xf0]  ;;  %v7763_v24 = vld [vmem:[#allocation5 + $0x358] sm:$0xf0] }
 0x1bc   :  { %4739 = vmatpush.bf16.msrb.mxu2 %v5927_v26  ;;  %4708 = vmatmul.bf16.vlgmr.msra.gmra.mxu3 %v8484_v20  ;;  %v4463_v20 = vadd.f32 %v4462_v9, %v8596_v17  ;;  %v5795_v15 = vor.u32 %v7790_v18, %v5794_v5  ;;  %v5782_v26 = vld [vmem:[#allocation5 + $0x410] sm:$0xf]  ;;  %v5687_v47 = vor.u32 %v7763_v24, %v5686_v21  ;;  %v7757_v18 = vld [vmem:[#allocation5 + $0x328] sm:$0xf0] }
 0x1bd   :  { %4752 = vmatpush.bf16.msrb.mxu3 %v6023_v39  ;;  %v5878_v39 = vld [vmem:[#allocation5 + $0x4d0] sm:$0xf]  ;;  %v5783_v17 = vor.u32 %v7787_v34, %v5782_v26  ;;  %v7781_v9 = vld [vmem:[#allocation5 + $0x3e8] sm:$0xf0]  ;;  %v5855_v24 = vor.u32 %v7805_v10, %v5854_v19  ;;  %v5746_v26 = vld [vmem:[#allocation5 + $0x3c8] sm:$0xf] }
 0x1be   :  { %4714 = vmatpush.bf16.msrb.mxu0 %v5723_v50  ;;  %v4476_v32 = vadd.f32 %v4475_v22, %v4463_v20  ;;  %v5879_v48 = vor.u32 %v7811_v40, %v5878_v39  ;;  %v5674_v50 = vld [vmem:[#allocation5 + $0x338] sm:$0xf]  ;;  %v4488_v57 = vpop.f32.mrf.mxu2  ;;  %v5950_v20 = vld [vmem:[#allocation5 + $0x560] sm:$0xf]  ;;  %v5759_v21 = vor.u32 %v7781_v9, %v5758_v6  ;;  %v7802_v39 = vld [vmem:[#allocation5 + $0x490] sm:$0xf0] }
 0x1bf   :  { %4727 = vmatpush.bf16.msrb.mxu1 %v5819_v51  ;;  %v7760_v51 = vld [vmem:[#allocation5 + $0x340] sm:$0xf0]  ;;  %v4501_v61 = vpop.f32.mrf.mxu3  ;;  %v5938_v40 = vld [vmem:[#allocation5 + $0x548] sm:$0xf] }
 0x1c0   :  { %4740 = vmatpush.bf16.msrb.mxu2 %v5915_v52  ;;  %v5770_v52 = vld [vmem:[#allocation5 + $0x3f8] sm:$0xf]  ;;  %v4489_v60 = vadd.f32 %v4488_v57, %v4476_v32  ;;  %v5842_v32 = vld [vmem:[#allocation5 + $0x488] sm:$0xf]  ;;  %v7919_v57 = vld [vmem:[#allocation5 + $0x838] sm:$0xf0] }
 0x1c1   :  { %4753 = vmatpush.bf16.msrb.mxu3 %v6011_v59  ;;  %v5866_v59 = vld [vmem:[#allocation5 + $0x4b8] sm:$0xf]  ;;  %v5771_v36 = vor.u32 %v7784_v58, %v5770_v52  ;;  %v7895_v52 = vld [vmem:[#allocation5 + $0x778] sm:$0xf0]  ;;  %v7916_v6 = vld [vmem:[#allocation5 + $0x820] sm:$0xf0] }
 0x1c2   :  { %4715 = vmatpush.bf16.msrb.mxu0 %v5711_v0  ;;  %v4464_v0 = vpop.f32.mrf.mxu0  ;;  %v8603_v4 = vadd.f32 %v4501_v61, %v4489_v60  ;;  %v5867_v5 = vor.u32 %v7808_v53, %v5866_v59  ;;  %v5843_v59 = vor.u32 %v7802_v39, %v5842_v32  ;;  %v6406_v53 = vld [vmem:[#allocation5 + $0x8f0] sm:$0xf]  ;;  %v7943_v60 = vld [vmem:[#allocation5 + $0x8f8] sm:$0xf0]  ;;  %v5939_v61 = vor.u32 %v7826_v43, %v5938_v40  ;;  %v7940_v9 = vld [vmem:[#allocation5 + $0x8e0] sm:$0xf0] }
 0x1c3   :  { %4728 = vmatpush.bf16.msrb.mxu1 %v5807_v2  ;;  %v5675_v2 = vor.u32 %v7760_v51, %v5674_v50  ;;  %v7937_v32 = vld [vmem:[#allocation5 + $0x8c8] sm:$0xf0]  ;;  %v6082_v43 = vld [vmem:[#allocation5 + $0x668] sm:$0xf] }
 0x1c4   :  { %4741 = vmatpush.bf16.msrb.mxu2 %v5903_v3  ;;  %v4477_v3 = vpop.f32.mrf.mxu1 }
 0x1c5   :  { %4754 = vmatpush.bf16.msrb.mxu3 %v5999_v55  ;;  %v5662_v55 = vld [vmem:[#allocation5 + $0x320] sm:$0xf]  ;;  %v7868_v3 = vld [vmem:[#allocation5 + $0x6a0] sm:$0xf0] }
 0x1c6   :  { %4716 = vmatpush.bf16.msrb.mxu0 %v5699_v13  ;;  %v7829_v13 = vld [vmem:[#allocation5 + $0x568] sm:$0xf0]  ;;  %v5663_v22 = vor.u32 %v7757_v18, %v5662_v55  ;;  %v4490_v14 = vpop.f32.mrf.mxu2  ;;  %v7892_v55 = vld [vmem:[#allocation5 + $0x760] sm:$0xf0]  ;;  %v6298_v18 = vld [vmem:[#allocation5 + $0x818] sm:$0xf] }
 0x1c7   :  { %4729 = vmatpush.bf16.msrb.mxu1 %v5795_v15  ;;  %v5650_v15 = vld [vmem:[#allocation5 + $0x308] sm:$0xf]  ;;  %v5951_v34 = vor.u32 %v7829_v13, %v5950_v20  ;;  %v4503_v50 = vpop.f32.mrf.mxu3  ;;  %v6299_v20 = vor.u32 %v7916_v6, %v6298_v18  ;;  %v6094_v13 = vld [vmem:[#allocation5 + $0x680] sm:$0xf]  ;;  %v7862_v14 = vld [vmem:[#allocation5 + $0x670] sm:$0xf0] }
 0x1c8   :  { %4742 = vmatpush.bf16.msrb.mxu2 %v5891_v1  ;;  %v7754_v1 = vld [vmem:[#allocation5 + $0x310] sm:$0xf0]  ;;  %v6058_v18 = vld [vmem:[#allocation5 + $0x638] sm:$0xf]  ;;  %v7856_v6 = vld [vmem:[#allocation5 + $0x640] sm:$0xf0] }
 0x1c9   :  { %4755 = vmatpush.bf16.msrb.mxu3 %v5987_v27  ;;  %v7778_v27 = vld [vmem:[#allocation5 + $0x3d0] sm:$0xf0]  ;;  %v5651_v51 = vor.u32 %v7754_v1, %v5650_v15  ;;  %v6190_v15 = vld [vmem:[#allocation5 + $0x740] sm:$0xf] }
 0x1ca   :  { %4717 = vmatpush.bf16.msrb.mxu0 %v5687_v47  ;;  %v6118_v47 = vld [vmem:[#allocation5 + $0x6b0] sm:$0xf]  ;;  %v5747_v58 = vor.u32 %v7778_v27, %v5746_v26  ;;  %v7913_v26 = vld [vmem:[#allocation5 + $0x808] sm:$0xf0]  ;;  %v6382_v27 = vld [vmem:[#allocation5 + $0x8c0] sm:$0xf] }
 0x1cb   :  { %4730 = vmatpush.bf16.msrb.mxu1 %v5783_v17  ;;  %v7871_v17 = vld [vmem:[#allocation5 + $0x6b8] sm:$0xf0]  ;;  %v7910_v50 = vld [vmem:[#allocation5 + $0x7f0] sm:$0xf0] }
 0x1cc   :  { %4743 = vmatpush.bf16.msrb.mxu2 %v5879_v48  ;;  %v6214_v48 = vld [vmem:[#allocation5 + $0x770] sm:$0xf]  ;;  %v6119_v62 = vor.u32 %v7871_v17, %v6118_v47  ;;  %v6383_v47 = vor.u32 %v7937_v32, %v6382_v27  ;;  %v7886_v17 = vld [vmem:[#allocation5 + $0x730] sm:$0xf0] }
 0x1cd   :  { %4756 = vmatpush.bf16.msrb.mxu3 %v5975_v56  ;;  %v6310_v56 = vld [vmem:[#allocation5 + $0x830] sm:$0xf]  ;;  %v6215_v63 = vor.u32 %v7895_v52, %v6214_v48  ;;  %v6274_v48 = vld [vmem:[#allocation5 + $0x7e8] sm:$0xf]  ;;  %v7934_v52 = vld [vmem:[#allocation5 + $0x8b0] sm:$0xf0] }
 0x1ce   :  { %4718 = vmatpush.bf16.msrb.mxu0 %v5675_v2  ;;  %v6311_v0 = vor.u32 %v7919_v57, %v6310_v56  ;;  %v6106_v2 = vld [vmem:[#allocation5 + $0x698] sm:$0xf]  ;;  %v6083_v56 = vor.u32 %v7862_v14, %v6082_v43  ;;  %v7853_v43 = vld [vmem:[#allocation5 + $0x628] sm:$0xf0]  ;;  %v6142_v14 = vld [vmem:[#allocation5 + $0x6e0] sm:$0xf] }
 0x1cf   :  { %4731 = vmatpush.bf16.msrb.mxu1 %v5771_v36  ;;  %v6202_v36 = vld [vmem:[#allocation5 + $0x758] sm:$0xf]  ;;  %v6107_v19 = vor.u32 %v7868_v3, %v6106_v2  ;;  %v7907_v2 = vld [vmem:[#allocation5 + $0x7d8] sm:$0xf0]  ;;  %v6358_v3 = vld [vmem:[#allocation5 + $0x890] sm:$0xf] }
 0x1d0   :  { %4744 = vmatpush.bf16.msrb.mxu2 %v5867_v5  ;;  %v6407_v5 = vor.u32 %v7943_v60, %v6406_v53  ;;  %v6203_v10 = vor.u32 %v7892_v55, %v6202_v36  ;;  %v7859_v53 = vld [vmem:[#allocation5 + $0x658] sm:$0xf0]  ;;  %v6166_v60 = vld [vmem:[#allocation5 + $0x710] sm:$0xf] }
 0x1d1   :  { %4757 = vmatpush.bf16.msrb.mxu3 %v5963_v8  ;;  %v6394_v8 = vld [vmem:[#allocation5 + $0x8d8] sm:$0xf]  ;;  %v7931_v36 = vld [vmem:[#allocation5 + $0x898] sm:$0xf0] }
 0x1d2   :  { %4719 = vmatpush.bf16.msrb.mxu0 %v5663_v22  ;;  %v7865_v22 = vld [vmem:[#allocation5 + $0x688] sm:$0xf0]  ;;  %v6395_v1 = vor.u32 %v7940_v9, %v6394_v8  ;;  %v6154_v8 = vld [vmem:[#allocation5 + $0x6f8] sm:$0xf]  ;;  %v6359_v9 = vor.u32 %v7931_v36, %v6358_v3  ;;  %v6598_v3 = vld [vmem:[#allocation5 + $0xa70] sm:$0xf] }
 0x1d3   :  { %4732 = vmatpush.bf16.msrb.mxu1 %v5759_v21  ;;  %v7889_v21 = vld [vmem:[#allocation5 + $0x748] sm:$0xf0] }
 0x1d4   :  { %4745 = vmatpush.bf16.msrb.mxu2 %v5855_v24  ;;  %v6286_v24 = vld [vmem:[#allocation5 + $0x800] sm:$0xf]  ;;  %v6191_v39 = vor.u32 %v7889_v21, %v6190_v15  ;;  %v7928_v21 = vld [vmem:[#allocation5 + $0x880] sm:$0xf0] }
 0x1d5   :  { %4758 = vmatpush.bf16.msrb.mxu3 %v5951_v34  ;;  %v6095_v34 = vor.u32 %v7865_v22, %v6094_v13  ;;  %v6287_v40 = vor.u32 %v7913_v26, %v6286_v24  ;;  %v7904_v13 = vld [vmem:[#allocation5 + $0x7c0] sm:$0xf0]  ;;  %v6059_v26 = vor.u32 %v7856_v6, %v6058_v18  ;;  %v8015_v18 = vld [vmem:[#allocation5 + $0xb38] sm:$0xf0] }
 0x1d6   :  { %4720 = vmatpush.bf16.msrb.mxu0 %v5651_v51  ;;  %v4514_v51 = vpop.f32.mrf.mxu0 }
 0x1d7   :  { %4733 = vmatpush.bf16.msrb.mxu1 %v5747_v58  ;;  %v6275_v58 = vor.u32 %v7910_v50, %v6274_v48  ;;  %v7901_v48 = vld [vmem:[#allocation5 + $0x7a8] sm:$0xf0]  ;;  %v6334_v50 = vld [vmem:[#allocation5 + $0x860] sm:$0xf] }
 0x1d8   :  { %4746 = vmatpush.bf16.msrb.mxu2 %v5843_v59  ;;  %v6070_v59 = vld [vmem:[#allocation5 + $0x650] sm:$0xf] }
 0x1d9   :  { %4759 = vmatpush.bf16.msrb.mxu3 %v5939_v61  ;;  %4721 = vmatmul.bf16.vlgmr.msrb.gmra.mxu0 %v8494_v41  ;;  %v6370_v41 = vld [vmem:[#allocation5 + $0x8a8] sm:$0xf] }
 0x1da   :  { %4765 = vmatpush.bf16.msra.mxu0 %v6119_v62  ;;  %4734 = vmatmul.bf16.vlgmr.msrb.gmra.mxu1 %v8498_v44  ;;  %v4527_v44 = vpop.f32.mrf.mxu1  ;;  %v6371_v61 = vor.u32 %v7934_v52, %v6370_v41  ;;  %v6034_v52 = vld [vmem:[#allocation5 + $0x608] sm:$0xf] }
 0x1db   :  { %4778 = vmatpush.bf16.msra.mxu1 %v6215_v63  ;;  %4747 = vmatmul.bf16.vlgmr.msrb.gmra.mxu2 %v8492_v38  ;;  %v6178_v38 = vld [vmem:[#allocation5 + $0x728] sm:$0xf]  ;;  %v7883_v63 = vld [vmem:[#allocation5 + $0x718] sm:$0xf0] }
 0x1dc   :  { %4791 = vmatpush.bf16.msra.mxu2 %v6311_v0  ;;  %4760 = vmatmul.bf16.vlgmr.msrb.gmra.mxu3 %v8496_v42  ;;  %v4515_v42 = vadd.f32 %v4514_v51, %v8603_v4  ;;  %v6179_v57 = vor.u32 %v7886_v17, %v6178_v38  ;;  %v6262_v0 = vld [vmem:[#allocation5 + $0x7d0] sm:$0xf]  ;;  %v6167_v4 = vor.u32 %v7883_v63, %v6166_v60  ;;  %v6238_v17 = vld [vmem:[#allocation5 + $0x7a0] sm:$0xf]  ;;  %v7925_v51 = vld [vmem:[#allocation5 + $0x868] sm:$0xf0] }
 0x1dd   :  { %4804 = vmatpush.bf16.msra.mxu3 %v6407_v5  ;;  %v6071_v5 = vor.u32 %v7859_v53, %v6070_v59  ;;  %v6263_v55 = vor.u32 %v7907_v2, %v6262_v0  ;;  %v6226_v59 = vld [vmem:[#allocation5 + $0x788] sm:$0xf]  ;;  %v6335_v53 = vor.u32 %v7925_v51, %v6334_v50  ;;  %v7898_v60 = vld [vmem:[#allocation5 + $0x790] sm:$0xf0]  ;;  %v6502_v0 = vld [vmem:[#allocation5 + $0x9b0] sm:$0xf] }
 0x1de   :  { %4766 = vmatpush.bf16.msra.mxu0 %v6107_v19  ;;  %v4528_v62 = vadd.f32 %v4527_v44, %v4515_v42  ;;  %v4540_v19 = vpop.f32.mrf.mxu2  ;;  %v4516_v24 = vpop.f32.mrf.mxu0  ;;  %v7850_v42 = vld [vmem:[#allocation5 + $0x610] sm:$0xf0]  ;;  %v6239_v44 = vor.u32 %v7901_v48, %v6238_v17  ;;  %v7967_v2 = vld [vmem:[#allocation5 + $0x9b8] sm:$0xf0]  ;;  %v7961_v17 = vld [vmem:[#allocation5 + $0x988] sm:$0xf0] }
 0x1df   :  { %4779 = vmatpush.bf16.msra.mxu1 %v6203_v10  ;;  %v7880_v10 = vld [vmem:[#allocation5 + $0x700] sm:$0xf0]  ;;  %v4553_v15 = vpop.f32.mrf.mxu3  ;;  %v6574_v48 = vld [vmem:[#allocation5 + $0xa40] sm:$0xf]  ;;  %v7985_v51 = vld [vmem:[#allocation5 + $0xa48] sm:$0xf0] }
 0x1e0   :  { %4792 = vmatpush.bf16.msra.mxu2 %v6299_v20  ;;  %v6250_v20 = vld [vmem:[#allocation5 + $0x7b8] sm:$0xf]  ;;  %v4541_v22 = vadd.f32 %v4540_v19, %v4528_v62  ;;  %v7922_v62 = vld [vmem:[#allocation5 + $0x850] sm:$0xf0]  ;;  %v8039_v19 = vld [vmem:[#allocation5 + $0xbf8] sm:$0xf0] }
 0x1e1   :  { %4805 = vmatpush.bf16.msra.mxu3 %v6395_v1  ;;  %v6346_v1 = vld [vmem:[#allocation5 + $0x878] sm:$0xf] }
 0x1e2   :  { %4767 = vmatpush.bf16.msra.mxu0 %v6095_v34  ;;  %v4529_v27 = vpop.f32.mrf.mxu1  ;;  %v8610_v32 = vadd.f32 %v4553_v15, %v4541_v22  ;;  %v6155_v34 = vor.u32 %v7880_v10, %v6154_v8  ;;  %v6347_v38 = vor.u32 %v7928_v21, %v6346_v1  ;;  %v6227_v8 = vor.u32 %v7898_v60, %v6226_v59  ;;  %v6490_v15 = vld [vmem:[#allocation5 + $0x998] sm:$0xf]  ;;  %v7964_v1 = vld [vmem:[#allocation5 + $0x9a0] sm:$0xf0]  ;;  %v6466_v59 = vld [vmem:[#allocation5 + $0x968] sm:$0xf] }
 0x1e3   :  { %4780 = vmatpush.bf16.msra.mxu1 %v6191_v39  ;;  %v6251_v39 = vor.u32 %v7904_v13, %v6250_v20  ;;  %v6503_v20 = vor.u32 %v7967_v2, %v6502_v0  ;;  %v6586_v21 = vld [vmem:[#allocation5 + $0xa58] sm:$0xf]  ;;  %v8030_v0 = vld [vmem:[#allocation5 + $0xbb0] sm:$0xf0] }
 0x1e4   :  { %4793 = vmatpush.bf16.msra.mxu2 %v6287_v40  ;;  %v6046_v40 = vld [vmem:[#allocation5 + $0x620] sm:$0xf]  ;;  %v6682_v27 = vld [vmem:[#allocation5 + $0xb18] sm:$0xf] }
 0x1e5   :  { %4806 = vmatpush.bf16.msra.mxu3 %v6383_v47  ;;  %v7877_v47 = vld [vmem:[#allocation5 + $0x6e8] sm:$0xf0]  ;;  %v6047_v41 = vor.u32 %v7853_v43, %v6046_v40  ;;  %v8036_v40 = vld [vmem:[#allocation5 + $0xbe0] sm:$0xf0]  ;;  %v6491_v43 = vor.u32 %v7964_v1, %v6490_v15  ;;  %v6442_v1 = vld [vmem:[#allocation5 + $0x938] sm:$0xf] }
 0x1e6   :  { %4768 = vmatpush.bf16.msra.mxu0 %v6083_v56  ;;  %v6143_v56 = vor.u32 %v7877_v47, %v6142_v14  ;;  %v4542_v63 = vpop.f32.mrf.mxu2  ;;  %v6478_v47 = vld [vmem:[#allocation5 + $0x980] sm:$0xf] }
 0x1e7   :  { %4781 = vmatpush.bf16.msra.mxu1 %v6179_v57  ;;  %v6130_v57 = vld [vmem:[#allocation5 + $0x6c8] sm:$0xf]  ;;  %v4555_v36 = vpop.f32.mrf.mxu3 }
 0x1e8   :  { %4794 = vmatpush.bf16.msra.mxu2 %v6275_v58  ;;  %v7874_v58 = vld [vmem:[#allocation5 + $0x6d0] sm:$0xf0] }
 0x1e9   :  { %4807 = vmatpush.bf16.msra.mxu3 %v6371_v61  ;;  %v6322_v61 = vld [vmem:[#allocation5 + $0x848] sm:$0xf]  ;;  %v6131_v6 = vor.u32 %v7874_v58, %v6130_v57  ;;  %v6575_v57 = vor.u32 %v7985_v51, %v6574_v48 }
 0x1ea   :  { %4769 = vmatpush.bf16.msra.mxu0 %v6071_v5  ;;  %v6035_v5 = vor.u32 %v7850_v42, %v6034_v52  ;;  %v6323_v10 = vor.u32 %v7922_v62, %v6322_v61  ;;  %v8009_v52 = vld [vmem:[#allocation5 + $0xb08] sm:$0xf0]  ;;  %v6766_v42 = vld [vmem:[#allocation5 + $0xbc0] sm:$0xf]  ;;  %v7982_v61 = vld [vmem:[#allocation5 + $0xa30] sm:$0xf0] }
 0x1eb   :  { %4782 = vmatpush.bf16.msra.mxu1 %v6167_v4  ;;  %v7991_v4 = vld [vmem:[#allocation5 + $0xa78] sm:$0xf0]  ;;  %v6658_v62 = vld [vmem:[#allocation5 + $0xae8] sm:$0xf] }
 0x1ec   :  { %4795 = vmatpush.bf16.msra.mxu2 %v6263_v55  ;;  %v6694_v55 = vld [vmem:[#allocation5 + $0xb30] sm:$0xf]  ;;  %v6599_v13 = vor.u32 %v7991_v4, %v6598_v3 }
 0x1ed   :  { %4808 = vmatpush.bf16.msra.mxu3 %v6359_v9  ;;  %v6790_v9 = vld [vmem:[#allocation5 + $0xbf0] sm:$0xf]  ;;  %v6695_v22 = vor.u32 %v8015_v18, %v6694_v55  ;;  %v7955_v55 = vld [vmem:[#allocation5 + $0x958] sm:$0xf0] }
 0x1ee   :  { %4770 = vmatpush.bf16.msra.mxu0 %v6059_v26  ;;  %v6791_v24 = vor.u32 %v8039_v19, %v6790_v9  ;;  %v7988_v26 = vld [vmem:[#allocation5 + $0xa60] sm:$0xf0]  ;;  %v6454_v4 = vld [vmem:[#allocation5 + $0x950] sm:$0xf]  ;;  %v7979_v9 = vld [vmem:[#allocation5 + $0xa18] sm:$0xf0] }
 0x1ef   :  { %4783 = vmatpush.bf16.msra.mxu1 %v6155_v34  ;;  %v8012_v34 = vld [vmem:[#allocation5 + $0xb20] sm:$0xf0]  ;;  %v6587_v14 = vor.u32 %v7988_v26, %v6586_v21  ;;  %v6550_v18 = vld [vmem:[#allocation5 + $0xa10] sm:$0xf] }
 0x1f0   :  { %4796 = vmatpush.bf16.msra.mxu2 %v6251_v39  ;;  %v6778_v39 = vld [vmem:[#allocation5 + $0xbd8] sm:$0xf]  ;;  %v6646_v19 = vld [vmem:[#allocation5 + $0xad0] sm:$0xf]  ;;  %v7952_v21 = vld [vmem:[#allocation5 + $0x940] sm:$0xf0] }
 0x1f1   :  { %4809 = vmatpush.bf16.msra.mxu3 %v6347_v38  ;;  %v6683_v38 = vor.u32 %v8012_v34, %v6682_v27  ;;  %v6779_v50 = vor.u32 %v8036_v40, %v6778_v39  ;;  %v7976_v34 = vld [vmem:[#allocation5 + $0xa00] sm:$0xf0]  ;;  %v6634_v39 = vld [vmem:[#allocation5 + $0xab8] sm:$0xf]  ;;  %v6443_v48 = vor.u32 %v7952_v21, %v6442_v1  ;;  %v8135_v1 = vld [vmem:[#allocation5 + $0xef8] sm:$0xf0] }
 0x1f2   :  { %4771 = vmatpush.bf16.msra.mxu0 %v6047_v41  ;;  %v6670_v41 = vld [vmem:[#allocation5 + $0xb00] sm:$0xf]  ;;  %v8000_v40 = vld [vmem:[#allocation5 + $0xac0] sm:$0xf0] }
 0x1f3   :  { %4784 = vmatpush.bf16.msra.mxu1 %v6143_v56  ;;  %v8033_v56 = vld [vmem:[#allocation5 + $0xbc8] sm:$0xf0]  ;;  %v6671_v58 = vor.u32 %v8009_v52, %v6670_v41  ;;  %v6635_v52 = vor.u32 %v8000_v40, %v6634_v39  ;;  %v8060_v39 = vld [vmem:[#allocation5 + $0xca0] sm:$0xf0]  ;;  %v6970_v40 = vld [vmem:[#allocation5 + $0xd58] sm:$0xf] }
 0x1f4   :  { %4797 = vmatpush.bf16.msra.mxu2 %v6239_v44  ;;  %v6479_v44 = vor.u32 %v7961_v17, %v6478_v47  ;;  %v6767_v60 = vor.u32 %v8033_v56, %v6766_v42  ;;  %v8024_v47 = vld [vmem:[#allocation5 + $0xb80] sm:$0xf0]  ;;  %v6430_v42 = vld [vmem:[#allocation5 + $0x920] sm:$0xf]  ;;  %v7949_v56 = vld [vmem:[#allocation5 + $0x928] sm:$0xf0] }
 0x1f5   :  { %4810 = vmatpush.bf16.msra.mxu3 %v6335_v53  ;;  %v6562_v53 = vld [vmem:[#allocation5 + $0xa28] sm:$0xf] }
 0x1f6   :  { %4772 = vmatpush.bf16.msra.mxu0 %v6035_v5  ;;  %v4566_v63 = vpop.f32.mrf.mxu0  ;;  %v6563_v36 = vor.u32 %v7982_v61, %v6562_v53  ;;  %v6718_v53 = vld [vmem:[#allocation5 + $0xb60] sm:$0xf]  ;;  %v6431_v61 = vor.u32 %v7949_v56, %v6430_v42  ;;  %v8057_v56 = vld [vmem:[#allocation5 + $0xc88] sm:$0xf0] }
 0x1f7   :  { %4785 = vmatpush.bf16.msra.mxu1 %v6131_v6  ;;  %v4579_v3 = vpop.f32.mrf.mxu1  ;;  %v6862_v42 = vld [vmem:[#allocation5 + $0xc80] sm:$0xf] }
 0x1f8   :  { %4798 = vmatpush.bf16.msra.mxu2 %v6227_v8 }
 0x1f9   :  { %4811 = vmatpush.bf16.msra.mxu3 %v6323_v10  ;;  %4773 = vmatmul.bf16.vlgmr.msra.gmra.mxu0 %v8504_v25  ;;  %v7958_v25 = vld [vmem:[#allocation5 + $0x970] sm:$0xf0]  ;;  %v8003_v10 = vld [vmem:[#allocation5 + $0xad8] sm:$0xf0] }
 0x1fa   :  { %4817 = vmatpush.bf16.msrb.mxu0 %v6503_v20  ;;  %4786 = vmatmul.bf16.vlgmr.msra.gmra.mxu1 %v8508_v30  ;;  %v6754_v30 = vld [vmem:[#allocation5 + $0xba8] sm:$0xf]  ;;  %v6467_v2 = vor.u32 %v7958_v25, %v6466_v59  ;;  %v6742_v20 = vld [vmem:[#allocation5 + $0xb90] sm:$0xf]  ;;  %v6647_v15 = vor.u32 %v8003_v10, %v6646_v19  ;;  %v6622_v59 = vld [vmem:[#allocation5 + $0xaa0] sm:$0xf] }
 0x1fb   :  { %4830 = vmatpush.bf16.msrb.mxu1 %v6599_v13  ;;  %4799 = vmatmul.bf16.vlgmr.msra.gmra.mxu2 %v8506_v29  ;;  %v8006_v29 = vld [vmem:[#allocation5 + $0xaf0] sm:$0xf0]  ;;  %v6755_v6 = vor.u32 %v8030_v0, %v6754_v30  ;;  %v8027_v13 = vld [vmem:[#allocation5 + $0xb98] sm:$0xf0]  ;;  %v7997_v25 = vld [vmem:[#allocation5 + $0xaa8] sm:$0xf0] }
 0x1fc   :  { %4843 = vmatpush.bf16.msrb.mxu2 %v6695_v22  ;;  %4812 = vmatmul.bf16.vlgmr.msra.gmra.mxu3 %v8510_v33  ;;  %v4567_v33 = vadd.f32 %v4566_v63, %v8610_v32  ;;  %v6659_v5 = vor.u32 %v8006_v29, %v6658_v62  ;;  %v6455_v22 = vor.u32 %v7955_v55, %v6454_v4  ;;  %v6418_v62 = vld [vmem:[#allocation5 + $0x908] sm:$0xf]  ;;  %v7946_v29 = vld [vmem:[#allocation5 + $0x910] sm:$0xf0]  ;;  %v8087_v10 = vld [vmem:[#allocation5 + $0xd78] sm:$0xf0] }
 0x1fd   :  { %4856 = vmatpush.bf16.msrb.mxu3 %v6791_v24  ;;  %v6551_v32 = vor.u32 %v7979_v9, %v6550_v18  ;;  %v6538_v24 = vld [vmem:[#allocation5 + $0x9f8] sm:$0xf]  ;;  %v6743_v26 = vor.u32 %v8027_v13, %v6742_v20  ;;  %v6623_v30 = vor.u32 %v7997_v25, %v6622_v59  ;;  %v6514_v0 = vld [vmem:[#allocation5 + $0x9c8] sm:$0xf]  ;;  %v8018_v4 = vld [vmem:[#allocation5 + $0xb50] sm:$0xf0]  ;;  %v6419_v19 = vor.u32 %v7946_v29, %v6418_v62 }
 0x1fe   :  { %4818 = vmatpush.bf16.msrb.mxu0 %v6491_v43  ;;  %v4580_v8 = vadd.f32 %v4579_v3, %v4567_v33  ;;  %v4592_v27 = vpop.f32.mrf.mxu2  ;;  %v4568_v17 = vpop.f32.mrf.mxu0  ;;  %v6539_v41 = vor.u32 %v7976_v34, %v6538_v24  ;;  %v7970_v33 = vld [vmem:[#allocation5 + $0x9d0] sm:$0xf0]  ;;  %v6886_v18 = vld [vmem:[#allocation5 + $0xcb0] sm:$0xf]  ;;  %v8111_v13 = vld [vmem:[#allocation5 + $0xe38] sm:$0xf0] }
 0x1ff   :  { %4831 = vmatpush.bf16.msrb.mxu1 %v6587_v14  ;;  %v4605_v14 = vpop.f32.mrf.mxu3  ;;  %v7078_v20 = vld [vmem:[#allocation5 + $0xe30] sm:$0xf]  ;;  %v6874_v34 = vld [vmem:[#allocation5 + $0xc98] sm:$0xf]  ;;  %v7054_v59 = vld [vmem:[#allocation5 + $0xe00] sm:$0xf] }
 0x200   :  { %4844 = vmatpush.bf16.msrb.mxu2 %v6683_v38  ;;  %v4593_v43 = vadd.f32 %v4592_v27, %v4580_v8  ;;  %v6730_v38 = vld [vmem:[#allocation5 + $0xb78] sm:$0xf]  ;;  %v6982_v8 = vld [vmem:[#allocation5 + $0xd70] sm:$0xf]  ;;  %v7079_v27 = vor.u32 %v8111_v13, %v7078_v20  ;;  %v8105_v25 = vld [vmem:[#allocation5 + $0xe08] sm:$0xf0] }
 0x201   :  { %4857 = vmatpush.bf16.msrb.mxu3 %v6779_v50  ;;  %v4581_v50 = vpop.f32.mrf.mxu1  ;;  %v7162_v17 = vld [vmem:[#allocation5 + $0xed8] sm:$0xf]  ;;  %v7055_v29 = vor.u32 %v8105_v25, %v7054_v59  ;;  %v8075_v20 = vld [vmem:[#allocation5 + $0xd18] sm:$0xf0]  ;;  %v7030_v13 = vld [vmem:[#allocation5 + $0xdd0] sm:$0xf] }
 0x202   :  { %4819 = vmatpush.bf16.msrb.mxu0 %v6479_v44  ;;  %v8617_v51 = vadd.f32 %v4605_v14, %v4593_v43  ;;  %v6526_v44 = vld [vmem:[#allocation5 + $0x9e0] sm:$0xf]  ;;  %v8084_v14 = vld [vmem:[#allocation5 + $0xd60] sm:$0xf0]  ;;  %v6875_v50 = vor.u32 %v8060_v39, %v6874_v34 }
 0x203   :  { %4832 = vmatpush.bf16.msrb.mxu1 %v6575_v57  ;;  %v6731_v57 = vor.u32 %v8024_v47, %v6730_v38  ;;  %v7066_v38 = vld [vmem:[#allocation5 + $0xe18] sm:$0xf]  ;;  %v8108_v47 = vld [vmem:[#allocation5 + $0xe20] sm:$0xf0]  ;;  %v6910_v59 = vld [vmem:[#allocation5 + $0xce0] sm:$0xf] }
 0x204   :  { %4845 = vmatpush.bf16.msrb.mxu2 %v6671_v58  ;;  %v7973_v58 = vld [vmem:[#allocation5 + $0x9e8] sm:$0xf0] }
 0x205   :  { %4858 = vmatpush.bf16.msrb.mxu3 %v6767_v60  ;;  %v8021_v60 = vld [vmem:[#allocation5 + $0xb68] sm:$0xf0]  ;;  %v6527_v63 = vor.u32 %v7973_v58, %v6526_v44  ;;  %v6958_v44 = vld [vmem:[#allocation5 + $0xd40] sm:$0xf] }
 0x206   :  { %4820 = vmatpush.bf16.msrb.mxu0 %v6467_v2  ;;  %v6610_v2 = vld [vmem:[#allocation5 + $0xa88] sm:$0xf]  ;;  %v6719_v3 = vor.u32 %v8021_v60, %v6718_v53  ;;  %v4594_v55 = vpop.f32.mrf.mxu2  ;;  %v8081_v58 = vld [vmem:[#allocation5 + $0xd48] sm:$0xf0]  ;;  %v7150_v53 = vld [vmem:[#allocation5 + $0xec0] sm:$0xf] }
 0x207   :  { %4833 = vmatpush.bf16.msrb.mxu1 %v6563_v36  ;;  %v7994_v36 = vld [vmem:[#allocation5 + $0xa90] sm:$0xf0]  ;;  %v4607_v9 = vpop.f32.mrf.mxu3  ;;  %v8129_v60 = vld [vmem:[#allocation5 + $0xec8] sm:$0xf0]  ;;  %v6959_v62 = vor.u32 %v8081_v58, %v6958_v44 }
 0x208   :  { %4846 = vmatpush.bf16.msrb.mxu2 %v6659_v5  ;;  %v6706_v5 = vld [vmem:[#allocation5 + $0xb48] sm:$0xf]  ;;  %v6934_v9 = vld [vmem:[#allocation5 + $0xd10] sm:$0xf]  ;;  %v8045_v58 = vld [vmem:[#allocation5 + $0xc28] sm:$0xf0] }
 0x209   :  { %4859 = vmatpush.bf16.msrb.mxu3 %v6755_v6  ;;  %v8063_v6 = vld [vmem:[#allocation5 + $0xcb8] sm:$0xf0]  ;;  %v6707_v21 = vor.u32 %v8018_v4, %v6706_v5 }
 0x20a   :  { %4821 = vmatpush.bf16.msrb.mxu0 %v6455_v22  ;;  %v6515_v22 = vor.u32 %v7970_v33, %v6514_v0  ;;  %v6887_v24 = vor.u32 %v8063_v6, %v6886_v18  ;;  %v7151_v0 = vor.u32 %v8129_v60, %v7150_v53  ;;  %v8078_v33 = vld [vmem:[#allocation5 + $0xd30] sm:$0xf0]  ;;  %v6838_v6 = vld [vmem:[#allocation5 + $0xc50] sm:$0xf]  ;;  %v8069_v53 = vld [vmem:[#allocation5 + $0xce8] sm:$0xf0] }
 0x20b   :  { %4834 = vmatpush.bf16.msrb.mxu1 %v6551_v32  ;;  %v6611_v32 = vor.u32 %v7994_v36, %v6610_v2  ;;  %v7042_v2 = vld [vmem:[#allocation5 + $0xde8] sm:$0xf]  ;;  %v8126_v36 = vld [vmem:[#allocation5 + $0xeb0] sm:$0xf0]  ;;  %v7006_v60 = vld [vmem:[#allocation5 + $0xda0] sm:$0xf] }
 0x20c   :  { %4847 = vmatpush.bf16.msrb.mxu2 %v6647_v15  ;;  %v7174_v15 = vld [vmem:[#allocation5 + $0xef0] sm:$0xf] }
 0x20d   :  { %4860 = vmatpush.bf16.msrb.mxu3 %v6743_v26  ;;  %v6983_v26 = vor.u32 %v8087_v10, %v6982_v8  ;;  %v7175_v43 = vor.u32 %v8135_v1, %v7174_v15  ;;  %v8051_v8 = vld [vmem:[#allocation5 + $0xc58] sm:$0xf0] }
 0x20e   :  { %4822 = vmatpush.bf16.msrb.mxu0 %v6443_v48  ;;  %v8132_v48 = vld [vmem:[#allocation5 + $0xee0] sm:$0xf0]  ;;  %v8123_v15 = vld [vmem:[#allocation5 + $0xe98] sm:$0xf0]  ;;  %v6839_v1 = vor.u32 %v8051_v8, %v6838_v6  ;;  %v7366_v6 = vld [vmem:[#allocation5 + $0x1070] sm:$0xf] }
 0x20f   :  { %4835 = vmatpush.bf16.msrb.mxu1 %v6539_v41  ;;  %v6971_v41 = vor.u32 %v8084_v14, %v6970_v40  ;;  %v8072_v40 = vld [vmem:[#allocation5 + $0xd00] sm:$0xf0] }
 0x210   :  { %4848 = vmatpush.bf16.msrb.mxu2 %v6635_v52  ;;  %v7067_v52 = vor.u32 %v8108_v47, %v7066_v38  ;;  %v8096_v14 = vld [vmem:[#allocation5 + $0xdc0] sm:$0xf0] }
 0x211   :  { %4861 = vmatpush.bf16.msrb.mxu3 %v6731_v57  ;;  %v7163_v57 = vor.u32 %v8132_v48, %v7162_v17  ;;  %v7114_v17 = vld [vmem:[#allocation5 + $0xe78] sm:$0xf]  ;;  %v8120_v48 = vld [vmem:[#allocation5 + $0xe80] sm:$0xf0] }
 0x212   :  { %4823 = vmatpush.bf16.msrb.mxu0 %v6431_v61  ;;  %v6863_v61 = vor.u32 %v8057_v56, %v6862_v42  ;;  %v7115_v25 = vor.u32 %v8120_v48, %v7114_v17 }
 0x213   :  { %4836 = vmatpush.bf16.msrb.mxu1 %v6527_v63  ;;  %v6850_v63 = vld [vmem:[#allocation5 + $0xc68] sm:$0xf] }
 0x214   :  { %4849 = vmatpush.bf16.msrb.mxu2 %v6623_v30  ;;  %v6946_v30 = vld [vmem:[#allocation5 + $0xd28] sm:$0xf] }
 0x215   :  { %4862 = vmatpush.bf16.msrb.mxu3 %v6719_v3  ;;  %v6947_v55 = vor.u32 %v8078_v33, %v6946_v30  ;;  %v8042_v30 = vld [vmem:[#allocation5 + $0xc10] sm:$0xf0] }
 0x216   :  { %4824 = vmatpush.bf16.msrb.mxu0 %v6419_v19  ;;  %v4618_v3 = vpop.f32.mrf.mxu0 }
 0x217   :  { %4837 = vmatpush.bf16.msrb.mxu1 %v6515_v22  ;;  %v4631_v4 = vpop.f32.mrf.mxu1  ;;  %v8099_v22 = vld [vmem:[#allocation5 + $0xdd8] sm:$0xf0] }
 0x218   :  { %4850 = vmatpush.bf16.msrb.mxu2 %v6611_v32  ;;  %v7126_v32 = vld [vmem:[#allocation5 + $0xe90] sm:$0xf] }
 0x219   :  { %4863 = vmatpush.bf16.msrb.mxu3 %v6707_v21  ;;  %4825 = vmatmul.bf16.vlgmr.msrb.gmra.mxu0 %v8516_v23  ;;  %v8054_v23 = vld [vmem:[#allocation5 + $0xc70] sm:$0xf0]  ;;  %v7031_v21 = vor.u32 %v8099_v22, %v7030_v13  ;;  %v7127_v34 = vor.u32 %v8123_v15, %v7126_v32  ;;  %v7558_v32 = vld [vmem:[#allocation5 + $0x11f0] sm:$0xf]  ;;  %v8231_v15 = vld [vmem:[#allocation5 + $0x11f8] sm:$0xf0] }
 0x21a   :  { %4869 = vmatpush.bf16.msra.mxu0 %v6887_v24  ;;  %4838 = vmatmul.bf16.vlgmr.msrb.gmra.mxu1 %v8520_v31  ;;  %v7138_v31 = vld [vmem:[#allocation5 + $0xea8] sm:$0xf]  ;;  %v6851_v5 = vor.u32 %v8054_v23, %v6850_v63  ;;  %v6826_v24 = vld [vmem:[#allocation5 + $0xc38] sm:$0xf] }
 0x21b   :  { %4882 = vmatpush.bf16.msra.mxu1 %v6983_v26  ;;  %4851 = vmatmul.bf16.vlgmr.msrb.gmra.mxu2 %v8518_v28  ;;  %v8102_v28 = vld [vmem:[#allocation5 + $0xdf0] sm:$0xf0]  ;;  %v7139_v19 = vor.u32 %v8126_v36, %v7138_v31  ;;  %v8048_v26 = vld [vmem:[#allocation5 + $0xc40] sm:$0xf0]  ;;  %v6802_v23 = vld [vmem:[#allocation5 + $0xc08] sm:$0xf] }
 0x21c   :  { %4895 = vmatpush.bf16.msra.mxu2 %v7079_v27  ;;  %4864 = vmatmul.bf16.vlgmr.msrb.gmra.mxu3 %v8522_v35  ;;  %v4619_v35 = vadd.f32 %v4618_v3, %v8617_v51  ;;  %v7043_v18 = vor.u32 %v8102_v28, %v7042_v2  ;;  %v6935_v51 = vor.u32 %v8075_v20, %v6934_v9  ;;  %v6922_v27 = vld [vmem:[#allocation5 + $0xcf8] sm:$0xf]  ;;  %v6898_v2 = vld [vmem:[#allocation5 + $0xcc8] sm:$0xf]  ;;  %v8066_v28 = vld [vmem:[#allocation5 + $0xcd0] sm:$0xf0] }
 0x21d   :  { %4908 = vmatpush.bf16.msra.mxu3 %v7175_v43  ;;  %v7018_v43 = vld [vmem:[#allocation5 + $0xdb8] sm:$0xf]  ;;  %v6923_v56 = vor.u32 %v8072_v40, %v6922_v27  ;;  %v6994_v3 = vld [vmem:[#allocation5 + $0xd88] sm:$0xf]  ;;  %v8090_v36 = vld [vmem:[#allocation5 + $0xd90] sm:$0xf0]  ;;  %v6803_v9 = vor.u32 %v8042_v30, %v6802_v23  ;;  %v6899_v13 = vor.u32 %v8066_v28, %v6898_v2 }
 0x21e   :  { %4870 = vmatpush.bf16.msra.mxu0 %v6875_v50  ;;  %v4632_v10 = vadd.f32 %v4631_v4, %v4619_v35  ;;  %v4644_v39 = vpop.f32.mrf.mxu2  ;;  %v4620_v50 = vpop.f32.mrf.mxu0  ;;  %v7019_v44 = vor.u32 %v8096_v14, %v7018_v43  ;;  %v7090_v35 = vld [vmem:[#allocation5 + $0xe48] sm:$0xf]  ;;  %v8207_v20 = vld [vmem:[#allocation5 + $0x1138] sm:$0xf0]  ;;  %v6995_v22 = vor.u32 %v8090_v36, %v6994_v3  ;;  %v8156_v27 = vld [vmem:[#allocation5 + $0xfa0] sm:$0xf0] }
 0x21f   :  { %4883 = vmatpush.bf16.msra.mxu1 %v6971_v41  ;;  %v4657_v47 = vpop.f32.mrf.mxu3  ;;  %v6827_v41 = vor.u32 %v8048_v26, %v6826_v24  ;;  %v7258_v26 = vld [vmem:[#allocation5 + $0xf98] sm:$0xf]  ;;  %v8180_v40 = vld [vmem:[#allocation5 + $0x1060] sm:$0xf0]  ;;  %v8272_v23 = vld [vmem:[#allocation7] sm:$0x7] }
 0x220   :  { %4896 = vmatpush.bf16.msra.mxu2 %v7067_v52  ;;  %v4645_v38 = vadd.f32 %v4644_v39, %v4632_v10  ;;  %v4633_v52 = vpop.f32.mrf.mxu1  ;;  %v7462_v10 = vld [vmem:[#allocation5 + $0x1130] sm:$0xf]  ;;  %v7559_v39 = vor.u32 %v8231_v15, %v7558_v32  ;;  %v7450_v43 = vld [vmem:[#allocation5 + $0x1118] sm:$0xf]  ;;  %v8204_v14 = vld [vmem:[#allocation5 + $0x1120] sm:$0xf0]  ;;  %v7259_v17 = vor.u32 %v8156_v27, %v7258_v26 }
 0x221   :  { %4909 = vmatpush.bf16.msra.mxu3 %v7163_v57  ;;  %v6814_v57 = vld [vmem:[#allocation5 + $0xc20] sm:$0xf]  ;;  %v7463_v24 = vor.u32 %v8207_v20, %v7462_v10  ;;  %v7451_v50 = vor.u32 %v8204_v14, %v7450_v43  ;;  %v8153_v52 = vld [vmem:[#allocation5 + $0xf88] sm:$0xf0]  ;;  %v877_v30 = vperm.slane %v8272_v23, 2 }
 0x222   :  { %4871 = vmatpush.bf16.msra.mxu0 %v6863_v61  ;;  %v8624_v42 = vadd.f32 %v4657_v47, %v4645_v38  ;;  %v8093_v61 = vld [vmem:[#allocation5 + $0xda8] sm:$0xf0]  ;;  %v6815_v63 = vor.u32 %v8045_v58, %v6814_v57  ;;  %v7546_v38 = vld [vmem:[#allocation5 + $0x11d8] sm:$0xf]  ;;  %v8228_v47 = vld [vmem:[#allocation5 + $0x11e0] sm:$0xf0] }
 0x223   :  { %4884 = vmatpush.bf16.msra.mxu1 %v6959_v62  ;;  %v7102_v62 = vld [vmem:[#allocation5 + $0xe60] sm:$0xf]  ;;  %v7007_v33 = vor.u32 %v8093_v61, %v7006_v60  ;;  %v8177_v57 = vld [vmem:[#allocation5 + $0x1048] sm:$0xf0]  ;;  %v7234_v61 = vld [vmem:[#allocation5 + $0xf68] sm:$0xf] }
 0x224   :  { %4897 = vmatpush.bf16.msra.mxu2 %v7055_v29  ;;  %v8117_v29 = vld [vmem:[#allocation5 + $0xe68] sm:$0xf0]  ;;  %v7438_v58 = vld [vmem:[#allocation5 + $0x1100] sm:$0xf]  ;;  %v7522_v2 = vld [vmem:[#allocation5 + $0x11a8] sm:$0xf] }
 0x225   :  { %4910 = vmatpush.bf16.msra.mxu3 %v7151_v0  ;;  %v6911_v0 = vor.u32 %v8069_v53, %v6910_v59  ;;  %v7103_v31 = vor.u32 %v8117_v29, %v7102_v62  ;;  %v8201_v59 = vld [vmem:[#allocation5 + $0x1108] sm:$0xf0]  ;;  %v8222_v28 = vld [vmem:[#allocation5 + $0x11b0] sm:$0xf0]  ;;  %v7510_v10 = vld [vmem:[#allocation5 + $0x1190] sm:$0xf] }
 0x226   :  { %4872 = vmatpush.bf16.msra.mxu0 %v6851_v5  ;;  %v8114_v5 = vld [vmem:[#allocation5 + $0xe50] sm:$0xf0]  ;;  %v4646_v4 = vpop.f32.mrf.mxu2  ;;  %v8225_v53 = vld [vmem:[#allocation5 + $0x11c8] sm:$0xf0]  ;;  %v7439_v29 = vor.u32 %v8201_v59, %v7438_v58  ;;  %v8219_v20 = vld [vmem:[#allocation5 + $0x1198] sm:$0xf0] }
 0x227   :  { %4885 = vmatpush.bf16.msra.mxu1 %v6947_v55  ;;  %v7270_v55 = vld [vmem:[#allocation5 + $0xfb0] sm:$0xf]  ;;  %v4659_v8 = vpop.f32.mrf.mxu3  ;;  %v7511_v26 = vor.u32 %v8219_v20, %v7510_v10  ;;  %v8168_v27 = vld [vmem:[#allocation5 + $0x1000] sm:$0xf0]  ;;  %v7498_v14 = vld [vmem:[#allocation5 + $0x1178] sm:$0xf] }
 0x228   :  { %4898 = vmatpush.bf16.msra.mxu2 %v7043_v18  ;;  %v8159_v18 = vld [vmem:[#allocation5 + $0xfb8] sm:$0xf0]  ;;  %v7318_v4 = vld [vmem:[#allocation5 + $0x1010] sm:$0xf]  ;;  %v8165_v59 = vld [vmem:[#allocation5 + $0xfe8] sm:$0xf0] }
 0x229   :  { %4911 = vmatpush.bf16.msra.mxu3 %v7139_v19  ;;  %v8183_v19 = vld [vmem:[#allocation5 + $0x1078] sm:$0xf0]  ;;  %v8138_v23 = vld [vmem:[#allocation5 + $0xf10] sm:$0xf0]  ;;  %v8244_v20 = vld [vmem:[#allocation8 + $0x60] sm:$0xff] }
 0x22a   :  { %4873 = vmatpush.bf16.msra.mxu0 %v6839_v1  ;;  %v7091_v1 = vor.u32 %v8114_v5, %v7090_v35  ;;  %v7222_v35 = vld [vmem:[#allocation5 + $0xf50] sm:$0xf]  ;;  %v8147_v5 = vld [vmem:[#allocation5 + $0xf58] sm:$0xf0] }
 0x22b   :  { %4886 = vmatpush.bf16.msra.mxu1 %v6935_v51  ;;  %v7271_v51 = vor.u32 %v8159_v18, %v7270_v55  ;;  %v8171_v8 = vld [vmem:[#allocation5 + $0x1018] sm:$0xf0] }
 0x22c   :  { %4899 = vmatpush.bf16.msra.mxu2 %v7031_v21  ;;  %v7367_v21 = vor.u32 %v8183_v19, %v7366_v6  ;;  %v7523_v6 = vor.u32 %v8222_v28, %v7522_v2  ;;  %v8195_v19 = vld [vmem:[#allocation5 + $0x10d8] sm:$0xf0]  ;;  %v7319_v32 = vor.u32 %v8171_v8, %v7318_v4  ;;  %v8186_v2 = vld [vmem:[#allocation5 + $0x1090] sm:$0xf0]  ;;  %v8237_v8 = vld [vmem:[#allocation8 + $0x28] sm:$0xff] }
 0x22d   :  { %4912 = vmatpush.bf16.msra.mxu3 %v7127_v34  ;;  %v7354_v34 = vld [vmem:[#allocation5 + $0x1058] sm:$0xf]  ;;  %v8239_v4 = vld [vmem:[#allocation8 + $0x38] sm:$0xff] }
 0x22e   :  { %4874 = vmatpush.bf16.msra.mxu0 %v6827_v41  ;;  %v7355_v48 = vor.u32 %v8180_v40, %v7354_v34  ;;  %v7246_v41 = vld [vmem:[#allocation5 + $0xf80] sm:$0xf]  ;;  %v7402_v34 = vld [vmem:[#allocation5 + $0x10b8] sm:$0xf] }
 0x22f   :  { %4887 = vmatpush.bf16.msra.mxu1 %v6923_v56  ;;  %v7342_v56 = vld [vmem:[#allocation5 + $0x1040] sm:$0xf]  ;;  %v7247_v60 = vor.u32 %v8153_v52, %v7246_v41 }
 0x230   :  { %4900 = vmatpush.bf16.msra.mxu2 %v7019_v44  ;;  %v7547_v44 = vor.u32 %v8228_v47, %v7546_v38  ;;  %v7343_v62 = vor.u32 %v8177_v57, %v7342_v56  ;;  %v8216_v38 = vld [vmem:[#allocation5 + $0x1180] sm:$0xf0]  ;;  %v7198_v52 = vld [vmem:[#allocation5 + $0xf20] sm:$0xf]  ;;  %v8141_v56 = vld [vmem:[#allocation5 + $0xf28] sm:$0xf0] }
 0x231   :  { %4913 = vmatpush.bf16.msra.mxu3 %v7115_v25  ;;  %v7534_v25 = vld [vmem:[#allocation5 + $0x11c0] sm:$0xf]  ;;  %v7499_v58 = vor.u32 %v8216_v38, %v7498_v14  ;;  %v4973_v14 = vmax.f32 %v8583_v54, 0.0  ;;  %v8240_v38 = vld [vmem:[#allocation8 + $0x40] sm:$0xff] }
 0x232   :  { %4875 = vmatpush.bf16.msra.mxu0 %v6815_v63  ;;  %v7330_v63 = vld [vmem:[#allocation5 + $0x1028] sm:$0xf] }
 0x233   :  { %4888 = vmatpush.bf16.msra.mxu1 %v6911_v0  ;;  %v7535_v0 = vor.u32 %v8225_v53, %v7534_v25  ;;  %v7390_v25 = vld [vmem:[#allocation5 + $0x10a0] sm:$0xf]  ;;  %v8189_v53 = vld [vmem:[#allocation5 + $0x10a8] sm:$0xf0] }
 0x234   :  { %4901 = vmatpush.bf16.msra.mxu2 %v7007_v33  ;;  %v7426_v33 = vld [vmem:[#allocation5 + $0x10e8] sm:$0xf] }
 0x235   :  { %4914 = vmatpush.bf16.msra.mxu3 %v7103_v31 }
 0x236   :  { %4876 = vmatpush.bf16.msra.mxu0 %v6803_v9  ;;  %v4670_v3 = vpop.f32.mrf.mxu0  ;;  %v7414_v9 = vld [vmem:[#allocation5 + $0x10d0] sm:$0xf] }
 0x237   :  { %4889 = vmatpush.bf16.msra.mxu1 %v6899_v13  ;;  %v4671_v55 = vadd.f32 %v4670_v3, %v877_v30  ;;  %v4683_v18 = vpop.f32.mrf.mxu1  ;;  %v7415_v15 = vor.u32 %v8195_v19, %v7414_v9  ;;  %v7282_v30 = vld [vmem:[#allocation5 + $0xfc8] sm:$0xf]  ;;  %v8210_v3 = vld [vmem:[#allocation5 + $0x1150] sm:$0xf0]  ;;  %v8245_v9 = vld [vmem:[#allocation8 + $0x68] sm:$0xff] }
 0x238   :  { %4902 = vmatpush.bf16.msra.mxu2 %v6995_v22  ;;  %v7223_v22 = vor.u32 %v8147_v5, %v7222_v35  ;;  %v8236_v19 = vld [vmem:[#allocation8 + $0x20] sm:$0xff] }
 0x239   :  { %4915 = vmatpush.bf16.msra.mxu3 %v7091_v1  ;;  %4877 = vmatmul.bf16.vlgmr.msra.gmra.mxu0 %v8528_v37  ;;  %v8150_v37 = vld [vmem:[#allocation5 + $0xf70] sm:$0xf0]  ;;  %v4684_v13 = vadd.f32 %v4683_v18, %v4671_v55  ;;  %v7210_v1 = vld [vmem:[#allocation5 + $0xf38] sm:$0xf]  ;;  %v8247_v55 = vld [vmem:[#allocation8 + $0x78] sm:$0xff] }
 0x23a   :  { %4921 = vmatpush.bf16.msrb.mxu0 %v7271_v51  ;;  %4890 = vmatmul.bf16.vlgmr.msra.gmra.mxu1 %v8532_v46  ;;  %v8198_v46 = vld [vmem:[#allocation5 + $0x10f0] sm:$0xf0]  ;;  %v8144_v51 = vld [vmem:[#allocation5 + $0xf40] sm:$0xf0] }
 0x23b   :  { %4934 = vmatpush.bf16.msrb.mxu1 %v7367_v21  ;;  %4903 = vmatmul.bf16.vlgmr.msra.gmra.mxu2 %v8530_v45  ;;  %v8174_v45 = vld [vmem:[#allocation5 + $0x1030] sm:$0xf0]  ;;  %v7427_v36 = vor.u32 %v8198_v46, %v7426_v33  ;;  %v7306_v21 = vld [vmem:[#allocation5 + $0xff8] sm:$0xf]  ;;  %v7211_v47 = vor.u32 %v8144_v51, %v7210_v1  ;;  %v7378_v46 = vld [vmem:[#allocation5 + $0x1088] sm:$0xf] }
 0x23c   :  { %4947 = vmatpush.bf16.msrb.mxu2 %v7463_v24  ;;  %4916 = vmatmul.bf16.vlgmr.msra.gmra.mxu3 %v8534_v49  ;;  %v7235_v49 = vor.u32 %v8150_v37, %v7234_v61  ;;  %v7331_v31 = vor.u32 %v8174_v45, %v7330_v63  ;;  %v8213_v61 = vld [vmem:[#allocation5 + $0x1168] sm:$0xf0]  ;;  %v7391_v37 = vor.u32 %v8189_v53, %v7390_v25  ;;  %v7186_v63 = vld [vmem:[#allocation5 + $0xf08] sm:$0xf]  ;;  %v8162_v33 = vld [vmem:[#allocation5 + $0xfd0] sm:$0xf0] }
 0x23d   :  { %4960 = vmatpush.bf16.msrb.mxu3 %v7559_v39  ;;  %v8192_v39 = vld [vmem:[#allocation5 + $0x10c0] sm:$0xf0]  ;;  %v7379_v35 = vor.u32 %v8186_v2, %v7378_v46  ;;  %v8238_v18 = vld [vmem:[#allocation8 + $0x30] sm:$0xff]  ;;  %v8251_v2 = vld [vmem:[#allocation8 + $0x98] sm:$0xff] }
 0x23e   :  { %4922 = vmatpush.bf16.msrb.mxu0 %v7259_v17  ;;  %v4696_v24 = vpop.f32.mrf.mxu2  ;;  %v7403_v41 = vor.u32 %v8192_v39, %v7402_v34  ;;  %v8234_v1 = vld [vmem:[#allocation8 + $0x10] sm:$0xff]  ;;  %v8241_v34 = vld [vmem:[#allocation8 + $0x48] sm:$0xff]  ;;  %v8252_v46 = vld [vmem:[#allocation8 + $0xa0] sm:$0xff] }
 0x23f   :  { %4935 = vmatpush.bf16.msrb.mxu1 %v7355_v48  ;;  %v4697_v40 = vadd.f32 %v4696_v24, %v4684_v13  ;;  %v4709_v43 = vpop.f32.mrf.mxu3  ;;  %v4672_v48 = vpop.f32.mrf.mxu0  ;;  %v8242_v24 = vld [vmem:[#allocation8 + $0x50] sm:$0xff] }
 0x240   :  { %4948 = vmatpush.bf16.msrb.mxu2 %v7451_v50  ;;  %v7307_v50 = vor.u32 %v8168_v27, %v7306_v21  ;;  %v4685_v57 = vpop.f32.mrf.mxu1  ;;  %v8233_v27 = vld [vmem:[#allocation8 + $0x8] sm:$0xff] }
 0x241   :  { %4961 = vmatpush.bf16.msrb.mxu3 %v7547_v44  ;;  %v8630_v17 = vadd.f32 %v4709_v43, %v4697_v40  ;;  %v7294_v44 = vld [vmem:[#allocation5 + $0xfe0] sm:$0xf]  ;;  %v8232_v43 = vld [vmem:[#allocation8] sm:$0xff] }
 0x242   :  { %4923 = vmatpush.bf16.msrb.mxu0 %v7247_v60  ;;  %v7486_v60 = vld [vmem:[#allocation5 + $0x1160] sm:$0xf] }
 0x243   :  { %4936 = vmatpush.bf16.msrb.mxu1 %v7343_v62  ;;  %v7199_v62 = vor.u32 %v8141_v56, %v7198_v52  ;;  %v7487_v45 = vor.u32 %v8213_v61, %v7486_v60 }
 0x244   :  { %4949 = vmatpush.bf16.msrb.mxu2 %v7439_v29  ;;  %v7295_v29 = vor.u32 %v8165_v59, %v7294_v44 }
 0x245   :  { %4962 = vmatpush.bf16.msrb.mxu3 %v7535_v0 }
 0x246   :  { %4924 = vmatpush.bf16.msrb.mxu0 %v7235_v49  ;;  %v4698_v0 = vpop.f32.mrf.mxu2  ;;  %v7474_v49 = vld [vmem:[#allocation5 + $0x1148] sm:$0xf] }
 0x247   :  { %4937 = vmatpush.bf16.msrb.mxu1 %v7331_v31  ;;  %v4711_v28 = vpop.f32.mrf.mxu3  ;;  %v7187_v31 = vor.u32 %v8138_v23, %v7186_v63  ;;  %v7475_v5 = vor.u32 %v8210_v3, %v7474_v49  ;;  %v8255_v63 = vld [vmem:[#allocation8 + $0xb8] sm:$0xff]  ;;  %v8253_v0 = vld [vmem:[#allocation8 + $0xa8] sm:$0xff]  ;;  %v8250_v49 = vld [vmem:[#allocation8 + $0x90] sm:$0xff] }
 0x248   :  { %4950 = vmatpush.bf16.msrb.mxu2 %v7427_v36  ;;  %v7283_v36 = vor.u32 %v8162_v33, %v7282_v30  ;;  %v8254_v30 = vld [vmem:[#allocation8 + $0xb0] sm:$0xff] }
 0x249   :  { %4963 = vmatpush.bf16.msrb.mxu3 %v7523_v6  ;;  %v8246_v6 = vld [vmem:[#allocation8 + $0x70] sm:$0xff] }
 0x24a   :  { %4925 = vmatpush.bf16.msrb.mxu0 %v7223_v22 }
 0x24b   :  { %4938 = vmatpush.bf16.msrb.mxu1 %v7319_v32  ;;  %v8235_v32 = vld [vmem:[#allocation8 + $0x18] sm:$0xff] }
 0x24c   :  { %4951 = vmatpush.bf16.msrb.mxu2 %v7415_v15 }
 0x24d   :  { %4964 = vmatpush.bf16.msrb.mxu3 %v7511_v26 }
 0x24e   :  { %4926 = vmatpush.bf16.msrb.mxu0 %v7211_v47  ;;  %v4974_v47 = vmax.f32 %v8624_v42, 0.0 }
 0x24f   :  { %4939 = vmatpush.bf16.msrb.mxu1 %v7307_v50 }
 0x250   :  { %4952 = vmatpush.bf16.msrb.mxu2 %v7403_v41  ;;  %v4977_v48 = vpack.c.bf16 %v4974_v47, %v4974_v47 }
 0x251   :  { %4965 = vmatpush.bf16.msrb.mxu3 %v7499_v58 }
 0x252   :  { %4927 = vmatpush.bf16.msrb.mxu0 %v7199_v62 }
 0x253   :  { %4940 = vmatpush.bf16.msrb.mxu1 %v7295_v29 }
 0x254   :  { %4953 = vmatpush.bf16.msrb.mxu2 %v7391_v37 }
 0x255   :  { %4966 = vmatpush.bf16.msrb.mxu3 %v7487_v45 }
 0x256   :  { %4928 = vmatpush.bf16.msrb.mxu0 %v7187_v31  ;;  %v4722_v10 = vpop.f32.mrf.mxu0  ;;  %v8249_v31 = vld [vmem:[#allocation8 + $0x88] sm:$0xff] }
 0x257   :  { %4941 = vmatpush.bf16.msrb.mxu1 %v7283_v36  ;;  %v4723_v13 = vadd.f32 %v4722_v10, %v8630_v17  ;;  %v4735_v22 = vpop.f32.mrf.mxu1  ;;  %v4976_v17 = vpack.c.bf16 %v4973_v14, %v4973_v14 }
 0x258   :  { %4954 = vmatpush.bf16.msrb.mxu2 %v7379_v35 }
 0x259   :  { %4967 = vmatpush.bf16.msrb.mxu3 %v7475_v5  ;;  %4929 = vmatmul.bf16.vlgmr.msrb.gmra.mxu0 %v8542_v7  ;;  %v4736_v7 = vadd.f32 %v4735_v22, %v4723_v13 }
 0x25a   :  { %5175 = vmatpush.bf16.msra.mxu0 %v8239_v4  ;;  %4942 = vmatmul.bf16.vlgmr.msrb.gmra.mxu1 %v8546_v12  ;;  %v8243_v12 = vld [vmem:[#allocation8 + $0x58] sm:$0xff] }
 0x25b   :  { %5188 = vmatpush.bf16.msra.mxu1 %v8247_v55  ;;  %4955 = vmatmul.bf16.vlgmr.msrb.gmra.mxu2 %v8544_v11 }
 0x25c   :  { %4968 = vmatmul.bf16.vlgmr.msrb.gmra.mxu3 %v8548_v16  ;;  %5201 = vmatpush.bf16.msra.mxu2 %v8255_v63 }
 0x25e   :  { %5176 = vmatpush.bf16.msra.mxu0 %v8238_v18  ;;  %v4748_v11 = vpop.f32.mrf.mxu2  ;;  %v4724_v21 = vpop.f32.mrf.mxu0  ;;  %v8248_v18 = vld [vmem:[#allocation8 + $0x80] sm:$0xff] }
 0x25f   :  { %5189 = vmatpush.bf16.msra.mxu1 %v8246_v6  ;;  %v4749_v15 = vadd.f32 %v4748_v11, %v4736_v7  ;;  %v4761_v16 = vpop.f32.mrf.mxu3  ;;  %v4737_v26 = vpop.f32.mrf.mxu1 }
 0x260   :  { %5202 = vmatpush.bf16.msra.mxu2 %v8254_v30 }
 0x261   :  { %v4762_v51 = vadd.f32 %v4761_v16, %v4749_v15 }
 0x262   :  { %5177 = vmatpush.bf16.msra.mxu0 %v8237_v8 }
 0x263   :  { %5190 = vmatpush.bf16.msra.mxu1 %v8245_v9 }
 0x264   :  { %5203 = vmatpush.bf16.msra.mxu2 %v8253_v0 }
 0x266   :  { %5178 = vmatpush.bf16.msra.mxu0 %v8236_v19  ;;  %v4750_v39 = vpop.f32.mrf.mxu2 }
 0x267   :  { %5191 = vmatpush.bf16.msra.mxu1 %v8244_v20  ;;  %v4763_v40 = vpop.f32.mrf.mxu3 }
 0x268   :  { %5204 = vmatpush.bf16.msra.mxu2 %v8252_v46 }
 0x26a   :  { %5179 = vmatpush.bf16.msra.mxu0 %v8235_v32 }
 0x26b   :  { %5192 = vmatpush.bf16.msra.mxu1 %v8243_v12 }
 0x26c   :  { %5205 = vmatpush.bf16.msra.mxu2 %v8251_v2 }
 0x26e   :  { %5180 = vmatpush.bf16.msra.mxu0 %v8234_v1 }
 0x26f   :  { %5193 = vmatpush.bf16.msra.mxu1 %v8242_v24 }
 0x270   :  { %5206 = vmatpush.bf16.msra.mxu2 %v8250_v49 }
 0x272   :  { %5181 = vmatpush.bf16.msra.mxu0 %v8233_v27 }
 0x273   :  { %5194 = vmatpush.bf16.msra.mxu1 %v8241_v34 }
 0x274   :  { %5207 = vmatpush.bf16.msra.mxu2 %v8249_v31 }
 0x276   :  { %5182 = vmatpush.bf16.msra.mxu0 %v8232_v43  ;;  %v4774_v50 = vpop.f32.mrf.mxu0  ;;  %v8266_v43 = vld [vmem:[#allocation10] ss:$0 sm:$0xff] }
 0x277   :  { %5195 = vmatpush.bf16.msra.mxu1 %v8240_v38  ;;  %v4775_v41 = vadd.f32 %v4774_v50, %v4762_v51  ;;  %v4787_v52 = vpop.f32.mrf.mxu1 }
 0x278   :  { %5208 = vmatpush.bf16.msra.mxu2 %v8248_v18 }
 0x279   :  { %5183 = vmatmul.bf16.vlgmr.msra.gmra.mxu0 %v4976_v17  ;;  %v4788_v56 = vadd.f32 %v4787_v52, %v4775_v41 }
 0x27a   :  { %5196 = vmatmul.bf16.vlgmr.msra.gmra.mxu1 %v4977_v48 }
 0x27e   :  { %v4800_v44 = vpop.f32.mrf.mxu2  ;;  %v4776_v59 = vpop.f32.mrf.mxu0 }
 0x27f   :  { %v4801_v57 = vadd.f32 %v4800_v44, %v4788_v56  ;;  %v4813_v58 = vpop.f32.mrf.mxu3  ;;  %v4789_v25 = vpop.f32.mrf.mxu1 }
 0x281   :  { %v4814_v54 = vadd.f32 %v4813_v58, %v4801_v57 }
 0x286   :  { %v4802_v53 = vpop.f32.mrf.mxu2 }
 0x287   :  { %v4815_v60 = vpop.f32.mrf.mxu3 }
 0x296   :  { %v4826_v61 = vpop.f32.mrf.mxu0 }
 0x297   :  { %v4839_v42 = vpop.f32.mrf.mxu1  ;;  %v4827_v36 = vadd.f32 %v4826_v61, %v4814_v54 }
 0x299   :  { %v4840_v6 = vadd.f32 %v4839_v42, %v4827_v36 }
 0x29e   :  { %v4852_v62 = vpop.f32.mrf.mxu2  ;;  %v4828_v37 = vpop.f32.mrf.mxu0 }
 0x29f   :  { %v4865_v29 = vpop.f32.mrf.mxu3  ;;  %v4841_v23 = vpop.f32.mrf.mxu1  ;;  %v4853_v8 = vadd.f32 %v4852_v62, %v4840_v6 }
 0x2a1   :  { %v4866_v10 = vadd.f32 %v4865_v29, %v4853_v8 }
 0x2a6   :  { %v4854_v45 = vpop.f32.mrf.mxu2 }
 0x2a7   :  { %v4867_v33 = vpop.f32.mrf.mxu3 }
 0x2b6   :  { %v4878_v28 = vpop.f32.mrf.mxu0 }
 0x2b7   :  { %v4891_v3 = vpop.f32.mrf.mxu1  ;;  %v4879_v20 = vadd.f32 %v4878_v28, %v4866_v10 }
 0x2b9   :  { %v4892_v13 = vadd.f32 %v4891_v3, %v4879_v20 }
 0x2be   :  { %v4904_v35 = vpop.f32.mrf.mxu2  ;;  %v4880_v4 = vpop.f32.mrf.mxu0 }
 0x2bf   :  { %v4917_v5 = vpop.f32.mrf.mxu3  ;;  %v4893_v55 = vpop.f32.mrf.mxu1  ;;  %v4905_v22 = vadd.f32 %v4904_v35, %v4892_v13 }
 0x2c1   :  { %v4918_v7 = vadd.f32 %v4917_v5, %v4905_v22 }
 0x2c6   :  { %v4906_v9 = vpop.f32.mrf.mxu2 }
 0x2c7   :  { %v4919_v19 = vpop.f32.mrf.mxu3 }
 0x2d6   :  { %v4930_v32 = vpop.f32.mrf.mxu0 }
 0x2d7   :  { %v4943_v12 = vpop.f32.mrf.mxu1  ;;  %v4931_v11 = vadd.f32 %v4930_v32, %v4918_v7 }
 0x2d9   :  { %v4944_v15 = vadd.f32 %v4943_v12, %v4931_v11 }
 0x2de   :  { %v4956_v16 = vpop.f32.mrf.mxu2  ;;  %v4932_v21 = vpop.f32.mrf.mxu0 }
 0x2df   :  { %v4957_v1 = vadd.f32 %v4956_v16, %v4944_v15  ;;  %v4969_v51 = vpop.f32.mrf.mxu3  ;;  %v4945_v24 = vpop.f32.mrf.mxu1 }
 0x2e1   :  { %v4970_v26 = vadd.f32 %v4969_v51, %v4957_v1 }
 0x2e3   :  { %v4975_v27 = vmax.f32 %v4970_v26, 0.0 }
 0x2e5   :  { %v4978_v34 = vpack.c.bf16 %v4975_v27, %v4975_v27 }
 0x2e6   :  { %v4958_v39 = vpop.f32.mrf.mxu2 }
 0x2e7   :  { %v4971_v40 = vpop.f32.mrf.mxu3  ;;  %5209 = vmatmul.bf16.vlgmr.msra.gmra.mxu2 %v4978_v34 }
 0x2f6   :  { %v5184_v14 = vpop.f32.mrf.mxu0 }
 0x2f7   :  { %v5185_v38 = vadd.f32 %v8266_v43, %v5184_v14  ;;  %v5197_v47 = vpop.f32.mrf.mxu1 }
 0x2f9   :  { %v5198_v17 = vadd.f32 %v5197_v47, %v5185_v38 }
 0x2fe   :  { %v5186_v48 = vpop.f32.mrf.mxu0 }
 0x2ff   :  { %v5199_v50 = vpop.f32.mrf.mxu1 }
 0x36a   :  { %v5210_v41 = vpop.f32.mrf.mxu2 }
 0x36b   :  { %v5211_v52 = vadd.f32 %v5210_v41, %v5198_v17 }
 0x36d   :  { %5214 = vmax.xlane.f32.xlu0 %v5211_v52 }
 0x372   :  { %v5212_v56 = vpop.f32.mrf.mxu2 }
 0x3e0   :  { %v5215_v44 = vpop.xlane.xlu0 %5214 }
 0x3e1   :  { %v5216_v57 = vsub.f32 %v5211_v52, %v5215_v44 }
 0x3e3   :  { %v5217_v58 = vmul.f32 1.442695, %v5216_v57 }
 0x3e5   :  { %8267 = vpow2.f32 %v5217_v58 }
 0x3eb   :  { %v8268_v59 = vpop.eup %8267 }
 0x3ec   :  { %5219 = vadd.xlane.f32.xlu0 %v8268_v59 }
 0x45f   :  { %v5220_v25 = vpop.xlane.xlu0 %5219 }
 0x460   :  { %8269 = vrcp.f32 %v5220_v25  ;;  %v5232_v61 = vand.u32 2147483648, %v5220_v25  ;;  %v5230_v62 = vand.u32 2147483647, %v5220_v25  ;;  %vm5226_vm1 = vweird.f32 %v5220_v25 }
 0x462   :  { %v5233_v37 = vor.u32 1.1754944e-38, %v5232_v61  ;;  %vm5231_vm3 = vcmp.eq.f32.partialorder %v5230_v62, 8.507059e+37 }
 0x466   :  { %v8270_v54 = vpop.eup %8269 }
 0x467   :  { %v5222_v53 = vmul.f32 %v8270_v54, %v5220_v25  ;;  %vm5227_vm0 = vweird.f32 %v8270_v54 }
 0x468   :  { %vm5228_vm2 = vmor %vm5226_vm1, %vm5227_vm0 }
 0x469   :  { %v5223_v60 = vsub.f32 1.0, %v5222_v53 }
 0x46b   :  { %v5224_v42 = vmul.f32 %v8270_v54, %v5223_v60 }
 0x46d   :  { %v5225_v29 = vadd.f32 %v8270_v54, %v5224_v42 }
 0x46f   :  { %v5229_v63 = vsel %vm5228_vm2, %v8270_v54, %v5225_v29 }
 0x470   :  { %v5234_v23 = vsel %vm5231_vm3, %v5233_v37, %v5229_v63 }
 0x471   :  { %v5235_v30 = vmul.f32 %v8268_v59, %v5234_v23 }
 0x473   :  { %5236 = vst [vmem:[#allocation11] sm:$0xff] %v5235_v30 }
 0x474   :  { %5247 = dma.vmem_to_hbm [thread:$0]  %s5243_s4, 128, %s5245_s21, [#allocation4]  }
 0x475   :  { %8423 = dma.done.wait [#allocation4], 128  }
 0x476   :  { %8424 = vsyncadd [#allocation4], 4294967168 }
 0x477   :  { %5252 = vsyncpa [#allocation3], 1 }
 0x478   :  { %5253 = vsyncpa [#allocation6], 1 }
 0x479   :  { %5254 = vsyncpa [#allocation9], 1 }
 0x47a   :  { %5255 = vsyncpa [#allocation4], 1 }

</bundles_post_ra>
